<compile_context>
chip_gen: v5e
topology: v5e:2x2
jax: 0.10.0
libtpu: 0.0.40
codegen_flags: <defaults>
</compile_context>

<pallas_src>
import functools

import jax
import jax.numpy as jnp
from jax import lax
from jax.experimental import pallas as pl
from jax.experimental.pallas import tpu as pltpu


# ------------------------------ fused kernel ------------------------------
def _fused_rnn_kernel(*refs, num_layers, seq_len, b_blk, hidden, t_chunk, compute_dtype):
    # refs = [x, (w_ih_t, w_hh_t, b) * L, fc_w_t, fc_b, out, gx_scr, hseq_scr]
    x_ref = refs[0]
    layer_refs = [tuple(refs[1 + 3 * l: 4 + 3 * l]) for l in range(num_layers)]
    fcw_ref = refs[1 + 3 * num_layers]
    fcb_ref = refs[2 + 3 * num_layers]
    out_ref = refs[3 + 3 * num_layers]
    gx_scr = refs[4 + 3 * num_layers]     # (t_chunk*b_blk, 4H) f32: hoisted input projection
    hseq_scr = refs[5 + 3 * num_layers]   # (T*b_blk, H) f32: inter-layer hidden sequence

    Hp = hidden

    # Static time-chunk schedule (seq_len is static at trace time).
    chunk_sizes = [t_chunk] * (seq_len // t_chunk)
    if seq_len % t_chunk:
        chunk_sizes.append(seq_len % t_chunk)

    # Unroll sized to the per-step live set: one (b_blk, 4H) f32 gate tile in vregs.
    gate_tile_vregs = max(1, (b_blk // 8) * ((4 * Hp) // 128))
    if gate_tile_vregs <= 8:
        unroll = 8
    elif gate_tile_vregs <= 16:
        unroll = 4
    else:
        unroll = 2

    h_last = None
    for l in range(num_layers):
        wih_ref, whh_ref, b_ref = layer_refs[l]
        in_ref = x_ref if l == 0 else hseq_scr     # layer input sequence (rows = t*b_blk + b)
        wih = wih_ref[...]                         # (d_in, 4H) bf16
        whh = whh_ref[...]                         # (H, 4H)   bf16, loop-invariant
        bias = b_ref[...]                          # (1, 4H)   f32
        last_layer = (l == num_layers - 1)

        h = jnp.zeros((b_blk, Hp), jnp.float32)    # h0 = c0 = 0, as in the module
        c = jnp.zeros((b_blk, Hp), jnp.float32)

        t0 = 0
        for cl in chunk_sizes:                     # static Python chunk loop
            rows = cl * b_blk
            # Hoisted input projection for this chunk: one big MXU matmul (bf16 x bf16 -> f32).
            a_in = in_ref[pl.ds(t0 * b_blk, rows), :].astype(compute_dtype)
            gx_scr[pl.ds(0, rows), :] = (
                jnp.dot(a_in, wih, preferred_element_type=jnp.float32) + bias
            )

            def step(t, carry, whh=whh, last_layer=last_layer, t0=t0):
                h, c = carry
                row = pl.multiple_of(t * b_blk, b_blk)        # sublane-aligned slice start
                gates = gx_scr[pl.ds(row, b_blk), :] + jnp.dot(
                    h.astype(compute_dtype), whh, preferred_element_type=jnp.float32
                )                                             # (b_blk, 4H) f32
                # Gate order is [i, f, o, g]: one sigmoid over 3H lanes, one tanh over H lanes.
                sg = jax.nn.sigmoid(gates[:, :3 * Hp])
                g_g = jnp.tanh(gates[:, 3 * Hp:])
                i_g = sg[:, :Hp]
                f_g = sg[:, Hp:2 * Hp]
                o_g = sg[:, 2 * Hp:3 * Hp]
                c_new = f_g * c + i_g * g_g
                h_new = o_g * jnp.tanh(c_new)
                if not last_layer:                            # lower layers feed the next layer
                    grow = pl.multiple_of(t * b_blk + t0 * b_blk, b_blk)
                    hseq_scr[pl.ds(grow, b_blk), :] = h_new
                return h_new, c_new

            h, c = lax.fori_loop(0, cl, step, (h, c), unroll=min(cl, unroll))
            t0 += cl
        h_last = h

    # FC head on the last timestep's hidden state only (f32).
    out_ref[...] = (
        jnp.dot(h_last, fcw_ref[...], preferred_element_type=jnp.float32) + fcb_ref[...]
    ).astype(out_ref.dtype)


# ------------------------------ wrapper ------------------------------
def thinking_sequence_rnn(x, params, *, b_blk=None, t_chunk=64):
    """Forward pass of ThinkingSequenceRNN. x: (B, T, input_size) -> (B, num_classes)."""
    B, T, Din = x.shape
    Hp = params["lstm"][0]["w_hh_t"].shape[0]          # lane-padded hidden size
    C = params["fc_w_t"].shape[1]
    L = len(params["lstm"])
    compute_dtype = params["lstm"][0]["w_ih_t"].dtype  # bf16 matmul operands (f32 accumulate)

    # Batch blocking: >= 8 sublanes, up to 128 MXU rows per recurrent matmul; blocks form a
    # "parallel" grid axis (uses both TensorCores on v7x when there is more than one block).
    if b_blk is None:
        b_blk = min(128, ((B + 7) // 8) * 8)
    b_blk = max(8, ((b_blk + 7) // 8) * 8)
    n_blk = pl.cdiv(B, b_blk)
    B_pad = n_blk * b_blk
    t_chunk = max(1, min(t_chunk, T))

    # Pad batch, block it, go time-major inside each block: row = t * b_blk + b_local.
    xp = jnp.pad(x, ((0, B_pad - B), (0, 0), (0, 0))).astype(compute_dtype)
    xb = xp.reshape(n_blk, b_blk, T, Din).transpose(0, 2, 1, 3).reshape(n_blk, T * b_blk, Din)

    inputs = [xb]
    in_specs = [pl.BlockSpec((None, T * b_blk, Din), lambda i: (i, 0, 0))]
    w_bytes = 0
    for layer in params["lstm"]:
        for name in ("w_ih_t", "w_hh_t", "b"):
            w = layer[name]
            inputs.append(w)
            in_specs.append(pl.BlockSpec(w.shape, lambda i: (0, 0)))
            w_bytes += w.size * w.dtype.itemsize
    for name in ("fc_w_t", "fc_b"):
        w = params[name]
        inputs.append(w)
        in_specs.append(pl.BlockSpec(w.shape, lambda i: (0, 0)))
        w_bytes += w.size * w.dtype.itemsize

    kernel = functools.partial(
        _fused_rnn_kernel, num_layers=L, seq_len=T, b_blk=b_blk, hidden=Hp,
        t_chunk=t_chunk, compute_dtype=compute_dtype,
    )

    # Explicit VMEM budget: pipelined x/out blocks (x2), weights (x2 headroom), scratches.
    itemsize = jnp.dtype(compute_dtype).itemsize
    x_blk_bytes = T * b_blk * Din * itemsize
    gx_bytes = t_chunk * b_blk * 4 * Hp * 4
    hseq_bytes = T * b_blk * Hp * 4
    out_bytes = b_blk * C * 4
    need = 2 * (x_blk_bytes + out_bytes + w_bytes) + gx_bytes + hseq_bytes
    vmem_limit = int(min(100 * 2**20, max(int(need * 1.5), 32 * 2**20)))

    out = pl.pallas_call(
        kernel,
        out_shape=jax.ShapeDtypeStruct((n_blk, b_blk, C), jnp.float32),
        grid_spec=pltpu.PrefetchScalarGridSpec(
            num_scalar_prefetch=0,
            grid=(n_blk,),
            in_specs=in_specs,
            out_specs=pl.BlockSpec((None, b_blk, C), lambda i: (i, 0, 0)),
            scratch_shapes=[
                pltpu.VMEM((t_chunk * b_blk, 4 * Hp), jnp.float32),   # hoisted gates (chunked)
                pltpu.VMEM((T * b_blk, Hp), jnp.float32),             # inter-layer hidden seq
            ],
        ),
        compiler_params=pltpu.CompilerParams(
            dimension_semantics=("parallel",),
            vmem_limit_bytes=vmem_limit,
        ),
    )(*inputs)
    return out.reshape(B_pad, C)[:B]


# ------------------------------ parameter prep ------------------------------
def init_params(key, input_size, hidden_size, num_layers, num_classes):
    """Raw PyTorch-layout params: uniform(-1/sqrt(H), 1/sqrt(H)), gate order [i, f, g, o]."""
    k = 1.0 / (hidden_size ** 0.5)
    layers = []
    for l in range(num_layers):
        d_in = input_size if l == 0 else hidden_size
        key, k1, k2, k3, k4 = jax.random.split(key, 5)
        layers.append({
            "w_ih": jax.random.uniform(k1, (4 * hidden_size, d_in), jnp.float32, -k, k),
            "w_hh": jax.random.uniform(k2, (4 * hidden_size, hidden_size), jnp.float32, -k, k),
            "b_ih": jax.random.uniform(k3, (4 * hidden_size,), jnp.float32, -k, k),
            "b_hh": jax.random.uniform(k4, (4 * hidden_size,), jnp.float32, -k, k),
        })
    key, k5, k6 = jax.random.split(key, 3)
    fc_w = jax.random.uniform(k5, (num_classes, hidden_size), jnp.float32, -k, k)
    fc_b = jax.random.uniform(k6, (num_classes,), jnp.float32, -k, k)
    return {"lstm": layers, "fc_w": fc_w, "fc_b": fc_b}


def prepare_params(raw, compute_dtype=jnp.bfloat16):
    """Repack for the kernel: gate order [i,f,o,g], H padded to 128 lanes, bf16 matmul weights,
    bias b_ih+b_hh folded, weights pre-transposed to (in_dim, 4H)."""
    H = raw["lstm"][0]["w_hh"].shape[1]
    Hp = ((H + 127) // 128) * 128
    perm = jnp.array([0, 1, 3, 2])                 # PyTorch [i,f,g,o] -> kernel [i,f,o,g]

    def repack_rows(w):                            # (4H, d) -> (4Hp, d), zero-padded per gate
        w4 = w.reshape(4, H, -1)[perm]
        w4 = jnp.pad(w4, ((0, 0), (0, Hp - H), (0, 0)))
        return w4.reshape(4 * Hp, -1)

    layers = []
    for l, layer in enumerate(raw["lstm"]):
        w_ih_r = repack_rows(layer["w_ih"])                         # (4Hp, d_in)
        w_hh_r = jnp.pad(repack_rows(layer["w_hh"]), ((0, 0), (0, Hp - H)))  # (4Hp, Hp)
        if l > 0:                                                   # deeper layers eat padded h
            w_ih_r = jnp.pad(w_ih_r, ((0, 0), (0, Hp - H)))
        b = (layer["b_ih"] + layer["b_hh"]).reshape(4, H)[perm]
        b = jnp.pad(b, ((0, 0), (0, Hp - H))).reshape(4 * Hp)
        layers.append({
            "w_ih_t": w_ih_r.T.astype(compute_dtype),               # (d_in | Hp, 4Hp) bf16
            "w_hh_t": w_hh_r.T.astype(compute_dtype),               # (Hp, 4Hp) bf16
            "b": b[None, :].astype(jnp.float32),                    # (1, 4Hp) f32
        })
    fc_w_t = jnp.pad(raw["fc_w"].T, ((0, Hp - H), (0, 0))).astype(jnp.float32)   # (Hp, C)
    fc_b = raw["fc_b"][None, :].astype(jnp.float32)                               # (1, C)
    return {"lstm": layers, "fc_w_t": fc_w_t, "fc_b": fc_b}


# ------------------------------ references ------------------------------
def _mirror_reference(x, prep):
    """Pure-JAX reference mirroring the kernel's exact math (bf16 matmul operands, f32 acc)."""
    cd = prep["lstm"][0]["w_ih_t"].dtype
    Hp = prep["lstm"][0]["w_hh_t"].shape[0]
    B = x.shape[0]
    seq_in = x
    h_last = None
    for layer in prep["lstm"]:
        a = seq_in.astype(cd)

        def step(carry, a_t, layer=layer):
            h, c = carry
            gates = (jnp.dot(a_t, layer["w_ih_t"], preferred_element_type=jnp.float32)
                     + layer["b"]
                     + jnp.dot(h.astype(cd), layer["w_hh_t"],
                               preferred_element_type=jnp.float32))
            i = jax.nn.sigmoid(gates[:, :Hp])
            f = jax.nn.sigmoid(gates[:, Hp:2 * Hp])
            o = jax.nn.sigmoid(gates[:, 2 * Hp:3 * Hp])
            g = jnp.tanh(gates[:, 3 * Hp:])
            c = f * c + i * g
            h = o * jnp.tanh(c)
            return (h, c), h

        init = (jnp.zeros((B, Hp), jnp.float32), jnp.zeros((B, Hp), jnp.float32))
        (h_T, _), hs = lax.scan(step, init, jnp.swapaxes(a, 0, 1))
        seq_in = jnp.swapaxes(hs, 0, 1)
        h_last = h_T
    return jnp.dot(h_last, prep["fc_w_t"], preferred_element_type=jnp.float32) + prep["fc_b"]


def _reference_f32(x, raw):
    """PyTorch-faithful full-f32 LSTM reference (gate order [i, f, g, o])."""
    B = x.shape[0]
    seq = x
    for layer in raw["lstm"]:
        H = layer["w_hh"].shape[1]
        w_ih_t, w_hh_t = layer["w_ih"].T, layer["w_hh"].T
        b = (layer["b_ih"] + layer["b_hh"])[None, :]

        def step(carry, x_t, w_ih_t=w_ih_t, w_hh_t=w_hh_t, b=b):
            h, c = carry
            gates = x_t @ w_ih_t + h @ w_hh_t + b
            i, f, g, o = jnp.split(gates, 4, axis=-1)
            c = jax.nn.sigmoid(f) * c + jax.nn.sigmoid(i) * jnp.tanh(g)
            h = jax.nn.sigmoid(o) * jnp.tanh(c)
            return (h, c), h

        init = (jnp.zeros((B, H), jnp.float32), jnp.zeros((B, H), jnp.float32))
        _, hs = lax.scan(step, init, jnp.swapaxes(seq, 0, 1))
        seq = jnp.swapaxes(hs, 0, 1)
    return seq[:, -1, :] @ raw["fc_w"].T + raw["fc_b"][None, :]


if __name__ == "__main__":
    batch, seq, input_size, hidden_size, num_layers, num_classes = 2, 8, 16, 32, 2, 4

    key = jax.random.PRNGKey(0)
    key, xk, pk = jax.random.split(key, 3)
    x = jax.random.normal(xk, (batch, seq, input_size), jnp.float32)
    raw = init_params(pk, input_size, hidden_size, num_layers, num_classes)
    prep = prepare_params(raw, compute_dtype=jnp.bfloat16)

    out = jax.block_until_ready(thinking_sequence_rnn(x, prep))
    assert out.shape == (batch, num_classes), out.shape

    # Tight check against a reference that mirrors the kernel's bf16-matmul / f32-state math.
    mirror = jax.block_until_ready(_mirror_reference(x, prep))
    assert jnp.allclose(out, mirror, atol=2e-3, rtol=2e-3), (out, mirror)

    # Looser end-to-end check against the PyTorch-faithful full-f32 LSTM.
    golden = jax.block_until_ready(_reference_f32(x, raw))
    assert jnp.allclose(out, golden, atol=2.5e-2, rtol=2.5e-2), (out, golden)

    print("KERNEL_OK")
</pallas_src>

<mosaic_0001>
module attributes {stable_mosaic.version = 11 : i64} {
  func.func @_fused_rnn_kernel(%arg0: i32, %arg1: memref<1x64x16xbf16, #tpu.memory_space<vmem>>, %arg2: memref<16x512xbf16, #tpu.memory_space<vmem>>, %arg3: memref<128x512xbf16, #tpu.memory_space<vmem>>, %arg4: memref<1x512xf32, #tpu.memory_space<vmem>>, %arg5: memref<128x512xbf16, #tpu.memory_space<vmem>>, %arg6: memref<128x512xbf16, #tpu.memory_space<vmem>>, %arg7: memref<1x512xf32, #tpu.memory_space<vmem>>, %arg8: memref<128x4xf32, #tpu.memory_space<vmem>>, %arg9: memref<1x4xf32, #tpu.memory_space<vmem>>, %arg10: memref<1x8x4xf32, #tpu.memory_space<vmem>>, %arg11: memref<64x512xf32, #tpu.memory_space<vmem>>, %arg12: memref<64x128xf32, #tpu.memory_space<vmem>>) attributes {dimension_semantics = [#tpu.dimension_semantics<parallel>], iteration_bounds = array<i64: 1>, scalar_prefetch = 0 : i64, scratch_operands = 2 : i64, tpu.core_type = #tpu.core_type<tc>, window_params = [{transform_indices = @transform_0, window_bounds = array<i64: 1, 64, 16>}, {pipeline_mode = #tpu.pipeline_mode<synchronous>, transform_indices = @transform_1, window_bounds = array<i64: 16, 512>}, {pipeline_mode = #tpu.pipeline_mode<synchronous>, transform_indices = @transform_2, window_bounds = array<i64: 128, 512>}, {pipeline_mode = #tpu.pipeline_mode<synchronous>, transform_indices = @transform_3, window_bounds = array<i64: 1, 512>}, {pipeline_mode = #tpu.pipeline_mode<synchronous>, transform_indices = @transform_4, window_bounds = array<i64: 128, 512>}, {pipeline_mode = #tpu.pipeline_mode<synchronous>, transform_indices = @transform_5, window_bounds = array<i64: 128, 512>}, {pipeline_mode = #tpu.pipeline_mode<synchronous>, transform_indices = @transform_6, window_bounds = array<i64: 1, 512>}, {pipeline_mode = #tpu.pipeline_mode<synchronous>, transform_indices = @transform_7, window_bounds = array<i64: 128, 4>}, {pipeline_mode = #tpu.pipeline_mode<synchronous>, transform_indices = @transform_8, window_bounds = array<i64: 1, 4>}, {transform_indices = @transform_9, window_bounds = array<i64: 1, 8, 4>}]} {
    %c0 = arith.constant 0 : index
    %c0_0 = arith.constant 0 : index
    %0 = vector.load %arg2[%c0, %c0_0] : memref<16x512xbf16, #tpu.memory_space<vmem>>, vector<16x512xbf16>
    %c0_1 = arith.constant 0 : index
    %c0_2 = arith.constant 0 : index
    %1 = vector.load %arg3[%c0_1, %c0_2] : memref<128x512xbf16, #tpu.memory_space<vmem>>, vector<128x512xbf16>
    %c0_3 = arith.constant 0 : index
    %c0_4 = arith.constant 0 : index
    %2 = vector.load %arg4[%c0_3, %c0_4] : memref<1x512xf32, #tpu.memory_space<vmem>>, vector<1x512xf32>
    %cst = arith.constant 0.000000e+00 : f32
    %3 = vector.broadcast %cst : f32 to vector<8x128xf32>
    %cst_5 = arith.constant 0.000000e+00 : f32
    %4 = vector.broadcast %cst_5 : f32 to vector<8x128xf32>
    %c0_6 = arith.constant 0 : index
    %c0_7 = arith.constant 0 : index
    %c0_8 = arith.constant 0 : index
    %5 = vector.load %arg1[%c0_6, %c0_7, %c0_8] : memref<1x64x16xbf16, #tpu.memory_space<vmem>>, vector<1x64x16xbf16>
    %6 = vector.shape_cast %5 : vector<1x64x16xbf16> to vector<64x16xbf16>
    %cst_9 = arith.constant dense<0.000000e+00> : vector<64x512xf32>
    %7 = tpu.matmul %6, %0, %cst_9 {dimension_numbers = #tpu.dot_dimension_numbers<[1], [0], [0], [1], [0, 0, 1, 1], [], []>} : vector<64x16xbf16>, vector<16x512xbf16>, vector<64x512xf32> -> vector<64x512xf32>
    %8 = vector.broadcast %2 : vector<1x512xf32> to vector<64x512xf32>
    %9 = arith.addf %7, %8 : vector<64x512xf32>
    %c0_10 = arith.constant 0 : index
    %c0_11 = arith.constant 0 : index
    %10 = vector.load %arg11[%c0_10, %c0_11] : memref<64x512xf32, #tpu.memory_space<vmem>>, vector<64x512xf32>
    tpu.vector_store %arg11[%c0_10, %c0_11], %9 {strides = array<i32>} : memref<64x512xf32, #tpu.memory_space<vmem>>, vector<64x512xf32>,
    %c0_i32 = arith.constant 0 : i32
    %c8_i32 = arith.constant 8 : i32
    %11 = arith.muli %c0_i32, %c8_i32 : i32
    %12 = tpu.assume_multiple %11, 8 : i32
    %13 = arith.index_cast %12 : i32 to index
    %c0_12 = arith.constant 0 : index
    %14 = vector.load %arg11[%13, %c0_12] : memref<64x512xf32, #tpu.memory_space<vmem>>, vector<8x512xf32>
    %15 = arith.truncf %3 : vector<8x128xf32> to vector<8x128xbf16>
    %cst_13 = arith.constant dense<0.000000e+00> : vector<8x512xf32>
    %16 = tpu.matmul %15, %1, %cst_13 {dimension_numbers = #tpu.dot_dimension_numbers<[1], [0], [0], [1], [0, 0, 1, 1], [], []>} : vector<8x128xbf16>, vector<128x512xbf16>, vector<8x512xf32> -> vector<8x512xf32>
    %17 = arith.addf %14, %16 : vector<8x512xf32>
    %18 = vector.extract_strided_slice %17 {offsets = [0, 0], sizes = [8, 384], strides = [1, 1]} : vector<8x512xf32> to vector<8x384xf32>
    %19 = arith.negf %18 : vector<8x384xf32>
    %20 = math.exp %19 : vector<8x384xf32>
    %cst_14 = arith.constant 1.000000e+00 : f32
    %21 = vector.broadcast %cst_14 : f32 to vector<8x384xf32>
    %22 = arith.addf %21, %20 : vector<8x384xf32>
    %23 = arith.divf %21, %22 : vector<8x384xf32>
    %24 = vector.extract_strided_slice %17 {offsets = [0, 384], sizes = [8, 128], strides = [1, 1]} : vector<8x512xf32> to vector<8x128xf32>
    %25 = math.tanh %24 : vector<8x128xf32>
    %26 = vector.extract_strided_slice %23 {offsets = [0, 0], sizes = [8, 128], strides = [1, 1]} : vector<8x384xf32> to vector<8x128xf32>
    %27 = vector.extract_strided_slice %23 {offsets = [0, 128], sizes = [8, 128], strides = [1, 1]} : vector<8x384xf32> to vector<8x128xf32>
    %28 = vector.extract_strided_slice %23 {offsets = [0, 256], sizes = [8, 128], strides = [1, 1]} : vector<8x384xf32> to vector<8x128xf32>
    %29 = arith.mulf %27, %4 : vector<8x128xf32>
    %30 = arith.mulf %26, %25 : vector<8x128xf32>
    %31 = arith.addf %29, %30 : vector<8x128xf32>
    %32 = math.tanh %31 : vector<8x128xf32>
    %33 = arith.mulf %28, %32 : vector<8x128xf32>
    %c8_i32_15 = arith.constant 8 : i32
    %34 = arith.muli %c0_i32, %c8_i32_15 : i32
    %c0_i32_16 = arith.constant 0 : i32
    %35 = arith.addi %34, %c0_i32_16 : i32
    %36 = tpu.assume_multiple %35, 8 : i32
    %37 = arith.index_cast %36 : i32 to index
    %c0_17 = arith.constant 0 : index
    %38 = vector.load %arg12[%37, %c0_17] : memref<64x128xf32, #tpu.memory_space<vmem>>, vector<8x128xf32>
    tpu.vector_store %arg12[%37, %c0_17], %33 {strides = array<i32>} : memref<64x128xf32, #tpu.memory_space<vmem>>, vector<8x128xf32>,
    %c1_i32 = arith.constant 1 : i32
    %c8_i32_18 = arith.constant 8 : i32
    %39 = arith.muli %c1_i32, %c8_i32_18 : i32
    %40 = tpu.assume_multiple %39, 8 : i32
    %41 = arith.index_cast %40 : i32 to index
    %c0_19 = arith.constant 0 : index
    %42 = vector.load %arg11[%41, %c0_19] : memref<64x512xf32, #tpu.memory_space<vmem>>, vector<8x512xf32>
    %43 = arith.truncf %33 : vector<8x128xf32> to vector<8x128xbf16>
    %cst_20 = arith.constant dense<0.000000e+00> : vector<8x512xf32>
    %44 = tpu.matmul %43, %1, %cst_20 {dimension_numbers = #tpu.dot_dimension_numbers<[1], [0], [0], [1], [0, 0, 1, 1], [], []>} : vector<8x128xbf16>, vector<128x512xbf16>, vector<8x512xf32> -> vector<8x512xf32>
    %45 = arith.addf %42, %44 : vector<8x512xf32>
    %46 = vector.extract_strided_slice %45 {offsets = [0, 0], sizes = [8, 384], strides = [1, 1]} : vector<8x512xf32> to vector<8x384xf32>
    %47 = arith.negf %46 : vector<8x384xf32>
    %48 = math.exp %47 : vector<8x384xf32>
    %cst_21 = arith.constant 1.000000e+00 : f32
    %49 = vector.broadcast %cst_21 : f32 to vector<8x384xf32>
    %50 = arith.addf %49, %48 : vector<8x384xf32>
    %51 = arith.divf %49, %50 : vector<8x384xf32>
    %52 = vector.extract_strided_slice %45 {offsets = [0, 384], sizes = [8, 128], strides = [1, 1]} : vector<8x512xf32> to vector<8x128xf32>
    %53 = math.tanh %52 : vector<8x128xf32>
    %54 = vector.extract_strided_slice %51 {offsets = [0, 0], sizes = [8, 128], strides = [1, 1]} : vector<8x384xf32> to vector<8x128xf32>
    %55 = vector.extract_strided_slice %51 {offsets = [0, 128], sizes = [8, 128], strides = [1, 1]} : vector<8x384xf32> to vector<8x128xf32>
    %56 = vector.extract_strided_slice %51 {offsets = [0, 256], sizes = [8, 128], strides = [1, 1]} : vector<8x384xf32> to vector<8x128xf32>
    %57 = arith.mulf %55, %31 : vector<8x128xf32>
    %58 = arith.mulf %54, %53 : vector<8x128xf32>
    %59 = arith.addf %57, %58 : vector<8x128xf32>
    %60 = math.tanh %59 : vector<8x128xf32>
    %61 = arith.mulf %56, %60 : vector<8x128xf32>
    %c8_i32_22 = arith.constant 8 : i32
    %62 = arith.muli %c1_i32, %c8_i32_22 : i32
    %c0_i32_23 = arith.constant 0 : i32
    %63 = arith.addi %62, %c0_i32_23 : i32
    %64 = tpu.assume_multiple %63, 8 : i32
    %65 = arith.index_cast %64 : i32 to index
    %c0_24 = arith.constant 0 : index
    %66 = vector.load %arg12[%65, %c0_24] : memref<64x128xf32, #tpu.memory_space<vmem>>, vector<8x128xf32>
    tpu.vector_store %arg12[%65, %c0_24], %61 {strides = array<i32>} : memref<64x128xf32, #tpu.memory_space<vmem>>, vector<8x128xf32>,
    %c2_i32 = arith.constant 2 : i32
    %c8_i32_25 = arith.constant 8 : i32
    %67 = arith.muli %c2_i32, %c8_i32_25 : i32
    %68 = tpu.assume_multiple %67, 8 : i32
    %69 = arith.index_cast %68 : i32 to index
    %c0_26 = arith.constant 0 : index
    %70 = vector.load %arg11[%69, %c0_26] : memref<64x512xf32, #tpu.memory_space<vmem>>, vector<8x512xf32>
    %71 = arith.truncf %61 : vector<8x128xf32> to vector<8x128xbf16>
    %cst_27 = arith.constant dense<0.000000e+00> : vector<8x512xf32>
    %72 = tpu.matmul %71, %1, %cst_27 {dimension_numbers = #tpu.dot_dimension_numbers<[1], [0], [0], [1], [0, 0, 1, 1], [], []>} : vector<8x128xbf16>, vector<128x512xbf16>, vector<8x512xf32> -> vector<8x512xf32>
    %73 = arith.addf %70, %72 : vector<8x512xf32>
    %74 = vector.extract_strided_slice %73 {offsets = [0, 0], sizes = [8, 384], strides = [1, 1]} : vector<8x512xf32> to vector<8x384xf32>
    %75 = arith.negf %74 : vector<8x384xf32>
    %76 = math.exp %75 : vector<8x384xf32>
    %cst_28 = arith.constant 1.000000e+00 : f32
    %77 = vector.broadcast %cst_28 : f32 to vector<8x384xf32>
    %78 = arith.addf %77, %76 : vector<8x384xf32>
    %79 = arith.divf %77, %78 : vector<8x384xf32>
    %80 = vector.extract_strided_slice %73 {offsets = [0, 384], sizes = [8, 128], strides = [1, 1]} : vector<8x512xf32> to vector<8x128xf32>
    %81 = math.tanh %80 : vector<8x128xf32>
    %82 = vector.extract_strided_slice %79 {offsets = [0, 0], sizes = [8, 128], strides = [1, 1]} : vector<8x384xf32> to vector<8x128xf32>
    %83 = vector.extract_strided_slice %79 {offsets = [0, 128], sizes = [8, 128], strides = [1, 1]} : vector<8x384xf32> to vector<8x128xf32>
    %84 = vector.extract_strided_slice %79 {offsets = [0, 256], sizes = [8, 128], strides = [1, 1]} : vector<8x384xf32> to vector<8x128xf32>
    %85 = arith.mulf %83, %59 : vector<8x128xf32>
    %86 = arith.mulf %82, %81 : vector<8x128xf32>
    %87 = arith.addf %85, %86 : vector<8x128xf32>
    %88 = math.tanh %87 : vector<8x128xf32>
    %89 = arith.mulf %84, %88 : vector<8x128xf32>
    %c8_i32_29 = arith.constant 8 : i32
    %90 = arith.muli %c2_i32, %c8_i32_29 : i32
    %c0_i32_30 = arith.constant 0 : i32
    %91 = arith.addi %90, %c0_i32_30 : i32
    %92 = tpu.assume_multiple %91, 8 : i32
    %93 = arith.index_cast %92 : i32 to index
    %c0_31 = arith.constant 0 : index
    %94 = vector.load %arg12[%93, %c0_31] : memref<64x128xf32, #tpu.memory_space<vmem>>, vector<8x128xf32>
    tpu.vector_store %arg12[%93, %c0_31], %89 {strides = array<i32>} : memref<64x128xf32, #tpu.memory_space<vmem>>, vector<8x128xf32>,
    %c3_i32 = arith.constant 3 : i32
    %c8_i32_32 = arith.constant 8 : i32
    %95 = arith.muli %c3_i32, %c8_i32_32 : i32
    %96 = tpu.assume_multiple %95, 8 : i32
    %97 = arith.index_cast %96 : i32 to index
    %c0_33 = arith.constant 0 : index
    %98 = vector.load %arg11[%97, %c0_33] : memref<64x512xf32, #tpu.memory_space<vmem>>, vector<8x512xf32>
    %99 = arith.truncf %89 : vector<8x128xf32> to vector<8x128xbf16>
    %cst_34 = arith.constant dense<0.000000e+00> : vector<8x512xf32>
    %100 = tpu.matmul %99, %1, %cst_34 {dimension_numbers = #tpu.dot_dimension_numbers<[1], [0], [0], [1], [0, 0, 1, 1], [], []>} : vector<8x128xbf16>, vector<128x512xbf16>, vector<8x512xf32> -> vector<8x512xf32>
    %101 = arith.addf %98, %100 : vector<8x512xf32>
    %102 = vector.extract_strided_slice %101 {offsets = [0, 0], sizes = [8, 384], strides = [1, 1]} : vector<8x512xf32> to vector<8x384xf32>
    %103 = arith.negf %102 : vector<8x384xf32>
    %104 = math.exp %103 : vector<8x384xf32>
    %cst_35 = arith.constant 1.000000e+00 : f32
    %105 = vector.broadcast %cst_35 : f32 to vector<8x384xf32>
    %106 = arith.addf %105, %104 : vector<8x384xf32>
    %107 = arith.divf %105, %106 : vector<8x384xf32>
    %108 = vector.extract_strided_slice %101 {offsets = [0, 384], sizes = [8, 128], strides = [1, 1]} : vector<8x512xf32> to vector<8x128xf32>
    %109 = math.tanh %108 : vector<8x128xf32>
    %110 = vector.extract_strided_slice %107 {offsets = [0, 0], sizes = [8, 128], strides = [1, 1]} : vector<8x384xf32> to vector<8x128xf32>
    %111 = vector.extract_strided_slice %107 {offsets = [0, 128], sizes = [8, 128], strides = [1, 1]} : vector<8x384xf32> to vector<8x128xf32>
    %112 = vector.extract_strided_slice %107 {offsets = [0, 256], sizes = [8, 128], strides = [1, 1]} : vector<8x384xf32> to vector<8x128xf32>
    %113 = arith.mulf %111, %87 : vector<8x128xf32>
    %114 = arith.mulf %110, %109 : vector<8x128xf32>
    %115 = arith.addf %113, %114 : vector<8x128xf32>
    %116 = math.tanh %115 : vector<8x128xf32>
    %117 = arith.mulf %112, %116 : vector<8x128xf32>
    %c8_i32_36 = arith.constant 8 : i32
    %118 = arith.muli %c3_i32, %c8_i32_36 : i32
    %c0_i32_37 = arith.constant 0 : i32
    %119 = arith.addi %118, %c0_i32_37 : i32
    %120 = tpu.assume_multiple %119, 8 : i32
    %121 = arith.index_cast %120 : i32 to index
    %c0_38 = arith.constant 0 : index
    %122 = vector.load %arg12[%121, %c0_38] : memref<64x128xf32, #tpu.memory_space<vmem>>, vector<8x128xf32>
    tpu.vector_store %arg12[%121, %c0_38], %117 {strides = array<i32>} : memref<64x128xf32, #tpu.memory_space<vmem>>, vector<8x128xf32>,
    %c4_i32 = arith.constant 4 : i32
    %c8_i32_39 = arith.constant 8 : i32
    %123 = arith.muli %c4_i32, %c8_i32_39 : i32
    %124 = tpu.assume_multiple %123, 8 : i32
    %125 = arith.index_cast %124 : i32 to index
    %c0_40 = arith.constant 0 : index
    %126 = vector.load %arg11[%125, %c0_40] : memref<64x512xf32, #tpu.memory_space<vmem>>, vector<8x512xf32>
    %127 = arith.truncf %117 : vector<8x128xf32> to vector<8x128xbf16>
    %cst_41 = arith.constant dense<0.000000e+00> : vector<8x512xf32>
    %128 = tpu.matmul %127, %1, %cst_41 {dimension_numbers = #tpu.dot_dimension_numbers<[1], [0], [0], [1], [0, 0, 1, 1], [], []>} : vector<8x128xbf16>, vector<128x512xbf16>, vector<8x512xf32> -> vector<8x512xf32>
    %129 = arith.addf %126, %128 : vector<8x512xf32>
    %130 = vector.extract_strided_slice %129 {offsets = [0, 0], sizes = [8, 384], strides = [1, 1]} : vector<8x512xf32> to vector<8x384xf32>
    %131 = arith.negf %130 : vector<8x384xf32>
    %132 = math.exp %131 : vector<8x384xf32>
    %cst_42 = arith.constant 1.000000e+00 : f32
    %133 = vector.broadcast %cst_42 : f32 to vector<8x384xf32>
    %134 = arith.addf %133, %132 : vector<8x384xf32>
    %135 = arith.divf %133, %134 : vector<8x384xf32>
    %136 = vector.extract_strided_slice %129 {offsets = [0, 384], sizes = [8, 128], strides = [1, 1]} : vector<8x512xf32> to vector<8x128xf32>
    %137 = math.tanh %136 : vector<8x128xf32>
    %138 = vector.extract_strided_slice %135 {offsets = [0, 0], sizes = [8, 128], strides = [1, 1]} : vector<8x384xf32> to vector<8x128xf32>
    %139 = vector.extract_strided_slice %135 {offsets = [0, 128], sizes = [8, 128], strides = [1, 1]} : vector<8x384xf32> to vector<8x128xf32>
    %140 = vector.extract_strided_slice %135 {offsets = [0, 256], sizes = [8, 128], strides = [1, 1]} : vector<8x384xf32> to vector<8x128xf32>
    %141 = arith.mulf %139, %115 : vector<8x128xf32>
    %142 = arith.mulf %138, %137 : vector<8x128xf32>
    %143 = arith.addf %141, %142 : vector<8x128xf32>
    %144 = math.tanh %143 : vector<8x128xf32>
    %145 = arith.mulf %140, %144 : vector<8x128xf32>
    %c8_i32_43 = arith.constant 8 : i32
    %146 = arith.muli %c4_i32, %c8_i32_43 : i32
    %c0_i32_44 = arith.constant 0 : i32
    %147 = arith.addi %146, %c0_i32_44 : i32
    %148 = tpu.assume_multiple %147, 8 : i32
    %149 = arith.index_cast %148 : i32 to index
    %c0_45 = arith.constant 0 : index
    %150 = vector.load %arg12[%149, %c0_45] : memref<64x128xf32, #tpu.memory_space<vmem>>, vector<8x128xf32>
    tpu.vector_store %arg12[%149, %c0_45], %145 {strides = array<i32>} : memref<64x128xf32, #tpu.memory_space<vmem>>, vector<8x128xf32>,
    %c5_i32 = arith.constant 5 : i32
    %c8_i32_46 = arith.constant 8 : i32
    %151 = arith.muli %c5_i32, %c8_i32_46 : i32
    %152 = tpu.assume_multiple %151, 8 : i32
    %153 = arith.index_cast %152 : i32 to index
    %c0_47 = arith.constant 0 : index
    %154 = vector.load %arg11[%153, %c0_47] : memref<64x512xf32, #tpu.memory_space<vmem>>, vector<8x512xf32>
    %155 = arith.truncf %145 : vector<8x128xf32> to vector<8x128xbf16>
    %cst_48 = arith.constant dense<0.000000e+00> : vector<8x512xf32>
    %156 = tpu.matmul %155, %1, %cst_48 {dimension_numbers = #tpu.dot_dimension_numbers<[1], [0], [0], [1], [0, 0, 1, 1], [], []>} : vector<8x128xbf16>, vector<128x512xbf16>, vector<8x512xf32> -> vector<8x512xf32>
    %157 = arith.addf %154, %156 : vector<8x512xf32>
    %158 = vector.extract_strided_slice %157 {offsets = [0, 0], sizes = [8, 384], strides = [1, 1]} : vector<8x512xf32> to vector<8x384xf32>
    %159 = arith.negf %158 : vector<8x384xf32>
    %160 = math.exp %159 : vector<8x384xf32>
    %cst_49 = arith.constant 1.000000e+00 : f32
    %161 = vector.broadcast %cst_49 : f32 to vector<8x384xf32>
    %162 = arith.addf %161, %160 : vector<8x384xf32>
    %163 = arith.divf %161, %162 : vector<8x384xf32>
    %164 = vector.extract_strided_slice %157 {offsets = [0, 384], sizes = [8, 128], strides = [1, 1]} : vector<8x512xf32> to vector<8x128xf32>
    %165 = math.tanh %164 : vector<8x128xf32>
    %166 = vector.extract_strided_slice %163 {offsets = [0, 0], sizes = [8, 128], strides = [1, 1]} : vector<8x384xf32> to vector<8x128xf32>
    %167 = vector.extract_strided_slice %163 {offsets = [0, 128], sizes = [8, 128], strides = [1, 1]} : vector<8x384xf32> to vector<8x128xf32>
    %168 = vector.extract_strided_slice %163 {offsets = [0, 256], sizes = [8, 128], strides = [1, 1]} : vector<8x384xf32> to vector<8x128xf32>
    %169 = arith.mulf %167, %143 : vector<8x128xf32>
    %170 = arith.mulf %166, %165 : vector<8x128xf32>
    %171 = arith.addf %169, %170 : vector<8x128xf32>
    %172 = math.tanh %171 : vector<8x128xf32>
    %173 = arith.mulf %168, %172 : vector<8x128xf32>
    %c8_i32_50 = arith.constant 8 : i32
    %174 = arith.muli %c5_i32, %c8_i32_50 : i32
    %c0_i32_51 = arith.constant 0 : i32
    %175 = arith.addi %174, %c0_i32_51 : i32
    %176 = tpu.assume_multiple %175, 8 : i32
    %177 = arith.index_cast %176 : i32 to index
    %c0_52 = arith.constant 0 : index
    %178 = vector.load %arg12[%177, %c0_52] : memref<64x128xf32, #tpu.memory_space<vmem>>, vector<8x128xf32>
    tpu.vector_store %arg12[%177, %c0_52], %173 {strides = array<i32>} : memref<64x128xf32, #tpu.memory_space<vmem>>, vector<8x128xf32>,
    %c6_i32 = arith.constant 6 : i32
    %c8_i32_53 = arith.constant 8 : i32
    %179 = arith.muli %c6_i32, %c8_i32_53 : i32
    %180 = tpu.assume_multiple %179, 8 : i32
    %181 = arith.index_cast %180 : i32 to index
    %c0_54 = arith.constant 0 : index
    %182 = vector.load %arg11[%181, %c0_54] : memref<64x512xf32, #tpu.memory_space<vmem>>, vector<8x512xf32>
    %183 = arith.truncf %173 : vector<8x128xf32> to vector<8x128xbf16>
    %cst_55 = arith.constant dense<0.000000e+00> : vector<8x512xf32>
    %184 = tpu.matmul %183, %1, %cst_55 {dimension_numbers = #tpu.dot_dimension_numbers<[1], [0], [0], [1], [0, 0, 1, 1], [], []>} : vector<8x128xbf16>, vector<128x512xbf16>, vector<8x512xf32> -> vector<8x512xf32>
    %185 = arith.addf %182, %184 : vector<8x512xf32>
    %186 = vector.extract_strided_slice %185 {offsets = [0, 0], sizes = [8, 384], strides = [1, 1]} : vector<8x512xf32> to vector<8x384xf32>
    %187 = arith.negf %186 : vector<8x384xf32>
    %188 = math.exp %187 : vector<8x384xf32>
    %cst_56 = arith.constant 1.000000e+00 : f32
    %189 = vector.broadcast %cst_56 : f32 to vector<8x384xf32>
    %190 = arith.addf %189, %188 : vector<8x384xf32>
    %191 = arith.divf %189, %190 : vector<8x384xf32>
    %192 = vector.extract_strided_slice %185 {offsets = [0, 384], sizes = [8, 128], strides = [1, 1]} : vector<8x512xf32> to vector<8x128xf32>
    %193 = math.tanh %192 : vector<8x128xf32>
    %194 = vector.extract_strided_slice %191 {offsets = [0, 0], sizes = [8, 128], strides = [1, 1]} : vector<8x384xf32> to vector<8x128xf32>
    %195 = vector.extract_strided_slice %191 {offsets = [0, 128], sizes = [8, 128], strides = [1, 1]} : vector<8x384xf32> to vector<8x128xf32>
    %196 = vector.extract_strided_slice %191 {offsets = [0, 256], sizes = [8, 128], strides = [1, 1]} : vector<8x384xf32> to vector<8x128xf32>
    %197 = arith.mulf %195, %171 : vector<8x128xf32>
    %198 = arith.mulf %194, %193 : vector<8x128xf32>
    %199 = arith.addf %197, %198 : vector<8x128xf32>
    %200 = math.tanh %199 : vector<8x128xf32>
    %201 = arith.mulf %196, %200 : vector<8x128xf32>
    %c8_i32_57 = arith.constant 8 : i32
    %202 = arith.muli %c6_i32, %c8_i32_57 : i32
    %c0_i32_58 = arith.constant 0 : i32
    %203 = arith.addi %202, %c0_i32_58 : i32
    %204 = tpu.assume_multiple %203, 8 : i32
    %205 = arith.index_cast %204 : i32 to index
    %c0_59 = arith.constant 0 : index
    %206 = vector.load %arg12[%205, %c0_59] : memref<64x128xf32, #tpu.memory_space<vmem>>, vector<8x128xf32>
    tpu.vector_store %arg12[%205, %c0_59], %201 {strides = array<i32>} : memref<64x128xf32, #tpu.memory_space<vmem>>, vector<8x128xf32>,
    %c7_i32 = arith.constant 7 : i32
    %c8_i32_60 = arith.constant 8 : i32
    %207 = arith.muli %c7_i32, %c8_i32_60 : i32
    %208 = tpu.assume_multiple %207, 8 : i32
    %209 = arith.index_cast %208 : i32 to index
    %c0_61 = arith.constant 0 : index
    %210 = vector.load %arg11[%209, %c0_61] : memref<64x512xf32, #tpu.memory_space<vmem>>, vector<8x512xf32>
    %211 = arith.truncf %201 : vector<8x128xf32> to vector<8x128xbf16>
    %cst_62 = arith.constant dense<0.000000e+00> : vector<8x512xf32>
    %212 = tpu.matmul %211, %1, %cst_62 {dimension_numbers = #tpu.dot_dimension_numbers<[1], [0], [0], [1], [0, 0, 1, 1], [], []>} : vector<8x128xbf16>, vector<128x512xbf16>, vector<8x512xf32> -> vector<8x512xf32>
    %213 = arith.addf %210, %212 : vector<8x512xf32>
    %214 = vector.extract_strided_slice %213 {offsets = [0, 0], sizes = [8, 384], strides = [1, 1]} : vector<8x512xf32> to vector<8x384xf32>
    %215 = arith.negf %214 : vector<8x384xf32>
    %216 = math.exp %215 : vector<8x384xf32>
    %cst_63 = arith.constant 1.000000e+00 : f32
    %217 = vector.broadcast %cst_63 : f32 to vector<8x384xf32>
    %218 = arith.addf %217, %216 : vector<8x384xf32>
    %219 = arith.divf %217, %218 : vector<8x384xf32>
    %220 = vector.extract_strided_slice %213 {offsets = [0, 384], sizes = [8, 128], strides = [1, 1]} : vector<8x512xf32> to vector<8x128xf32>
    %221 = math.tanh %220 : vector<8x128xf32>
    %222 = vector.extract_strided_slice %219 {offsets = [0, 0], sizes = [8, 128], strides = [1, 1]} : vector<8x384xf32> to vector<8x128xf32>
    %223 = vector.extract_strided_slice %219 {offsets = [0, 128], sizes = [8, 128], strides = [1, 1]} : vector<8x384xf32> to vector<8x128xf32>
    %224 = vector.extract_strided_slice %219 {offsets = [0, 256], sizes = [8, 128], strides = [1, 1]} : vector<8x384xf32> to vector<8x128xf32>
    %225 = arith.mulf %223, %199 : vector<8x128xf32>
    %226 = arith.mulf %222, %221 : vector<8x128xf32>
    %227 = arith.addf %225, %226 : vector<8x128xf32>
    %228 = math.tanh %227 : vector<8x128xf32>
    %229 = arith.mulf %224, %228 : vector<8x128xf32>
    %c8_i32_64 = arith.constant 8 : i32
    %230 = arith.muli %c7_i32, %c8_i32_64 : i32
    %c0_i32_65 = arith.constant 0 : i32
    %231 = arith.addi %230, %c0_i32_65 : i32
    %232 = tpu.assume_multiple %231, 8 : i32
    %233 = arith.index_cast %232 : i32 to index
    %c0_66 = arith.constant 0 : index
    %234 = vector.load %arg12[%233, %c0_66] : memref<64x128xf32, #tpu.memory_space<vmem>>, vector<8x128xf32>
    tpu.vector_store %arg12[%233, %c0_66], %229 {strides = array<i32>} : memref<64x128xf32, #tpu.memory_space<vmem>>, vector<8x128xf32>,
    %c8_i32_67 = arith.constant 8 : i32
    %c0_68 = arith.constant 0 : index
    %c0_69 = arith.constant 0 : index
    %235 = vector.load %arg5[%c0_68, %c0_69] : memref<128x512xbf16, #tpu.memory_space<vmem>>, vector<128x512xbf16>
    %c0_70 = arith.constant 0 : index
    %c0_71 = arith.constant 0 : index
    %236 = vector.load %arg6[%c0_70, %c0_71] : memref<128x512xbf16, #tpu.memory_space<vmem>>, vector<128x512xbf16>
    %c0_72 = arith.constant 0 : index
    %c0_73 = arith.constant 0 : index
    %237 = vector.load %arg7[%c0_72, %c0_73] : memref<1x512xf32, #tpu.memory_space<vmem>>, vector<1x512xf32>
    %cst_74 = arith.constant 0.000000e+00 : f32
    %238 = vector.broadcast %cst_74 : f32 to vector<8x128xf32>
    %cst_75 = arith.constant 0.000000e+00 : f32
    %239 = vector.broadcast %cst_75 : f32 to vector<8x128xf32>
    %c0_76 = arith.constant 0 : index
    %c0_77 = arith.constant 0 : index
    %240 = vector.load %arg12[%c0_76, %c0_77] : memref<64x128xf32, #tpu.memory_space<vmem>>, vector<64x128xf32>
    %241 = arith.truncf %240 : vector<64x128xf32> to vector<64x128xbf16>
    %cst_78 = arith.constant dense<0.000000e+00> : vector<64x512xf32>
    %242 = tpu.matmul %241, %235, %cst_78 {dimension_numbers = #tpu.dot_dimension_numbers<[1], [0], [0], [1], [0, 0, 1, 1], [], []>} : vector<64x128xbf16>, vector<128x512xbf16>, vector<64x512xf32> -> vector<64x512xf32>
    %243 = vector.broadcast %237 : vector<1x512xf32> to vector<64x512xf32>
    %244 = arith.addf %242, %243 : vector<64x512xf32>
    %c0_79 = arith.constant 0 : index
    %c0_80 = arith.constant 0 : index
    %245 = vector.load %arg11[%c0_79, %c0_80] : memref<64x512xf32, #tpu.memory_space<vmem>>, vector<64x512xf32>
    tpu.vector_store %arg11[%c0_79, %c0_80], %244 {strides = array<i32>} : memref<64x512xf32, #tpu.memory_space<vmem>>, vector<64x512xf32>,
    %c0_i32_81 = arith.constant 0 : i32
    %c8_i32_82 = arith.constant 8 : i32
    %246 = arith.muli %c0_i32_81, %c8_i32_82 : i32
    %247 = tpu.assume_multiple %246, 8 : i32
    %248 = arith.index_cast %247 : i32 to index
    %c0_83 = arith.constant 0 : index
    %249 = vector.load %arg11[%248, %c0_83] : memref<64x512xf32, #tpu.memory_space<vmem>>, vector<8x512xf32>
    %250 = arith.truncf %238 : vector<8x128xf32> to vector<8x128xbf16>
    %cst_84 = arith.constant dense<0.000000e+00> : vector<8x512xf32>
    %251 = tpu.matmul %250, %236, %cst_84 {dimension_numbers = #tpu.dot_dimension_numbers<[1], [0], [0], [1], [0, 0, 1, 1], [], []>} : vector<8x128xbf16>, vector<128x512xbf16>, vector<8x512xf32> -> vector<8x512xf32>
    %252 = arith.addf %249, %251 : vector<8x512xf32>
    %253 = vector.extract_strided_slice %252 {offsets = [0, 0], sizes = [8, 384], strides = [1, 1]} : vector<8x512xf32> to vector<8x384xf32>
    %254 = arith.negf %253 : vector<8x384xf32>
    %255 = math.exp %254 : vector<8x384xf32>
    %cst_85 = arith.constant 1.000000e+00 : f32
    %256 = vector.broadcast %cst_85 : f32 to vector<8x384xf32>
    %257 = arith.addf %256, %255 : vector<8x384xf32>
    %258 = arith.divf %256, %257 : vector<8x384xf32>
    %259 = vector.extract_strided_slice %252 {offsets = [0, 384], sizes = [8, 128], strides = [1, 1]} : vector<8x512xf32> to vector<8x128xf32>
    %260 = math.tanh %259 : vector<8x128xf32>
    %261 = vector.extract_strided_slice %258 {offsets = [0, 0], sizes = [8, 128], strides = [1, 1]} : vector<8x384xf32> to vector<8x128xf32>
    %262 = vector.extract_strided_slice %258 {offsets = [0, 128], sizes = [8, 128], strides = [1, 1]} : vector<8x384xf32> to vector<8x128xf32>
    %263 = vector.extract_strided_slice %258 {offsets = [0, 256], sizes = [8, 128], strides = [1, 1]} : vector<8x384xf32> to vector<8x128xf32>
    %264 = arith.mulf %262, %239 : vector<8x128xf32>
    %265 = arith.mulf %261, %260 : vector<8x128xf32>
    %266 = arith.addf %264, %265 : vector<8x128xf32>
    %267 = math.tanh %266 : vector<8x128xf32>
    %268 = arith.mulf %263, %267 : vector<8x128xf32>
    %c1_i32_86 = arith.constant 1 : i32
    %c8_i32_87 = arith.constant 8 : i32
    %269 = arith.muli %c1_i32_86, %c8_i32_87 : i32
    %270 = tpu.assume_multiple %269, 8 : i32
    %271 = arith.index_cast %270 : i32 to index
    %c0_88 = arith.constant 0 : index
    %272 = vector.load %arg11[%271, %c0_88] : memref<64x512xf32, #tpu.memory_space<vmem>>, vector<8x512xf32>
    %273 = arith.truncf %268 : vector<8x128xf32> to vector<8x128xbf16>
    %cst_89 = arith.constant dense<0.000000e+00> : vector<8x512xf32>
    %274 = tpu.matmul %273, %236, %cst_89 {dimension_numbers = #tpu.dot_dimension_numbers<[1], [0], [0], [1], [0, 0, 1, 1], [], []>} : vector<8x128xbf16>, vector<128x512xbf16>, vector<8x512xf32> -> vector<8x512xf32>
    %275 = arith.addf %272, %274 : vector<8x512xf32>
    %276 = vector.extract_strided_slice %275 {offsets = [0, 0], sizes = [8, 384], strides = [1, 1]} : vector<8x512xf32> to vector<8x384xf32>
    %277 = arith.negf %276 : vector<8x384xf32>
    %278 = math.exp %277 : vector<8x384xf32>
    %cst_90 = arith.constant 1.000000e+00 : f32
    %279 = vector.broadcast %cst_90 : f32 to vector<8x384xf32>
    %280 = arith.addf %279, %278 : vector<8x384xf32>
    %281 = arith.divf %279, %280 : vector<8x384xf32>
    %282 = vector.extract_strided_slice %275 {offsets = [0, 384], sizes = [8, 128], strides = [1, 1]} : vector<8x512xf32> to vector<8x128xf32>
    %283 = math.tanh %282 : vector<8x128xf32>
    %284 = vector.extract_strided_slice %281 {offsets = [0, 0], sizes = [8, 128], strides = [1, 1]} : vector<8x384xf32> to vector<8x128xf32>
    %285 = vector.extract_strided_slice %281 {offsets = [0, 128], sizes = [8, 128], strides = [1, 1]} : vector<8x384xf32> to vector<8x128xf32>
    %286 = vector.extract_strided_slice %281 {offsets = [0, 256], sizes = [8, 128], strides = [1, 1]} : vector<8x384xf32> to vector<8x128xf32>
    %287 = arith.mulf %285, %266 : vector<8x128xf32>
    %288 = arith.mulf %284, %283 : vector<8x128xf32>
    %289 = arith.addf %287, %288 : vector<8x128xf32>
    %290 = math.tanh %289 : vector<8x128xf32>
    %291 = arith.mulf %286, %290 : vector<8x128xf32>
    %c2_i32_91 = arith.constant 2 : i32
    %c8_i32_92 = arith.constant 8 : i32
    %292 = arith.muli %c2_i32_91, %c8_i32_92 : i32
    %293 = tpu.assume_multiple %292, 8 : i32
    %294 = arith.index_cast %293 : i32 to index
    %c0_93 = arith.constant 0 : index
    %295 = vector.load %arg11[%294, %c0_93] : memref<64x512xf32, #tpu.memory_space<vmem>>, vector<8x512xf32>
    %296 = arith.truncf %291 : vector<8x128xf32> to vector<8x128xbf16>
    %cst_94 = arith.constant dense<0.000000e+00> : vector<8x512xf32>
    %297 = tpu.matmul %296, %236, %cst_94 {dimension_numbers = #tpu.dot_dimension_numbers<[1], [0], [0], [1], [0, 0, 1, 1], [], []>} : vector<8x128xbf16>, vector<128x512xbf16>, vector<8x512xf32> -> vector<8x512xf32>
    %298 = arith.addf %295, %297 : vector<8x512xf32>
    %299 = vector.extract_strided_slice %298 {offsets = [0, 0], sizes = [8, 384], strides = [1, 1]} : vector<8x512xf32> to vector<8x384xf32>
    %300 = arith.negf %299 : vector<8x384xf32>
    %301 = math.exp %300 : vector<8x384xf32>
    %cst_95 = arith.constant 1.000000e+00 : f32
    %302 = vector.broadcast %cst_95 : f32 to vector<8x384xf32>
    %303 = arith.addf %302, %301 : vector<8x384xf32>
    %304 = arith.divf %302, %303 : vector<8x384xf32>
    %305 = vector.extract_strided_slice %298 {offsets = [0, 384], sizes = [8, 128], strides = [1, 1]} : vector<8x512xf32> to vector<8x128xf32>
    %306 = math.tanh %305 : vector<8x128xf32>
    %307 = vector.extract_strided_slice %304 {offsets = [0, 0], sizes = [8, 128], strides = [1, 1]} : vector<8x384xf32> to vector<8x128xf32>
    %308 = vector.extract_strided_slice %304 {offsets = [0, 128], sizes = [8, 128], strides = [1, 1]} : vector<8x384xf32> to vector<8x128xf32>
    %309 = vector.extract_strided_slice %304 {offsets = [0, 256], sizes = [8, 128], strides = [1, 1]} : vector<8x384xf32> to vector<8x128xf32>
    %310 = arith.mulf %308, %289 : vector<8x128xf32>
    %311 = arith.mulf %307, %306 : vector<8x128xf32>
    %312 = arith.addf %310, %311 : vector<8x128xf32>
    %313 = math.tanh %312 : vector<8x128xf32>
    %314 = arith.mulf %309, %313 : vector<8x128xf32>
    %c3_i32_96 = arith.constant 3 : i32
    %c8_i32_97 = arith.constant 8 : i32
    %315 = arith.muli %c3_i32_96, %c8_i32_97 : i32
    %316 = tpu.assume_multiple %315, 8 : i32
    %317 = arith.index_cast %316 : i32 to index
    %c0_98 = arith.constant 0 : index
    %318 = vector.load %arg11[%317, %c0_98] : memref<64x512xf32, #tpu.memory_space<vmem>>, vector<8x512xf32>
    %319 = arith.truncf %314 : vector<8x128xf32> to vector<8x128xbf16>
    %cst_99 = arith.constant dense<0.000000e+00> : vector<8x512xf32>
    %320 = tpu.matmul %319, %236, %cst_99 {dimension_numbers = #tpu.dot_dimension_numbers<[1], [0], [0], [1], [0, 0, 1, 1], [], []>} : vector<8x128xbf16>, vector<128x512xbf16>, vector<8x512xf32> -> vector<8x512xf32>
    %321 = arith.addf %318, %320 : vector<8x512xf32>
    %322 = vector.extract_strided_slice %321 {offsets = [0, 0], sizes = [8, 384], strides = [1, 1]} : vector<8x512xf32> to vector<8x384xf32>
    %323 = arith.negf %322 : vector<8x384xf32>
    %324 = math.exp %323 : vector<8x384xf32>
    %cst_100 = arith.constant 1.000000e+00 : f32
    %325 = vector.broadcast %cst_100 : f32 to vector<8x384xf32>
    %326 = arith.addf %325, %324 : vector<8x384xf32>
    %327 = arith.divf %325, %326 : vector<8x384xf32>
    %328 = vector.extract_strided_slice %321 {offsets = [0, 384], sizes = [8, 128], strides = [1, 1]} : vector<8x512xf32> to vector<8x128xf32>
    %329 = math.tanh %328 : vector<8x128xf32>
    %330 = vector.extract_strided_slice %327 {offsets = [0, 0], sizes = [8, 128], strides = [1, 1]} : vector<8x384xf32> to vector<8x128xf32>
    %331 = vector.extract_strided_slice %327 {offsets = [0, 128], sizes = [8, 128], strides = [1, 1]} : vector<8x384xf32> to vector<8x128xf32>
    %332 = vector.extract_strided_slice %327 {offsets = [0, 256], sizes = [8, 128], strides = [1, 1]} : vector<8x384xf32> to vector<8x128xf32>
    %333 = arith.mulf %331, %312 : vector<8x128xf32>
    %334 = arith.mulf %330, %329 : vector<8x128xf32>
    %335 = arith.addf %333, %334 : vector<8x128xf32>
    %336 = math.tanh %335 : vector<8x128xf32>
    %337 = arith.mulf %332, %336 : vector<8x128xf32>
    %c4_i32_101 = arith.constant 4 : i32
    %c8_i32_102 = arith.constant 8 : i32
    %338 = arith.muli %c4_i32_101, %c8_i32_102 : i32
    %339 = tpu.assume_multiple %338, 8 : i32
    %340 = arith.index_cast %339 : i32 to index
    %c0_103 = arith.constant 0 : index
    %341 = vector.load %arg11[%340, %c0_103] : memref<64x512xf32, #tpu.memory_space<vmem>>, vector<8x512xf32>
    %342 = arith.truncf %337 : vector<8x128xf32> to vector<8x128xbf16>
    %cst_104 = arith.constant dense<0.000000e+00> : vector<8x512xf32>
    %343 = tpu.matmul %342, %236, %cst_104 {dimension_numbers = #tpu.dot_dimension_numbers<[1], [0], [0], [1], [0, 0, 1, 1], [], []>} : vector<8x128xbf16>, vector<128x512xbf16>, vector<8x512xf32> -> vector<8x512xf32>
    %344 = arith.addf %341, %343 : vector<8x512xf32>
    %345 = vector.extract_strided_slice %344 {offsets = [0, 0], sizes = [8, 384], strides = [1, 1]} : vector<8x512xf32> to vector<8x384xf32>
    %346 = arith.negf %345 : vector<8x384xf32>
    %347 = math.exp %346 : vector<8x384xf32>
    %cst_105 = arith.constant 1.000000e+00 : f32
    %348 = vector.broadcast %cst_105 : f32 to vector<8x384xf32>
    %349 = arith.addf %348, %347 : vector<8x384xf32>
    %350 = arith.divf %348, %349 : vector<8x384xf32>
    %351 = vector.extract_strided_slice %344 {offsets = [0, 384], sizes = [8, 128], strides = [1, 1]} : vector<8x512xf32> to vector<8x128xf32>
    %352 = math.tanh %351 : vector<8x128xf32>
    %353 = vector.extract_strided_slice %350 {offsets = [0, 0], sizes = [8, 128], strides = [1, 1]} : vector<8x384xf32> to vector<8x128xf32>
    %354 = vector.extract_strided_slice %350 {offsets = [0, 128], sizes = [8, 128], strides = [1, 1]} : vector<8x384xf32> to vector<8x128xf32>
    %355 = vector.extract_strided_slice %350 {offsets = [0, 256], sizes = [8, 128], strides = [1, 1]} : vector<8x384xf32> to vector<8x128xf32>
    %356 = arith.mulf %354, %335 : vector<8x128xf32>
    %357 = arith.mulf %353, %352 : vector<8x128xf32>
    %358 = arith.addf %356, %357 : vector<8x128xf32>
    %359 = math.tanh %358 : vector<8x128xf32>
    %360 = arith.mulf %355, %359 : vector<8x128xf32>
    %c5_i32_106 = arith.constant 5 : i32
    %c8_i32_107 = arith.constant 8 : i32
    %361 = arith.muli %c5_i32_106, %c8_i32_107 : i32
    %362 = tpu.assume_multiple %361, 8 : i32
    %363 = arith.index_cast %362 : i32 to index
    %c0_108 = arith.constant 0 : index
    %364 = vector.load %arg11[%363, %c0_108] : memref<64x512xf32, #tpu.memory_space<vmem>>, vector<8x512xf32>
    %365 = arith.truncf %360 : vector<8x128xf32> to vector<8x128xbf16>
    %cst_109 = arith.constant dense<0.000000e+00> : vector<8x512xf32>
    %366 = tpu.matmul %365, %236, %cst_109 {dimension_numbers = #tpu.dot_dimension_numbers<[1], [0], [0], [1], [0, 0, 1, 1], [], []>} : vector<8x128xbf16>, vector<128x512xbf16>, vector<8x512xf32> -> vector<8x512xf32>
    %367 = arith.addf %364, %366 : vector<8x512xf32>
    %368 = vector.extract_strided_slice %367 {offsets = [0, 0], sizes = [8, 384], strides = [1, 1]} : vector<8x512xf32> to vector<8x384xf32>
    %369 = arith.negf %368 : vector<8x384xf32>
    %370 = math.exp %369 : vector<8x384xf32>
    %cst_110 = arith.constant 1.000000e+00 : f32
    %371 = vector.broadcast %cst_110 : f32 to vector<8x384xf32>
    %372 = arith.addf %371, %370 : vector<8x384xf32>
    %373 = arith.divf %371, %372 : vector<8x384xf32>
    %374 = vector.extract_strided_slice %367 {offsets = [0, 384], sizes = [8, 128], strides = [1, 1]} : vector<8x512xf32> to vector<8x128xf32>
    %375 = math.tanh %374 : vector<8x128xf32>
    %376 = vector.extract_strided_slice %373 {offsets = [0, 0], sizes = [8, 128], strides = [1, 1]} : vector<8x384xf32> to vector<8x128xf32>
    %377 = vector.extract_strided_slice %373 {offsets = [0, 128], sizes = [8, 128], strides = [1, 1]} : vector<8x384xf32> to vector<8x128xf32>
    %378 = vector.extract_strided_slice %373 {offsets = [0, 256], sizes = [8, 128], strides = [1, 1]} : vector<8x384xf32> to vector<8x128xf32>
    %379 = arith.mulf %377, %358 : vector<8x128xf32>
    %380 = arith.mulf %376, %375 : vector<8x128xf32>
    %381 = arith.addf %379, %380 : vector<8x128xf32>
    %382 = math.tanh %381 : vector<8x128xf32>
    %383 = arith.mulf %378, %382 : vector<8x128xf32>
    %c6_i32_111 = arith.constant 6 : i32
    %c8_i32_112 = arith.constant 8 : i32
    %384 = arith.muli %c6_i32_111, %c8_i32_112 : i32
    %385 = tpu.assume_multiple %384, 8 : i32
    %386 = arith.index_cast %385 : i32 to index
    %c0_113 = arith.constant 0 : index
    %387 = vector.load %arg11[%386, %c0_113] : memref<64x512xf32, #tpu.memory_space<vmem>>, vector<8x512xf32>
    %388 = arith.truncf %383 : vector<8x128xf32> to vector<8x128xbf16>
    %cst_114 = arith.constant dense<0.000000e+00> : vector<8x512xf32>
    %389 = tpu.matmul %388, %236, %cst_114 {dimension_numbers = #tpu.dot_dimension_numbers<[1], [0], [0], [1], [0, 0, 1, 1], [], []>} : vector<8x128xbf16>, vector<128x512xbf16>, vector<8x512xf32> -> vector<8x512xf32>
    %390 = arith.addf %387, %389 : vector<8x512xf32>
    %391 = vector.extract_strided_slice %390 {offsets = [0, 0], sizes = [8, 384], strides = [1, 1]} : vector<8x512xf32> to vector<8x384xf32>
    %392 = arith.negf %391 : vector<8x384xf32>
    %393 = math.exp %392 : vector<8x384xf32>
    %cst_115 = arith.constant 1.000000e+00 : f32
    %394 = vector.broadcast %cst_115 : f32 to vector<8x384xf32>
    %395 = arith.addf %394, %393 : vector<8x384xf32>
    %396 = arith.divf %394, %395 : vector<8x384xf32>
    %397 = vector.extract_strided_slice %390 {offsets = [0, 384], sizes = [8, 128], strides = [1, 1]} : vector<8x512xf32> to vector<8x128xf32>
    %398 = math.tanh %397 : vector<8x128xf32>
    %399 = vector.extract_strided_slice %396 {offsets = [0, 0], sizes = [8, 128], strides = [1, 1]} : vector<8x384xf32> to vector<8x128xf32>
    %400 = vector.extract_strided_slice %396 {offsets = [0, 128], sizes = [8, 128], strides = [1, 1]} : vector<8x384xf32> to vector<8x128xf32>
    %401 = vector.extract_strided_slice %396 {offsets = [0, 256], sizes = [8, 128], strides = [1, 1]} : vector<8x384xf32> to vector<8x128xf32>
    %402 = arith.mulf %400, %381 : vector<8x128xf32>
    %403 = arith.mulf %399, %398 : vector<8x128xf32>
    %404 = arith.addf %402, %403 : vector<8x128xf32>
    %405 = math.tanh %404 : vector<8x128xf32>
    %406 = arith.mulf %401, %405 : vector<8x128xf32>
    %c7_i32_116 = arith.constant 7 : i32
    %c8_i32_117 = arith.constant 8 : i32
    %407 = arith.muli %c7_i32_116, %c8_i32_117 : i32
    %408 = tpu.assume_multiple %407, 8 : i32
    %409 = arith.index_cast %408 : i32 to index
    %c0_118 = arith.constant 0 : index
    %410 = vector.load %arg11[%409, %c0_118] : memref<64x512xf32, #tpu.memory_space<vmem>>, vector<8x512xf32>
    %411 = arith.truncf %406 : vector<8x128xf32> to vector<8x128xbf16>
    %cst_119 = arith.constant dense<0.000000e+00> : vector<8x512xf32>
    %412 = tpu.matmul %411, %236, %cst_119 {dimension_numbers = #tpu.dot_dimension_numbers<[1], [0], [0], [1], [0, 0, 1, 1], [], []>} : vector<8x128xbf16>, vector<128x512xbf16>, vector<8x512xf32> -> vector<8x512xf32>
    %413 = arith.addf %410, %412 : vector<8x512xf32>
    %414 = vector.extract_strided_slice %413 {offsets = [0, 0], sizes = [8, 384], strides = [1, 1]} : vector<8x512xf32> to vector<8x384xf32>
    %415 = arith.negf %414 : vector<8x384xf32>
    %416 = math.exp %415 : vector<8x384xf32>
    %cst_120 = arith.constant 1.000000e+00 : f32
    %417 = vector.broadcast %cst_120 : f32 to vector<8x384xf32>
    %418 = arith.addf %417, %416 : vector<8x384xf32>
    %419 = arith.divf %417, %418 : vector<8x384xf32>
    %420 = vector.extract_strided_slice %413 {offsets = [0, 384], sizes = [8, 128], strides = [1, 1]} : vector<8x512xf32> to vector<8x128xf32>
    %421 = math.tanh %420 : vector<8x128xf32>
    %422 = vector.extract_strided_slice %419 {offsets = [0, 0], sizes = [8, 128], strides = [1, 1]} : vector<8x384xf32> to vector<8x128xf32>
    %423 = vector.extract_strided_slice %419 {offsets = [0, 128], sizes = [8, 128], strides = [1, 1]} : vector<8x384xf32> to vector<8x128xf32>
    %424 = vector.extract_strided_slice %419 {offsets = [0, 256], sizes = [8, 128], strides = [1, 1]} : vector<8x384xf32> to vector<8x128xf32>
    %425 = arith.mulf %423, %404 : vector<8x128xf32>
    %426 = arith.mulf %422, %421 : vector<8x128xf32>
    %427 = arith.addf %425, %426 : vector<8x128xf32>
    %428 = math.tanh %427 : vector<8x128xf32>
    %429 = arith.mulf %424, %428 : vector<8x128xf32>
    %c8_i32_121 = arith.constant 8 : i32
    %c0_122 = arith.constant 0 : index
    %c0_123 = arith.constant 0 : index
    %430 = vector.load %arg8[%c0_122, %c0_123] : memref<128x4xf32, #tpu.memory_space<vmem>>, vector<128x4xf32>
    %cst_124 = arith.constant dense<0.000000e+00> : vector<8x4xf32>
    %431 = tpu.matmul %429, %430, %cst_124 {dimension_numbers = #tpu.dot_dimension_numbers<[1], [0], [0], [1], [0, 0, 1, 1], [], []>} : vector<8x128xf32>, vector<128x4xf32>, vector<8x4xf32> -> vector<8x4xf32>
    %c0_125 = arith.constant 0 : index
    %c0_126 = arith.constant 0 : index
    %432 = vector.load %arg9[%c0_125, %c0_126] : memref<1x4xf32, #tpu.memory_space<vmem>>, vector<1x4xf32>
    %433 = vector.broadcast %432 : vector<1x4xf32> to vector<8x4xf32>
    %434 = arith.addf %431, %433 : vector<8x4xf32>
    %c0_127 = arith.constant 0 : index
    %c0_128 = arith.constant 0 : index
    %c0_129 = arith.constant 0 : index
    %435 = vector.load %arg10[%c0_127, %c0_128, %c0_129] : memref<1x8x4xf32, #tpu.memory_space<vmem>>, vector<1x8x4xf32>
    %436 = vector.shape_cast %435 : vector<1x8x4xf32> to vector<8x4xf32>
    %437 = vector.shape_cast %434 : vector<8x4xf32> to vector<1x8x4xf32>
    tpu.vector_store %arg10[%c0_127, %c0_128, %c0_129], %437 {strides = array<i32>} : memref<1x8x4xf32, #tpu.memory_space<vmem>>, vector<1x8x4xf32>,
    return
  }
  func.func @transform_0(%arg0: i32) -> (i32, i32, i32) {
    %c0_i32 = arith.constant 0 : i32
    %c0_i32_0 = arith.constant 0 : i32
    %c0_i32_1 = arith.constant 0 : i32
    return %arg0, %c0_i32, %c0_i32_0 : i32, i32, i32
  }
  func.func @transform_1(%arg0: i32) -> (i32, i32) {
    %c0_i32 = arith.constant 0 : i32
    %c0_i32_0 = arith.constant 0 : i32
    %c0_i32_1 = arith.constant 0 : i32
    return %c0_i32, %c0_i32_0 : i32, i32
  }
  func.func @transform_2(%arg0: i32) -> (i32, i32) {
    %c0_i32 = arith.constant 0 : i32
    %c0_i32_0 = arith.constant 0 : i32
    %c0_i32_1 = arith.constant 0 : i32
    return %c0_i32, %c0_i32_0 : i32, i32
  }
  func.func @transform_3(%arg0: i32) -> (i32, i32) {
    %c0_i32 = arith.constant 0 : i32
    %c0_i32_0 = arith.constant 0 : i32
    %c0_i32_1 = arith.constant 0 : i32
    return %c0_i32, %c0_i32_0 : i32, i32
  }
  func.func @transform_4(%arg0: i32) -> (i32, i32) {
    %c0_i32 = arith.constant 0 : i32
    %c0_i32_0 = arith.constant 0 : i32
    %c0_i32_1 = arith.constant 0 : i32
    return %c0_i32, %c0_i32_0 : i32, i32
  }
  func.func @transform_5(%arg0: i32) -> (i32, i32) {
    %c0_i32 = arith.constant 0 : i32
    %c0_i32_0 = arith.constant 0 : i32
    %c0_i32_1 = arith.constant 0 : i32
    return %c0_i32, %c0_i32_0 : i32, i32
  }
  func.func @transform_6(%arg0: i32) -> (i32, i32) {
    %c0_i32 = arith.constant 0 : i32
    %c0_i32_0 = arith.constant 0 : i32
    %c0_i32_1 = arith.constant 0 : i32
    return %c0_i32, %c0_i32_0 : i32, i32
  }
  func.func @transform_7(%arg0: i32) -> (i32, i32) {
    %c0_i32 = arith.constant 0 : i32
    %c0_i32_0 = arith.constant 0 : i32
    %c0_i32_1 = arith.constant 0 : i32
    return %c0_i32, %c0_i32_0 : i32, i32
  }
  func.func @transform_8(%arg0: i32) -> (i32, i32) {
    %c0_i32 = arith.constant 0 : i32
    %c0_i32_0 = arith.constant 0 : i32
    %c0_i32_1 = arith.constant 0 : i32
    return %c0_i32, %c0_i32_0 : i32, i32
  }
  func.func @transform_9(%arg0: i32) -> (i32, i32, i32) {
    %c0_i32 = arith.constant 0 : i32
    %c0_i32_0 = arith.constant 0 : i32
    %c0_i32_1 = arith.constant 0 : i32
    return %arg0, %c0_i32, %c0_i32_0 : i32, i32, i32
  }
}

</mosaic_0001>

<bundles_post_ra>
// kernel: tpu_custom_call.1
= control target key start
LH: loop header
LB: loop body
LE: loop exit
PB: predicated region body
PF: predicated region fallthrough
CT: control target
= control target key end

     0   :  { %14 = vsyncpa [#allocation5], 0  ;;  %s5323_s0 = inlined_call_operand.vmem [shape: bf16[1,64,16], index: 0, kind: input, shape index: {}]   ;;  %s5324_s1 = inlined_call_operand.vmem [shape: bf16[16,512], index: 1, kind: input, shape index: {}]   ;;  %s5325_s2 = inlined_call_operand.hbm [shape: bf16[128,512], index: 2, kind: input, shape index: {}]   ;;  %s5326_s3 = inlined_call_operand.vmem [shape: f32[1,512], index: 3, kind: input, shape index: {}]   ;;  %s5327_s4 = inlined_call_operand.hbm [shape: bf16[128,512], index: 4, kind: input, shape index: {}]   ;;  %s5328_s5 = inlined_call_operand.hbm [shape: bf16[128,512], index: 5, kind: input, shape index: {}]   ;;  %s5329_s6 = inlined_call_operand.vmem [shape: f32[1,512], index: 6, kind: input, shape index: {}]   ;;  %s5330_s7 = inlined_call_operand.vmem [shape: f32[128,4], index: 7, kind: input, shape index: {}]   ;;  %s5331_s8 = inlined_call_operand.vmem [shape: f32[1,4], index: 8, kind: input, shape index: {}]   ;;  %s5332_s9 = inlined_call_operand.vmem [shape: f32[1,8,4], index: 9, kind: output, shape index: {}]  }
   0x1   :  { %15 = vsyncpa [#allocation7], 0  ;;  %s39_s11 = sshll.u32 %s5327_s4, 4  ;;  %s4049_s12 = smov [#allocation6]   ;;  %s40_s11 = int_to_ptr.hbm [resolvable:$true] %s39_s11 }
   0x2   :  { %s41_s13 = sshll.u32 %s4049_s12, 4  ;;  %s24_s16 = sshll.u32 %s5325_s2, 4  ;;  %s42_s13 = int_to_ptr.vmem [resolvable:$true] %s41_s13  ;;  %s25_s16 = int_to_ptr.hbm [resolvable:$true] %s24_s16 }
   0x3   :  { %s4050_s17 = smov 256   ;;  %s4051_s18 = smov 16  }
   0x4   :  { %47 = dma.hbm_to_vmem [thread:$0]  %s40_s11, 4096, %s42_s13, [#allocation7], %s4050_s17, %s4050_s17, %s4051_s18  }
   0x5   :  { %s4052_s19 = smov [#allocation4]   ;;  %s52_s23 = sshll.u32 %s5328_s5, 4  ;;  %s53_s23 = int_to_ptr.hbm [resolvable:$true] %s52_s23 }
   0x6   :  { %s26_s20 = sshll.u32 %s4052_s19, 4  ;;  %s4053_s4 = smov [#allocation8]   ;;  %s27_s20 = int_to_ptr.vmem [resolvable:$true] %s26_s20 }
   0x7   :  { %32 = dma.hbm_to_vmem [thread:$0]  %s25_s16, 4096, %s27_s20, [#allocation5], %s4050_s17, %s4050_s17, %s4051_s18  }
   0x8   :  { %s54_s24 = sshll.u32 %s4053_s4, 4  ;;  %s55_s24 = int_to_ptr.vmem [resolvable:$true] %s54_s24 }
   0x9   :  { %60 = dma.hbm_to_vmem [thread:$0]  %s53_s23, 4096, %s55_s24, [#allocation7], %s4050_s17, %s4050_s17, %s4051_s18  }
   0xa   :  { %4045 = dma.done.wait [#allocation5], 4096  }
   0xb   :  { %4046 = vsyncadd [#allocation5], 4294963200 }
   0xc   :  { %4047 = dma.done.wait [#allocation7], 8192  }
   0xd   :  { %4048 = vsyncadd [#allocation7], 4294959104  ;;  %v3143_v0 = vld [vmem:[%s5324_s1] sm:$0xf]  ;;  %v3607_v1 = vld [vmem:[%s5324_s1 + $0xc] sm:$0xf0] }
   0xe   :  { %v3151_v2 = vld [vmem:[%s5324_s1 + $0x8] sm:$0xf]  ;;  %v3144_v3 = vor.u32 %v3607_v1, %v3143_v0  ;;  %v3608_v4 = vld [vmem:[%s5324_s1 + $0x14] sm:$0xf0]  ;;  %v3606_v5 = vld [vmem:[%s5324_s1 + $0xc] sm:$0xf] }
   0xf   :  { %v3153_v6 = vld [vmem:[%s5324_s1 + $0x18] sm:$0xf0]  ;;  %v3152_v7 = vor.u32 %v3608_v4, %v3151_v2  ;;  %v4135_v9 = vld [vmem:[%s5323_s0] sm:$0xff]  ;;  %vm174_vm0 = vcmask 130048   ;;  %v3145_v12 = vld [vmem:[%s5324_s1 + $0x10] sm:$0xf0] }
  0x10   :  { %v3156_v8 = vor.u32 %v3606_v5, %v3153_v6  ;;  %v4140_v10 = vld [vmem:[%s5323_s0 + $0x18] sm:$0xff]  ;;  %v3605_v11 = vld [vmem:[%s5324_s1 + $0x4] sm:$0xf]  ;;  %194 = vmatpush.bf16.msra.mxu0 %v3144_v3  ;;  %3709 = vmatpush.bf16.msra.mxu1 %v3144_v3  ;;  %v3289_v15 = vld [vmem:[#allocation4 + $0xf0] sm:$0xf0] }
  0x11   :  { %v3637_v13 = vld [vmem:[#allocation4 + $0xe4] sm:$0xf]  ;;  %252 = vmatpush.bf16.msra.mxu2 %v3152_v7  ;;  %v3148_v14 = vor.u32 %v3605_v11, %v3145_v12  ;;  %v3287_v16 = vld [vmem:[#allocation4 + $0xe0] sm:$0xf]  ;;  %v3639_v17 = vld [vmem:[#allocation4 + $0xec] sm:$0xf0] }
  0x12   :  { %281 = vmatpush.bf16.msra.mxu3 %v3156_v8  ;;  %v4148_v18 = vor.u32 %v3637_v13, %v3289_v15  ;;  %v4150_v19 = vor.u32 %v3639_v17, %v3287_v16  ;;  %v3271_v20 = vld [vmem:[#allocation4 + $0xc0] sm:$0xf]  ;;  %v3635_v21 = vld [vmem:[#allocation4 + $0xcc] sm:$0xf0]  ;;  %v3295_v22 = vld [vmem:[#allocation4 + $0xe8] sm:$0xf] }
  0x13   :  { %3157 = vmatmul.msk.bf16.vlgmr.msra.gmra.mxu0 %vm174_vm0, %v4135_v9  ;;  %3160 = vmatmul.msk.bf16.vlgmr.msra.gmra.mxu1 %vm174_vm0, %v4140_v10  ;;  %v3640_v23 = vld [vmem:[#allocation4 + $0xf4] sm:$0xf0]  ;;  %v3633_v24 = vld [vmem:[#allocation4 + $0xc4] sm:$0xf]  ;;  %v3273_v25 = vld [vmem:[#allocation4 + $0xd0] sm:$0xf0]  ;;  %v4166_v30 = vor.u32 %v3635_v21, %v3271_v20 }
  0x14   :  { %223 = vmatpush.bf16.msrb.mxu1 %v3148_v14  ;;  %3165 = vmatmul.msk.bf16.vlgmr.msra.gmra.mxu2 %vm174_vm0, %v4135_v9  ;;  %v4158_v26 = vor.u32 %v3640_v23, %v3295_v22  ;;  %v4163_v27 = vor.u32 %v3633_v24, %v3273_v25  ;;  %v3279_v28 = vld [vmem:[#allocation4 + $0xc8] sm:$0xf]  ;;  %v3636_v29 = vld [vmem:[#allocation4 + $0xd4] sm:$0xf0]  ;;  %v3255_v31 = vld [vmem:[#allocation4 + $0xa0] sm:$0xf] }
  0x15   :  { %3169 = vmatmul.msk.bf16.vlgmr.msra.gmra.mxu3 %vm174_vm0, %v4135_v9  ;;  %502 = vmatpush.bf16.msrb.mxu0 %v4150_v19  ;;  %v4169_v32 = vor.u32 %v3636_v29, %v3279_v28  ;;  %v3638_v33 = vld [vmem:[#allocation4 + $0xec] sm:$0xf]  ;;  %v3297_v34 = vld [vmem:[#allocation4 + $0xf8] sm:$0xf0]  ;;  %v3631_v35 = vld [vmem:[#allocation4 + $0xac] sm:$0xf0] }
  0x16   :  { %528 = vmatpush.bf16.msrb.mxu2 %v4158_v26  ;;  %v4171_v36 = vor.u32 %v3638_v33, %v3297_v34  ;;  %v3629_v37 = vld [vmem:[#allocation4 + $0xa4] sm:$0xf]  ;;  %v3257_v38 = vld [vmem:[#allocation4 + $0xb0] sm:$0xf0]  ;;  %v3263_v40 = vld [vmem:[#allocation4 + $0xa8] sm:$0xf]  ;;  %v4178_v43 = vor.u32 %v3631_v35, %v3255_v31 }
  0x17   :  { %v4175_v39 = vor.u32 %v3629_v37, %v3257_v38  ;;  %v3632_v41 = vld [vmem:[#allocation4 + $0xb4] sm:$0xf0]  ;;  %v3634_v42 = vld [vmem:[#allocation4 + $0xcc] sm:$0xf]  ;;  %v3281_v45 = vld [vmem:[#allocation4 + $0xd8] sm:$0xf0] }
  0x18   :  { %515 = vmatpush.bf16.msra.mxu1 %v4148_v18  ;;  %541 = vmatpush.bf16.msrb.mxu3 %v4171_v36  ;;  %v4181_v44 = vor.u32 %v3632_v41, %v3263_v40  ;;  %v3625_v46 = vld [vmem:[#allocation4 + $0x84] sm:$0xf]  ;;  %v3241_v47 = vld [vmem:[#allocation4 + $0x90] sm:$0xf0]  ;;  %v3239_v48 = vld [vmem:[#allocation4 + $0x80] sm:$0xf]  ;;  %v4183_v50 = vor.u32 %v3634_v42, %v3281_v45 }
  0x19   :  { %503 = vmatpush.bf16.msrb.mxu0 %v4166_v30  ;;  %v3627_v49 = vld [vmem:[#allocation4 + $0x8c] sm:$0xf0]  ;;  %v3630_v51 = vld [vmem:[#allocation4 + $0xac] sm:$0xf]  ;;  %v3265_v52 = vld [vmem:[#allocation4 + $0xb8] sm:$0xf0]  ;;  %v4187_v53 = vor.u32 %v3625_v46, %v3241_v47 }
  0x1a   :  { %529 = vmatpush.bf16.msrb.mxu2 %v4169_v32  ;;  %v4189_v54 = vor.u32 %v3630_v51, %v3265_v52  ;;  %v3247_v55 = vld [vmem:[#allocation4 + $0x88] sm:$0xf]  ;;  %v3628_v56 = vld [vmem:[#allocation4 + $0x94] sm:$0xf0]  ;;  %v4197_v58 = vor.u32 %v3627_v49, %v3239_v48  ;;  %v3223_v59 = vld [vmem:[#allocation4 + $0x60] sm:$0xf] }
  0x1b   :  { %v4194_v57 = vld [vmem:[%s5323_s0 + $0x8] sm:$0xff]  ;;  %v4200_v60 = vor.u32 %v3628_v56, %v3247_v55  ;;  %v3623_v61 = vld [vmem:[#allocation4 + $0x6c] sm:$0xf0]  ;;  %v3249_v63 = vld [vmem:[#allocation4 + $0x98] sm:$0xf0] }
  0x1c   :  { %516 = vmatpush.bf16.msra.mxu1 %v4163_v27  ;;  %542 = vmatpush.bf16.msrb.mxu3 %v4183_v50  ;;  %v3626_v62 = vld [vmem:[#allocation4 + $0x8c] sm:$0xf]  ;;  %v4205_v0 = vor.u32 %v3623_v61, %v3223_v59  ;;  %v3207_v1 = vld [vmem:[#allocation4 + $0x40] sm:$0xf]  ;;  %v3619_v2 = vld [vmem:[#allocation4 + $0x4c] sm:$0xf0] }
  0x1d   :  { %504 = vmatpush.bf16.msrb.mxu0 %v4178_v43  ;;  %v4208_v3 = vor.u32 %v3626_v62, %v3249_v63  ;;  %v3231_v4 = vld [vmem:[#allocation4 + $0x68] sm:$0xf]  ;;  %v3624_v5 = vld [vmem:[#allocation4 + $0x74] sm:$0xf0]  ;;  %v3622_v6 = vld [vmem:[#allocation4 + $0x6c] sm:$0xf]  ;;  %v4221_v15 = vor.u32 %v3619_v2, %v3207_v1 }
  0x1e   :  { %530 = vmatpush.bf16.msrb.mxu2 %v4181_v44  ;;  %v4216_v7 = vor.u32 %v3624_v5, %v3231_v4  ;;  %v3233_v8 = vld [vmem:[#allocation4 + $0x78] sm:$0xf0]  ;;  %v3191_v11 = vld [vmem:[#allocation4 + $0x20] sm:$0xf]  ;;  %v3621_v12 = vld [vmem:[#allocation4 + $0x64] sm:$0xf] }
  0x1f   :  { %v3225_v13 = vld [vmem:[#allocation4 + $0x70] sm:$0xf0]  ;;  %v3215_v14 = vld [vmem:[#allocation4 + $0x48] sm:$0xf]  ;;  %v4226_v17 = vor.u32 %v3622_v6, %v3233_v8  ;;  %v3620_v20 = vld [vmem:[#allocation4 + $0x54] sm:$0xf0] }
  0x20   :  { %517 = vmatpush.bf16.msra.mxu1 %v4175_v39  ;;  %543 = vmatpush.bf16.msrb.mxu3 %v4189_v54  ;;  %v4224_v16 = vor.u32 %v3621_v12, %v3225_v13  ;;  %v3618_v21 = vld [vmem:[#allocation4 + $0x4c] sm:$0xf]  ;;  %v4229_v22 = vor.u32 %v3620_v20, %v3215_v14  ;;  %v3217_v23 = vld [vmem:[#allocation4 + $0x58] sm:$0xf0]  ;;  %v3617_v24 = vld [vmem:[#allocation4 + $0x44] sm:$0xf] }
  0x21   :  { %505 = vmatpush.bf16.msrb.mxu0 %v4197_v58  ;;  %v3209_v25 = vld [vmem:[#allocation4 + $0x50] sm:$0xf0]  ;;  %v3199_v29 = vld [vmem:[#allocation4 + $0x28] sm:$0xf]  ;;  %v3616_v31 = vld [vmem:[#allocation4 + $0x34] sm:$0xf0]  ;;  %v4238_v35 = vor.u32 %v3618_v21, %v3217_v23 }
  0x22   :  { %531 = vmatpush.bf16.msrb.mxu2 %v4200_v60  ;;  %v4232_v28 = vor.u32 %v3617_v24, %v3209_v25  ;;  %v3175_v34 = vld [vmem:[#allocation4] sm:$0xf]  ;;  %v3611_v37 = vld [vmem:[#allocation4 + $0xc] sm:$0xf0]  ;;  %v4241_v38 = vor.u32 %v3616_v31, %v3199_v29  ;;  %v3614_v40 = vld [vmem:[#allocation4 + $0x2c] sm:$0xf] }
  0x23   :  { %3158 = vmatmul.msk.bf16.gmra.mxu0 %vm174_vm0, %v4194_v57  ;;  %3161 = vmatmul.msk.bf16.vlgmr.msrb.gmra.mxu1 %vm174_vm0, %v4135_v9  ;;  %v3615_v9 = vld [vmem:[#allocation4 + $0x2c] sm:$0xf0]  ;;  %v3201_v41 = vld [vmem:[#allocation4 + $0x38] sm:$0xf0]  ;;  %v4245_v42 = vor.u32 %v3611_v37, %v3175_v34  ;;  %v3183_v46 = vld [vmem:[#allocation4 + $0x8] sm:$0xf] }
  0x24   :  { %518 = vmatpush.bf16.msra.mxu1 %v4187_v53  ;;  %3166 = vmatmul.msk.bf16.gmra.mxu2 %vm174_vm0, %v4194_v57  ;;  %v4235_v33 = vor.u32 %v3615_v9, %v3191_v11  ;;  %v4248_v45 = vor.u32 %v3614_v40, %v3201_v41  ;;  %v3612_v47 = vld [vmem:[#allocation4 + $0x14] sm:$0xf0]  ;;  %v3643_v48 = vld [vmem:[%s5323_s0 + $0x10] sm:$0xff]  ;;  %v3610_v49 = vld [vmem:[#allocation4 + $0xc] sm:$0xf] }
  0x25   :  { %3170 = vmatmul.msk.bf16.gmra.mxu3 %vm174_vm0, %v4194_v57  ;;  %506 = vmatpush.bf16.msrb.mxu0 %v4205_v0  ;;  %v3185_v51 = vld [vmem:[#allocation4 + $0x18] sm:$0xf0]  ;;  %v4254_v52 = vor.u32 %v3612_v47, %v3183_v46  ;;  %v3613_v56 = vld [vmem:[#allocation4 + $0x24] sm:$0xf]  ;;  %v3193_v59 = vld [vmem:[#allocation4 + $0x30] sm:$0xf0] }
  0x26   :  { %544 = vmatpush.bf16.msrb.mxu3 %v4208_v3  ;;  %532 = vmatpush.bf16.msrb.mxu2 %v4216_v7  ;;  %v4258_v55 = vor.u32 %v3610_v49, %v3185_v51  ;;  %v4264_v61 = vor.u32 %v3613_v56, %v3193_v59  ;;  %v3609_v62 = vld [vmem:[#allocation4 + $0x4] sm:$0xf]  ;;  %v3177_v63 = vld [vmem:[#allocation4 + $0x10] sm:$0xf0] }
  0x27   :  { %v4271_v1 = vor.u32 %v3609_v62, %v3177_v63 }
  0x28   :  { %519 = vmatpush.bf16.msra.mxu1 %v4224_v16 }
  0x29   :  { %507 = vmatpush.bf16.msrb.mxu0 %v4221_v15 }
  0x2a   :  { %545 = vmatpush.bf16.msrb.mxu3 %v4226_v17  ;;  %533 = vmatpush.bf16.msrb.mxu2 %v4229_v22 }
  0x2c   :  { %520 = vmatpush.bf16.msra.mxu1 %v4232_v28 }
  0x2d   :  { %508 = vmatpush.bf16.msrb.mxu0 %v4235_v33 }
  0x2e   :  { %546 = vmatpush.bf16.msrb.mxu3 %v4238_v35  ;;  %534 = vmatpush.bf16.msrb.mxu2 %v4241_v38 }
  0x30   :  { %521 = vmatpush.bf16.msra.mxu1 %v4264_v61 }
  0x31   :  { %509 = vmatpush.bf16.msrb.mxu0 %v4245_v42 }
  0x32   :  { %547 = vmatpush.bf16.msrb.mxu3 %v4248_v45  ;;  %535 = vmatpush.bf16.msrb.mxu2 %v4254_v52 }
  0x33   :  { %3159 = vmatmul.msk.bf16.gmra.mxu0 %vm174_vm0, %v3643_v48  ;;  %3162 = vmatmul.msk.bf16.gmra.mxu1 %vm174_vm0, %v4194_v57  ;;  %v5333_v57 = vmov 0  }
  0x34   :  { %3167 = vmatmul.msk.bf16.gmra.mxu2 %vm174_vm0, %v3643_v48  ;;  %522 = vmatpush.bf16.msra.mxu1 %v4271_v1 }
  0x35   :  { %630 = vmatpush.bf16.msra.mxu0 %v4150_v19  ;;  %3171 = vmatmul.msk.bf16.gmra.mxu3 %vm174_vm0, %v3643_v48 }
  0x36   :  { %548 = vmatpush.bf16.msrb.mxu3 %v4258_v55  ;;  %656 = vmatpush.bf16.msra.mxu2 %v4158_v26 }
  0x38   :  { %643 = vmatpush.bf16.msrb.mxu1 %v4148_v18 }
  0x39   :  { %631 = vmatpush.bf16.msra.mxu0 %v4166_v30 }
  0x3a   :  { %669 = vmatpush.bf16.msra.mxu3 %v4171_v36  ;;  %657 = vmatpush.bf16.msra.mxu2 %v4169_v32 }
  0x3c   :  { %644 = vmatpush.bf16.msrb.mxu1 %v4163_v27 }
  0x3d   :  { %632 = vmatpush.bf16.msra.mxu0 %v4178_v43 }
  0x3e   :  { %670 = vmatpush.bf16.msra.mxu3 %v4183_v50  ;;  %658 = vmatpush.bf16.msra.mxu2 %v4181_v44 }
  0x40   :  { %645 = vmatpush.bf16.msrb.mxu1 %v4175_v39 }
  0x41   :  { %633 = vmatpush.bf16.msra.mxu0 %v4197_v58 }
  0x42   :  { %671 = vmatpush.bf16.msra.mxu3 %v4189_v54  ;;  %659 = vmatpush.bf16.msra.mxu2 %v4200_v60 }
  0x43   :  { %3163 = vmatmul.msk.bf16.gmra.mxu1 %vm174_vm0, %v3643_v48  ;;  %510 = vmatmul.bf16.vlgmr.msrb.gmra.mxu0 %v5333_v57 }
  0x44   :  { %3168 = vmatmul.msk.bf16.gmra.mxu2 %vm174_vm0, %v4140_v10  ;;  %646 = vmatpush.bf16.msrb.mxu1 %v4187_v53 }
  0x45   :  { %3172 = vmatmul.msk.bf16.gmra.mxu3 %vm174_vm0, %v4140_v10  ;;  %634 = vmatpush.bf16.msra.mxu0 %v4205_v0 }
  0x46   :  { %672 = vmatpush.bf16.msra.mxu3 %v4208_v3  ;;  %660 = vmatpush.bf16.msra.mxu2 %v4216_v7 }
  0x48   :  { %647 = vmatpush.bf16.msrb.mxu1 %v4224_v16 }
  0x49   :  { %635 = vmatpush.bf16.msra.mxu0 %v4221_v15 }
  0x4a   :  { %673 = vmatpush.bf16.msra.mxu3 %v4226_v17  ;;  %661 = vmatpush.bf16.msra.mxu2 %v4229_v22 }
  0x4c   :  { %648 = vmatpush.bf16.msrb.mxu1 %v4232_v28 }
  0x4d   :  { %636 = vmatpush.bf16.msra.mxu0 %v4235_v33 }
  0x4e   :  { %674 = vmatpush.bf16.msra.mxu3 %v4238_v35  ;;  %662 = vmatpush.bf16.msra.mxu2 %v4241_v38 }
  0x50   :  { %649 = vmatpush.bf16.msrb.mxu1 %v4264_v61 }
  0x51   :  { %637 = vmatpush.bf16.msra.mxu0 %v4245_v42 }
  0x52   :  { %675 = vmatpush.bf16.msra.mxu3 %v4248_v45  ;;  %663 = vmatpush.bf16.msra.mxu2 %v4254_v52 }
  0x53   :  { %3164 = vmatmul.msk.bf16.gmra.mxu1 %vm174_vm0, %v4140_v10  ;;  %v116_v10 = vld [vmem:[%s5326_s3] sm:$0xf] }
  0x54   :  { %536 = vmatmul.bf16.vlgmr.msrb.gmra.mxu2 %v5333_v57  ;;  %650 = vmatpush.bf16.msrb.mxu1 %v4271_v1  ;;  %v4351_v2 = vperm.slane %v116_v10, 0  ;;  %v4369_v24 = vperm.slane %v116_v10, 2  ;;  %v4371_v25 = vperm.slane %v116_v10, 3  ;;  %v4385_v47 = vperm.slane %v116_v10, 1 }
  0x55   :  { %759 = vmatpush.bf16.msrb.mxu0 %v4150_v19  ;;  %549 = vmatmul.bf16.vlgmr.msrb.gmra.mxu3 %v5333_v57 }
  0x56   :  { %676 = vmatpush.bf16.msra.mxu3 %v4258_v55  ;;  %785 = vmatpush.bf16.msrb.mxu2 %v4158_v26  ;;  %5343 = vst [vmem:[#allocation13_spill] sm:$0xff] %v4371_v25 }
  0x59   :  { %760 = vmatpush.bf16.msrb.mxu0 %v4166_v30 }
  0x5a   :  { %798 = vmatpush.bf16.msrb.mxu3 %v4171_v36  ;;  %786 = vmatpush.bf16.msrb.mxu2 %v4169_v32 }
  0x5d   :  { %761 = vmatpush.bf16.msrb.mxu0 %v4178_v43 }
  0x5e   :  { %799 = vmatpush.bf16.msrb.mxu3 %v4183_v50  ;;  %787 = vmatpush.bf16.msrb.mxu2 %v4181_v44 }
  0x61   :  { %762 = vmatpush.bf16.msrb.mxu0 %v4197_v58 }
  0x62   :  { %800 = vmatpush.bf16.msrb.mxu3 %v4189_v54  ;;  %788 = vmatpush.bf16.msrb.mxu2 %v4200_v60 }
  0x63   :  { %523 = vmatmul.bf16.vlgmr.msra.gmra.mxu1 %v5333_v57 }
  0x64   :  { %772 = vmatpush.bf16.msra.mxu1 %v4148_v18 }
  0x65   :  { %763 = vmatpush.bf16.msrb.mxu0 %v4205_v0 }
  0x66   :  { %801 = vmatpush.bf16.msrb.mxu3 %v4208_v3  ;;  %789 = vmatpush.bf16.msrb.mxu2 %v4216_v7 }
  0x68   :  { %773 = vmatpush.bf16.msra.mxu1 %v4163_v27 }
  0x69   :  { %764 = vmatpush.bf16.msrb.mxu0 %v4221_v15 }
  0x6a   :  { %802 = vmatpush.bf16.msrb.mxu3 %v4226_v17  ;;  %790 = vmatpush.bf16.msrb.mxu2 %v4229_v22 }
  0x6c   :  { %774 = vmatpush.bf16.msra.mxu1 %v4175_v39 }
  0x6d   :  { %765 = vmatpush.bf16.msrb.mxu0 %v4235_v33 }
  0x6e   :  { %803 = vmatpush.bf16.msrb.mxu3 %v4238_v35  ;;  %791 = vmatpush.bf16.msrb.mxu2 %v4241_v38 }
  0x70   :  { %775 = vmatpush.bf16.msra.mxu1 %v4187_v53 }
  0x71   :  { %766 = vmatpush.bf16.msrb.mxu0 %v4245_v42 }
  0x72   :  { %804 = vmatpush.bf16.msrb.mxu3 %v4248_v45  ;;  %792 = vmatpush.bf16.msrb.mxu2 %v4254_v52 }
  0x74   :  { %776 = vmatpush.bf16.msra.mxu1 %v4224_v16 }
  0x76   :  { %805 = vmatpush.bf16.msrb.mxu3 %v4258_v55 }
  0x78   :  { %777 = vmatpush.bf16.msra.mxu1 %v4232_v28 }
  0x7c   :  { %778 = vmatpush.bf16.msra.mxu1 %v4264_v61 }
  0x80   :  { %779 = vmatpush.bf16.msra.mxu1 %v4271_v1 }
  0x90   :  { %v196_v4 = vpop.f32.mrf.mxu0  ;;  %v211_v5 = vpop.f32.mrf.mxu1 }
  0x91   :  { %v4354_v6 = vadd.f32 %v211_v5, %v4351_v2 }
  0x93   :  { %5341 = vst [vmem:[#allocation11_spill] sm:$0xff] %v4354_v6 }
  0x97   :  { %v254_v8 = vpop.f32.mrf.mxu2 }
  0x98   :  { %v283_v11 = vpop.f32.mrf.mxu3  ;;  %v4356_v12 = vpop.f32.mrf.mxu0 }
  0x99   :  { %v4358_v13 = vpop.f32.mrf.mxu1 }
  0x9a   :  { %5342 = vst [vmem:[#allocation12_spill] sm:$0xff] %v4358_v13 }
  0x9f   :  { %v4360_v14 = vpop.f32.mrf.mxu2 }
  0xa0   :  { %v4362_v9 = vpop.f32.mrf.mxu3  ;;  %v201_v20 = vpop.f32.mrf.mxu0 }
  0xa1   :  { %v4365_v21 = vadd.f32 %v201_v20, %v4351_v2  ;;  %v4367_v23 = vpop.f32.mrf.mxu1 }
  0xa7   :  { %v259_v29 = vpop.f32.mrf.mxu2 }
  0xa8   :  { %v4374_v31 = vadd.f32 %v259_v29, %v4369_v24  ;;  %v288_v34 = vpop.f32.mrf.mxu3  ;;  %v4376_v37 = vpop.f32.mrf.mxu0 }
  0xa9   :  { %5344 = vst [vmem:[#allocation14_spill] sm:$0xff] %v4376_v37  ;;  %v4379_v40 = vadd.f32 %v288_v34, %v4371_v25  ;;  %v4381_v41 = vpop.f32.mrf.mxu1  ;;  %v197_v34 = vadd.f32 %v196_v4, %v4351_v2 }
  0xab   :  { %5345 = vst [vmem:[#allocation15_spill] sm:$0xff] %v4379_v40  ;;  %v226_v40 = vadd.f32 %v4367_v23, %v4385_v47 }
  0xaf   :  { %v4383_v46 = vpop.f32.mrf.mxu2 }
  0xb0   :  { %5346 = vst [vmem:[#allocation16_spill] sm:$0xff] %v4383_v46  ;;  %v4387_v48 = vpop.f32.mrf.mxu3  ;;  %v206_v49 = vpop.f32.mrf.mxu0 }
  0xb1   :  { %5347 = vst [vmem:[#allocation17_spill] sm:$0xff] %v4387_v48  ;;  %v4390_v51 = vadd.f32 %v206_v49, %v4351_v2  ;;  %v230_v56 = vpop.f32.mrf.mxu1 }
  0xb2   :  { %v4393_v59 = vadd.f32 %v230_v56, %v4385_v47 }
  0xb3   :  { %5348 = vst [vmem:[#allocation18_spill] sm:$0xff] %v4390_v51 }
  0xb7   :  { %v264_v62 = vpop.f32.mrf.mxu2 }
  0xb8   :  { %v4396_v63 = vadd.f32 %v264_v62, %v4369_v24  ;;  %v293_v5 = vpop.f32.mrf.mxu3  ;;  %v4398_v20 = vpop.f32.mrf.mxu0 }
  0xb9   :  { %5350 = vst [vmem:[#allocation20_spill] sm:$0xff] %v4398_v20  ;;  %v4401_v10 = vadd.f32 %v293_v5, %v4371_v25  ;;  %v4403_v29 = vpop.f32.mrf.mxu1 }
  0xba   :  { %5349 = vst [vmem:[#allocation19_spill] sm:$0xff] %v4396_v63 }
  0xbb   :  { %5351 = vst [vmem:[#allocation21_spill] sm:$0xff] %v4401_v10 }
  0xbc   :  { %5352 = vst [vmem:[#allocation22_spill] sm:$0xff] %v4403_v29 }
  0xbf   :  { %v4406_v49 = vpop.f32.mrf.mxu2 }
  0xc0   :  { %5353 = vst [vmem:[#allocation23_spill] sm:$0xff] %v4406_v49  ;;  %v4408_v57 = vpop.f32.mrf.mxu3  ;;  %v511_v56 = vpop.f32.mrf.mxu0 }
  0xc1   :  { %5354 = vst [vmem:[#allocation24_spill] sm:$0xff] %v4408_v57  ;;  %v235_v13 = vpop.f32.mrf.mxu1  ;;  %v554_v6 = vadd.f32 %v511_v56, %v197_v34 }
  0xc2   :  { %v4411_v62 = vadd.f32 %v235_v13, %v4385_v47 }
  0xc3   :  { %v3301_v63 = vmul.f32 -1.442695, %v554_v6 }
  0xc4   :  { %5355 = vst [vmem:[#allocation25_spill] sm:$0xff] %v4411_v62 }
  0xc5   :  { %3717 = vpow2.f32 %v3301_v63 }
  0xc7   :  { %v269_v20 = vpop.f32.mrf.mxu2 }
  0xc8   :  { %v4414_v5 = vadd.f32 %v269_v20, %v4369_v24  ;;  %v298_v10 = vpop.f32.mrf.mxu3  ;;  %v513_v51 = vpop.f32.mrf.mxu0 }
  0xc9   :  { %v4417_v4 = vadd.f32 %v298_v10, %v4371_v25  ;;  %v4419_v49 = vpop.f32.mrf.mxu1  ;;  %v255_v51 = vadd.f32 %v254_v8, %v4369_v24  ;;  %v284_v10 = vadd.f32 %v283_v11, %v4371_v25 }
  0xca   :  { %5356 = vst [vmem:[#allocation26_spill] sm:$0xff] %v4414_v5 }
  0xcb   :  { %5357 = vst [vmem:[#allocation27_spill] sm:$0xff] %v4417_v4  ;;  %v3718_v57 = vpop.eup %3717 }
  0xcc   :  { %5358 = vst [vmem:[#allocation28_spill] sm:$0xff] %v4419_v49  ;;  %v567_v48 = vadd.f32 1.0, %v3718_v57 }
  0xce   :  { %3719 = vrcp.f32 %v567_v48  ;;  %v581_v62 = vand.u32 2147483648, %v567_v48  ;;  %vm575_vm2 = vweird.f32 %v567_v48 }
  0xcf   :  { %v4421_v34 = vpop.f32.mrf.mxu2 }
  0xd0   :  { %5359 = vst [vmem:[#allocation29_spill] sm:$0xff] %v4421_v34  ;;  %v4423_v13 = vpop.f32.mrf.mxu3  ;;  %v582_v8 = vor.u32 1.1754944e-38, %v581_v62 }
  0xd1   :  { %5360 = vst [vmem:[#allocation30_spill] sm:$0xff] %v4423_v13  ;;  %v240_v6 = vpop.f32.mrf.mxu1  ;;  %v579_v13 = vand.u32 2147483647, %v567_v48 }
  0xd2   :  { %v4426_v63 = vadd.f32 %v240_v6, %v4385_v47 }
  0xd3   :  { %vm580_vm4 = vcmp.eq.f32.partialorder %v579_v13, 8.507059e+37 }
  0xd4   :  { %5361 = vst [vmem:[#allocation31_spill] sm:$0xff] %v4426_v63  ;;  %v3720_v20 = vpop.eup %3719 }
  0xd5   :  { %v571_v56 = vmul.f32 %v3720_v20, %v567_v48  ;;  %vm576_vm1 = vweird.f32 %v3720_v20 }
  0xd6   :  { %vm577_vm3 = vmor %vm575_vm2, %vm576_vm1 }
  0xd7   :  { %v572_v4 = vsub.f32 1.0, %v571_v56  ;;  %v537_v5 = vpop.f32.mrf.mxu2 }
  0xd8   :  { %v550_v49 = vpop.f32.mrf.mxu3  ;;  %v556_v57 = vadd.f32 %v537_v5, %v255_v51 }
  0xd9   :  { %v557_v46 = vadd.f32 %v550_v49, %v284_v10  ;;  %v573_v29 = vmul.f32 %v3720_v20, %v572_v4  ;;  %v4430_v34 = vpop.f32.mrf.mxu1 }
  0xda   :  { %5362 = vst [vmem:[#allocation32_spill] sm:$0xff] %v4430_v34  ;;  %v3303_v6 = vmul.f32 -1.442695, %v556_v57 }
  0xdb   :  { %v574_v37 = vadd.f32 %v3720_v20, %v573_v29  ;;  %3721 = vtanh.f32 %v557_v46 }
  0xdc   :  { %3723 = vpow2.f32 %v3303_v6 }
  0xdd   :  { %v578_v63 = vsel %vm577_vm3, %v3720_v20, %v574_v37 }
  0xde   :  { %v583_v11 = vsel %vm580_vm4, %v582_v8, %v578_v63 }
  0xdf   :  { %v539_v56 = vpop.f32.mrf.mxu2 }
  0xe0   :  { %v552_v5 = vpop.f32.mrf.mxu3 }
  0xe1   :  { %v3722_v49 = vpop.eup %3721  ;;  %v524_v4 = vpop.f32.mrf.mxu1 }
  0xe2   :  { %v617_v51 = vmul.f32 %v3722_v49, %v583_v11  ;;  %v555_v10 = vadd.f32 %v524_v4, %v226_v40  ;;  %v3724_v48 = vpop.eup %3723 }
  0xe3   :  { %v569_v29 = vadd.f32 1.0, %v3724_v48 }
  0xe4   :  { %v3302_v34 = vmul.f32 -1.442695, %v555_v10 }
  0xe5   :  { %vm605_vm10 = vweird.f32 %v569_v29 }
  0xe6   :  { %3725 = vpow2.f32 %v3302_v34 }
  0xe7   :  { %3727 = vrcp.f32 %v569_v29 }
  0xe9   :  { %v526_v46 = vpop.f32.mrf.mxu1 }
  0xec   :  { %v3726_v57 = vpop.eup %3725 }
  0xed   :  { %v568_v37 = vadd.f32 1.0, %v3726_v57  ;;  %v3728_v62 = vpop.eup %3727  ;;  %v611_v57 = vand.u32 2147483648, %v569_v29 }
  0xee   :  { %v601_v20 = vmul.f32 %v3728_v62, %v569_v29  ;;  %vm606_vm9 = vweird.f32 %v3728_v62 }
  0xef   :  { %3729 = vrcp.f32 %v568_v37  ;;  %v596_v8 = vand.u32 2147483648, %v568_v37  ;;  %v594_v6 = vand.u32 2147483647, %v568_v37  ;;  %vm590_vm6 = vweird.f32 %v568_v37  ;;  %vm607_vm11 = vmor %vm605_vm10, %vm606_vm9 }
  0xf0   :  { %v602_v11 = vsub.f32 1.0, %v601_v20 }
  0xf1   :  { %v597_v34 = vor.u32 1.1754944e-38, %v596_v8  ;;  %vm595_vm8 = vcmp.eq.f32.partialorder %v594_v6, 8.507059e+37 }
  0xf2   :  { %v603_v49 = vmul.f32 %v3728_v62, %v602_v11 }
  0xf4   :  { %v604_v46 = vadd.f32 %v3728_v62, %v603_v49  ;;  %v257_v49 = vadd.f32 %v4360_v14, %v4369_v24  ;;  %v286_v14 = vadd.f32 %v4362_v9, %v4371_v25 }
  0xf5   :  { %v3730_v13 = vpop.eup %3729 }
  0xf6   :  { %v586_v63 = vmul.f32 %v3730_v13, %v568_v37  ;;  %vm591_vm5 = vweird.f32 %v3730_v13  ;;  %v608_v20 = vsel %vm607_vm11, %v3728_v62, %v604_v46 }
  0xf7   :  { %vm592_vm7 = vmor %vm590_vm6, %vm591_vm5 }
  0xf8   :  { %v587_v23 = vsub.f32 1.0, %v586_v63  ;;  %v609_v63 = vand.u32 2147483647, %v569_v29  ;;  %v228_v29 = vadd.f32 %v4381_v41, %v4385_v47 }
  0xfa   :  { %v588_v56 = vmul.f32 %v3730_v13, %v587_v23  ;;  %v612_v23 = vor.u32 1.1754944e-38, %v611_v57  ;;  %vm610_vm12 = vcmp.eq.f32.partialorder %v609_v63, 8.507059e+37 }
  0xfc   :  { %v589_v40 = vadd.f32 %v3730_v13, %v588_v56  ;;  %v613_v8 = vsel %vm610_vm12, %v612_v23, %v608_v20 }
  0xfe   :  { %v593_v5 = vsel %vm592_vm7, %v3730_v13, %v589_v40 }
  0xff   :  { %v598_v4 = vsel %vm595_vm8, %v597_v34, %v593_v5 }
 0x100   :  { %v616_v10 = vmul.f32 0.0, %v598_v4 }
 0x102   :  { %v4434_v48 = vadd.f32 %v617_v51, %v616_v10  ;;  %v199_v51 = vadd.f32 %v4356_v12, %v4351_v2 }
 0x104   :  { %3731 = vtanh.f32 %v4434_v48 }
 0x10a   :  { %v3732_v37 = vpop.eup %3731 }
 0x10b   :  { %v4437_v13 = vmul.f32 %v3732_v37, %v613_v8 }
 0x10d   :  { %5363 = vst [vmem:[#allocation33_spill] sm:$0xff] %v4437_v13  ;;  %v629_v56 = vpack.c.bf16 %v4437_v13, %v4437_v13 }
 0x10f   :  { %638 = vmatmul.bf16.vlgmr.msra.gmra.mxu0 %v629_v56  ;;  %651 = vmatmul.bf16.vlgmr.msrb.gmra.mxu1 %v629_v56 }
 0x110   :  { %664 = vmatmul.bf16.vlgmr.msra.gmra.mxu2 %v629_v56  ;;  %677 = vmatmul.bf16.vlgmr.msra.gmra.mxu3 %v629_v56 }
 0x111   :  { %888 = vmatpush.bf16.msra.mxu0 %v4150_v19  ;;  %901 = vmatpush.bf16.msrb.mxu1 %v4148_v18 }
 0x112   :  { %914 = vmatpush.bf16.msra.mxu2 %v4158_v26  ;;  %927 = vmatpush.bf16.msra.mxu3 %v4171_v36 }
 0x115   :  { %889 = vmatpush.bf16.msra.mxu0 %v4166_v30  ;;  %902 = vmatpush.bf16.msrb.mxu1 %v4163_v27 }
 0x116   :  { %915 = vmatpush.bf16.msra.mxu2 %v4169_v32  ;;  %928 = vmatpush.bf16.msra.mxu3 %v4183_v50 }
 0x119   :  { %890 = vmatpush.bf16.msra.mxu0 %v4178_v43  ;;  %903 = vmatpush.bf16.msrb.mxu1 %v4175_v39 }
 0x11a   :  { %916 = vmatpush.bf16.msra.mxu2 %v4181_v44  ;;  %929 = vmatpush.bf16.msra.mxu3 %v4189_v54 }
 0x11d   :  { %891 = vmatpush.bf16.msra.mxu0 %v4197_v58  ;;  %904 = vmatpush.bf16.msrb.mxu1 %v4187_v53 }
 0x11e   :  { %917 = vmatpush.bf16.msra.mxu2 %v4200_v60  ;;  %930 = vmatpush.bf16.msra.mxu3 %v4208_v3 }
 0x121   :  { %892 = vmatpush.bf16.msra.mxu0 %v4205_v0  ;;  %905 = vmatpush.bf16.msrb.mxu1 %v4224_v16 }
 0x122   :  { %918 = vmatpush.bf16.msra.mxu2 %v4216_v7  ;;  %931 = vmatpush.bf16.msra.mxu3 %v4226_v17 }
 0x125   :  { %893 = vmatpush.bf16.msra.mxu0 %v4221_v15  ;;  %906 = vmatpush.bf16.msrb.mxu1 %v4232_v28 }
 0x126   :  { %919 = vmatpush.bf16.msra.mxu2 %v4229_v22  ;;  %932 = vmatpush.bf16.msra.mxu3 %v4238_v35 }
 0x129   :  { %894 = vmatpush.bf16.msra.mxu0 %v4235_v33  ;;  %907 = vmatpush.bf16.msrb.mxu1 %v4264_v61 }
 0x12a   :  { %920 = vmatpush.bf16.msra.mxu2 %v4241_v38  ;;  %933 = vmatpush.bf16.msra.mxu3 %v4248_v45 }
 0x12d   :  { %895 = vmatpush.bf16.msra.mxu0 %v4245_v42  ;;  %908 = vmatpush.bf16.msrb.mxu1 %v4271_v1 }
 0x12e   :  { %921 = vmatpush.bf16.msra.mxu2 %v4254_v52  ;;  %934 = vmatpush.bf16.msra.mxu3 %v4258_v55 }
 0x18c   :  { %v639_v62 = vpop.f32.mrf.mxu0  ;;  %v652_v6 = vpop.f32.mrf.mxu1 }
 0x18d   :  { %v682_v11 = vadd.f32 %v639_v62, %v199_v51  ;;  %v683_v40 = vadd.f32 %v652_v6, %v228_v29 }
 0x18f   :  { %v3304_v34 = vmul.f32 -1.442695, %v682_v11  ;;  %v3305_v5 = vmul.f32 -1.442695, %v683_v40 }
 0x191   :  { %3733 = vpow2.f32 %v3304_v34 }
 0x192   :  { %3735 = vpow2.f32 %v3305_v5 }
 0x193   :  { %v665_v4 = vpop.f32.mrf.mxu2  ;;  %v678_v10 = vpop.f32.mrf.mxu3 }
 0x194   :  { %v684_v46 = vadd.f32 %v665_v4, %v257_v49  ;;  %v641_v57 = vpop.f32.mrf.mxu0  ;;  %v654_v63 = vpop.f32.mrf.mxu1  ;;  %v685_v6 = vadd.f32 %v678_v10, %v286_v14 }
 0x196   :  { %v3306_v12 = vmul.f32 -1.442695, %v684_v46 }
 0x197   :  { %v3734_v20 = vpop.eup %3733 }
 0x198   :  { %v3736_v23 = vpop.eup %3735  ;;  %v695_v41 = vadd.f32 1.0, %v3734_v20  ;;  %3737 = vpow2.f32 %v3306_v12 }
 0x199   :  { %v696_v37 = vadd.f32 1.0, %v3736_v23 }
 0x19a   :  { %3739 = vrcp.f32 %v695_v41  ;;  %v709_v4 = vand.u32 2147483648, %v695_v41  ;;  %v707_v63 = vand.u32 2147483647, %v695_v41  ;;  %vm703_vm15 = vweird.f32 %v695_v41 }
 0x19b   :  { %3741 = vrcp.f32 %v696_v37  ;;  %v667_v8 = vpop.f32.mrf.mxu2  ;;  %v680_v56 = vpop.f32.mrf.mxu3  ;;  %v724_v46 = vand.u32 2147483648, %v696_v37  ;;  %v722_v20 = vand.u32 2147483647, %v696_v37  ;;  %vm718_vm0 = vweird.f32 %v696_v37 }
 0x19c   :  { %v710_v8 = vor.u32 1.1754944e-38, %v709_v4  ;;  %vm708_vm3 = vcmp.eq.f32.partialorder %v707_v63, 8.507059e+37 }
 0x19d   :  { %vm723_vm4 = vcmp.eq.f32.partialorder %v722_v20, 8.507059e+37 }
 0x19e   :  { %v3738_v51 = vpop.eup %3737 }
 0x19f   :  { %v697_v29 = vadd.f32 1.0, %v3738_v51  ;;  %v725_v51 = vor.u32 1.1754944e-38, %v724_v46 }
 0x1a0   :  { %v3740_v62 = vpop.eup %3739 }
 0x1a1   :  { %v3742_v11 = vpop.eup %3741  ;;  %v699_v40 = vmul.f32 %v3740_v62, %v695_v41  ;;  %3743 = vrcp.f32 %v697_v29  ;;  %vm704_vm13 = vweird.f32 %v3740_v62  ;;  %v739_v4 = vand.u32 2147483648, %v697_v29 }
 0x1a2   :  { %v714_v34 = vmul.f32 %v3742_v11, %v696_v37  ;;  %3745 = vtanh.f32 %v685_v6  ;;  %vm719_vm14 = vweird.f32 %v3742_v11  ;;  %vm705_vm1 = vmor %vm703_vm15, %vm704_vm13  ;;  %vm733_vm6 = vweird.f32 %v697_v29 }
 0x1a3   :  { %v700_v5 = vsub.f32 1.0, %v699_v40  ;;  %vm720_vm2 = vmor %vm718_vm0, %vm719_vm14  ;;  %v740_v63 = vor.u32 1.1754944e-38, %v739_v4 }
 0x1a4   :  { %v715_v49 = vsub.f32 1.0, %v714_v34 }
 0x1a5   :  { %v701_v57 = vmul.f32 %v3740_v62, %v700_v5 }
 0x1a6   :  { %v716_v12 = vmul.f32 %v3742_v11, %v715_v49 }
 0x1a7   :  { %v3744_v23 = vpop.eup %3743  ;;  %v702_v9 = vadd.f32 %v3740_v62, %v701_v57 }
 0x1a8   :  { %v729_v10 = vmul.f32 %v3744_v23, %v697_v29  ;;  %v717_v56 = vadd.f32 %v3742_v11, %v716_v12  ;;  %v3746_v6 = vpop.eup %3745  ;;  %vm734_vm5 = vweird.f32 %v3744_v23 }
 0x1a9   :  { %v706_v14 = vsel %vm705_vm1, %v3740_v62, %v702_v9  ;;  %v737_v62 = vand.u32 2147483647, %v697_v29  ;;  %vm735_vm7 = vmor %vm733_vm6, %vm734_vm5 }
 0x1aa   :  { %v730_v40 = vsub.f32 1.0, %v729_v10  ;;  %v711_v34 = vsel %vm708_vm3, %v710_v8, %v706_v14  ;;  %v721_v5 = vsel %vm720_vm2, %v3742_v11, %v717_v56 }
 0x1ab   :  { %v726_v49 = vsel %vm723_vm4, %v725_v51, %v721_v5  ;;  %v745_v13 = vmul.f32 %v3746_v6, %v711_v34  ;;  %vm738_vm8 = vcmp.eq.f32.partialorder %v737_v62, 8.507059e+37 }
 0x1ac   :  { %v731_v25 = vmul.f32 %v3744_v23, %v730_v40  ;;  %v744_v57 = vmul.f32 %v726_v49, %v4434_v48 }
 0x1ae   :  { %v4482_v41 = vadd.f32 %v745_v13, %v744_v57  ;;  %v732_v37 = vadd.f32 %v3744_v23, %v731_v25 }
 0x1b0   :  { %3747 = vtanh.f32 %v4482_v41  ;;  %v736_v46 = vsel %vm735_vm7, %v3744_v23, %v732_v37 }
 0x1b1   :  { %v741_v12 = vsel %vm738_vm8, %v740_v63, %v736_v46  ;;  %v5364_v46 = vld [vmem:[#allocation15_spill] sm:$0xff] }
 0x1b6   :  { %v3748_v11 = vpop.eup %3747 }
 0x1b7   :  { %v4485_v20 = vmul.f32 %v3748_v11, %v741_v12 }
 0x1b9   :  { %v758_v48 = vpack.c.bf16 %v4485_v20, %v4485_v20 }
 0x1bb   :  { %767 = vmatmul.bf16.vlgmr.msrb.gmra.mxu0 %v758_v48  ;;  %780 = vmatmul.bf16.vlgmr.msra.gmra.mxu1 %v758_v48 }
 0x1bc   :  { %793 = vmatmul.bf16.vlgmr.msrb.gmra.mxu2 %v758_v48  ;;  %806 = vmatmul.bf16.vlgmr.msrb.gmra.mxu3 %v758_v48 }
 0x1bd   :  { %1017 = vmatpush.bf16.msrb.mxu0 %v4150_v19  ;;  %1030 = vmatpush.bf16.msra.mxu1 %v4148_v18 }
 0x1be   :  { %1043 = vmatpush.bf16.msrb.mxu2 %v4158_v26  ;;  %1056 = vmatpush.bf16.msrb.mxu3 %v4171_v36 }
 0x1c1   :  { %1018 = vmatpush.bf16.msrb.mxu0 %v4166_v30  ;;  %1031 = vmatpush.bf16.msra.mxu1 %v4163_v27 }
 0x1c2   :  { %1044 = vmatpush.bf16.msrb.mxu2 %v4169_v32  ;;  %1057 = vmatpush.bf16.msrb.mxu3 %v4183_v50 }
 0x1c5   :  { %1019 = vmatpush.bf16.msrb.mxu0 %v4178_v43  ;;  %1032 = vmatpush.bf16.msra.mxu1 %v4175_v39 }
 0x1c6   :  { %1045 = vmatpush.bf16.msrb.mxu2 %v4181_v44  ;;  %1058 = vmatpush.bf16.msrb.mxu3 %v4189_v54 }
 0x1c9   :  { %1020 = vmatpush.bf16.msrb.mxu0 %v4197_v58  ;;  %1033 = vmatpush.bf16.msra.mxu1 %v4187_v53 }
 0x1ca   :  { %1046 = vmatpush.bf16.msrb.mxu2 %v4200_v60  ;;  %1059 = vmatpush.bf16.msrb.mxu3 %v4208_v3 }
 0x1cd   :  { %1021 = vmatpush.bf16.msrb.mxu0 %v4205_v0  ;;  %1034 = vmatpush.bf16.msra.mxu1 %v4224_v16 }
 0x1ce   :  { %1047 = vmatpush.bf16.msrb.mxu2 %v4216_v7  ;;  %1060 = vmatpush.bf16.msrb.mxu3 %v4226_v17 }
 0x1d1   :  { %1022 = vmatpush.bf16.msrb.mxu0 %v4221_v15  ;;  %1035 = vmatpush.bf16.msra.mxu1 %v4232_v28 }
 0x1d2   :  { %1048 = vmatpush.bf16.msrb.mxu2 %v4229_v22  ;;  %1061 = vmatpush.bf16.msrb.mxu3 %v4238_v35 }
 0x1d5   :  { %1023 = vmatpush.bf16.msrb.mxu0 %v4235_v33  ;;  %1036 = vmatpush.bf16.msra.mxu1 %v4264_v61 }
 0x1d6   :  { %1049 = vmatpush.bf16.msrb.mxu2 %v4241_v38  ;;  %1062 = vmatpush.bf16.msrb.mxu3 %v4248_v45 }
 0x1d9   :  { %1024 = vmatpush.bf16.msrb.mxu0 %v4245_v42  ;;  %1037 = vmatpush.bf16.msra.mxu1 %v4271_v1 }
 0x1da   :  { %1050 = vmatpush.bf16.msrb.mxu2 %v4254_v52  ;;  %1063 = vmatpush.bf16.msrb.mxu3 %v4258_v55 }
 0x238   :  { %v768_v25 = vpop.f32.mrf.mxu0  ;;  %v781_v13 = vpop.f32.mrf.mxu1 }
 0x239   :  { %v811_v29 = vadd.f32 %v768_v25, %v4365_v21  ;;  %v812_v23 = vadd.f32 %v781_v13, %v4393_v59 }
 0x23b   :  { %v3307_v9 = vmul.f32 -1.442695, %v811_v29  ;;  %v3308_v10 = vmul.f32 -1.442695, %v812_v23 }
 0x23d   :  { %3749 = vpow2.f32 %v3307_v9 }
 0x23e   :  { %3751 = vpow2.f32 %v3308_v10 }
 0x23f   :  { %v794_v8 = vpop.f32.mrf.mxu2  ;;  %v807_v56 = vpop.f32.mrf.mxu3 }
 0x240   :  { %v813_v51 = vadd.f32 %v794_v8, %v4374_v31  ;;  %v770_v14 = vpop.f32.mrf.mxu0  ;;  %v783_v6 = vpop.f32.mrf.mxu1  ;;  %v814_v63 = vadd.f32 %v807_v56, %v5364_v46 }
 0x242   :  { %v3309_v40 = vmul.f32 -1.442695, %v813_v51 }
 0x243   :  { %v3750_v34 = vpop.eup %3749 }
 0x244   :  { %v3752_v5 = vpop.eup %3751  ;;  %v824_v49 = vadd.f32 1.0, %v3750_v34  ;;  %3753 = vpow2.f32 %v3309_v40 }
 0x245   :  { %v825_v57 = vadd.f32 1.0, %v3752_v5 }
 0x246   :  { %3755 = vrcp.f32 %v824_v49  ;;  %v838_v13 = vand.u32 2147483648, %v824_v49  ;;  %v836_v9 = vand.u32 2147483647, %v824_v49  ;;  %vm832_vm11 = vweird.f32 %v824_v49 }
 0x247   :  { %3757 = vrcp.f32 %v825_v57  ;;  %v796_v21 = vpop.f32.mrf.mxu2  ;;  %v809_v59 = vpop.f32.mrf.mxu3  ;;  %v853_v29 = vand.u32 2147483648, %v825_v57  ;;  %v851_v8 = vand.u32 2147483647, %v825_v57  ;;  %vm847_vm12 = vweird.f32 %v825_v57 }
 0x248   :  { %v839_v6 = vor.u32 1.1754944e-38, %v838_v13  ;;  %vm837_vm15 = vcmp.eq.f32.partialorder %v836_v9, 8.507059e+37 }
 0x249   :  { %v854_v34 = vor.u32 1.1754944e-38, %v853_v29  ;;  %vm852_vm0 = vcmp.eq.f32.partialorder %v851_v8, 8.507059e+37  ;;  %v5366_v8 = vld [vmem:[#allocation22_spill] sm:$0xff] }
 0x24a   :  { %v3754_v37 = vpop.eup %3753 }
 0x24b   :  { %v826_v4 = vadd.f32 1.0, %v3754_v37 }
 0x24c   :  { %v3756_v62 = vpop.eup %3755 }
 0x24d   :  { %v3758_v11 = vpop.eup %3757  ;;  %v828_v12 = vmul.f32 %v3756_v62, %v824_v49  ;;  %3759 = vrcp.f32 %v826_v4  ;;  %vm833_vm9 = vweird.f32 %v3756_v62  ;;  %vm862_vm2 = vweird.f32 %v826_v4 }
 0x24e   :  { %v843_v31 = vmul.f32 %v3758_v11, %v825_v57  ;;  %3761 = vtanh.f32 %v814_v63  ;;  %vm848_vm10 = vweird.f32 %v3758_v11  ;;  %vm834_vm13 = vmor %vm832_vm11, %vm833_vm9 }
 0x24f   :  { %v829_v48 = vsub.f32 1.0, %v828_v12  ;;  %vm849_vm14 = vmor %vm847_vm12, %vm848_vm10 }
 0x250   :  { %v844_v25 = vsub.f32 1.0, %v843_v31 }
 0x251   :  { %v830_v23 = vmul.f32 %v3756_v62, %v829_v48 }
 0x252   :  { %v845_v10 = vmul.f32 %v3758_v11, %v844_v25  ;;  %v868_v25 = vand.u32 2147483648, %v826_v4 }
 0x253   :  { %v3760_v51 = vpop.eup %3759  ;;  %v831_v14 = vadd.f32 %v3756_v62, %v830_v23 }
 0x254   :  { %v858_v56 = vmul.f32 %v3760_v51, %v826_v4  ;;  %v846_v40 = vadd.f32 %v3758_v11, %v845_v10  ;;  %v3762_v21 = vpop.eup %3761  ;;  %vm863_vm1 = vweird.f32 %v3760_v51  ;;  %v869_v29 = vor.u32 1.1754944e-38, %v868_v25 }
 0x255   :  { %v835_v5 = vsel %vm834_vm13, %v3756_v62, %v831_v14  ;;  %v866_v62 = vand.u32 2147483647, %v826_v4  ;;  %vm864_vm3 = vmor %vm862_vm2, %vm863_vm1  ;;  %v5365_v4 = vld [vmem:[#allocation14_spill] sm:$0xff] }
 0x256   :  { %v859_v59 = vsub.f32 1.0, %v858_v56  ;;  %v840_v37 = vsel %vm837_vm15, %v839_v6, %v835_v5  ;;  %v850_v46 = vsel %vm849_vm14, %v3758_v11, %v846_v40  ;;  %v204_v10 = vadd.f32 %v5365_v4, %v4351_v2  ;;  %v5369_v4 = vld [vmem:[#allocation17_spill] sm:$0xff] }
 0x257   :  { %v855_v63 = vsel %vm852_vm0, %v854_v34, %v850_v46  ;;  %v874_v12 = vmul.f32 %v3762_v21, %v840_v37  ;;  %vm867_vm4 = vcmp.eq.f32.partialorder %v866_v62, 8.507059e+37  ;;  %v5367_v21 = vld [vmem:[#allocation16_spill] sm:$0xff] }
 0x258   :  { %v860_v31 = vmul.f32 %v3760_v51, %v859_v59  ;;  %v873_v48 = vmul.f32 %v855_v63, %v4482_v41  ;;  %v262_v59 = vadd.f32 %v5367_v21, %v4369_v24 }
 0x25a   :  { %v4526_v49 = vadd.f32 %v874_v12, %v873_v48  ;;  %v861_v57 = vadd.f32 %v3760_v51, %v860_v31 }
 0x25c   :  { %3763 = vtanh.f32 %v4526_v49  ;;  %v865_v13 = vsel %vm864_vm3, %v3760_v51, %v861_v57  ;;  %v233_v51 = vadd.f32 %v5366_v8, %v4385_v47 }
 0x25d   :  { %v870_v23 = vsel %vm867_vm4, %v869_v29, %v865_v13 }
 0x262   :  { %v3764_v11 = vpop.eup %3763 }
 0x263   :  { %v4529_v9 = vmul.f32 %v3764_v11, %v870_v23 }
 0x265   :  { %v887_v41 = vpack.c.bf16 %v4529_v9, %v4529_v9 }
 0x267   :  { %896 = vmatmul.bf16.vlgmr.msra.gmra.mxu0 %v887_v41  ;;  %909 = vmatmul.bf16.vlgmr.msrb.gmra.mxu1 %v887_v41 }
 0x268   :  { %922 = vmatmul.bf16.vlgmr.msra.gmra.mxu2 %v887_v41  ;;  %935 = vmatmul.bf16.vlgmr.msra.gmra.mxu3 %v887_v41  ;;  %v5368_v41 = vld [vmem:[#allocation13_spill] sm:$0xff] }
 0x269   :  { %1146 = vmatpush.bf16.msra.mxu0 %v4150_v19  ;;  %1159 = vmatpush.bf16.msrb.mxu1 %v4148_v18 }
 0x26a   :  { %1172 = vmatpush.bf16.msra.mxu2 %v4158_v26  ;;  %1185 = vmatpush.bf16.msra.mxu3 %v4171_v36 }
 0x26d   :  { %1147 = vmatpush.bf16.msra.mxu0 %v4166_v30  ;;  %1160 = vmatpush.bf16.msrb.mxu1 %v4163_v27 }
 0x26e   :  { %1173 = vmatpush.bf16.msra.mxu2 %v4169_v32  ;;  %1186 = vmatpush.bf16.msra.mxu3 %v4183_v50 }
 0x271   :  { %1148 = vmatpush.bf16.msra.mxu0 %v4178_v43  ;;  %1161 = vmatpush.bf16.msrb.mxu1 %v4175_v39 }
 0x272   :  { %1174 = vmatpush.bf16.msra.mxu2 %v4181_v44  ;;  %1187 = vmatpush.bf16.msra.mxu3 %v4189_v54 }
 0x275   :  { %1149 = vmatpush.bf16.msra.mxu0 %v4197_v58  ;;  %1162 = vmatpush.bf16.msrb.mxu1 %v4187_v53 }
 0x276   :  { %1175 = vmatpush.bf16.msra.mxu2 %v4200_v60  ;;  %1188 = vmatpush.bf16.msra.mxu3 %v4208_v3 }
 0x279   :  { %1150 = vmatpush.bf16.msra.mxu0 %v4205_v0  ;;  %1163 = vmatpush.bf16.msrb.mxu1 %v4224_v16 }
 0x27a   :  { %1176 = vmatpush.bf16.msra.mxu2 %v4216_v7  ;;  %1189 = vmatpush.bf16.msra.mxu3 %v4226_v17 }
 0x27d   :  { %1151 = vmatpush.bf16.msra.mxu0 %v4221_v15  ;;  %1164 = vmatpush.bf16.msrb.mxu1 %v4232_v28 }
 0x27e   :  { %1177 = vmatpush.bf16.msra.mxu2 %v4229_v22  ;;  %1190 = vmatpush.bf16.msra.mxu3 %v4238_v35 }
 0x281   :  { %1152 = vmatpush.bf16.msra.mxu0 %v4235_v33  ;;  %1165 = vmatpush.bf16.msrb.mxu1 %v4264_v61 }
 0x282   :  { %1178 = vmatpush.bf16.msra.mxu2 %v4241_v38  ;;  %1191 = vmatpush.bf16.msra.mxu3 %v4248_v45 }
 0x285   :  { %1153 = vmatpush.bf16.msra.mxu0 %v4245_v42  ;;  %1166 = vmatpush.bf16.msrb.mxu1 %v4271_v1 }
 0x286   :  { %1179 = vmatpush.bf16.msra.mxu2 %v4254_v52  ;;  %1192 = vmatpush.bf16.msra.mxu3 %v4258_v55 }
 0x2e4   :  { %v897_v14 = vpop.f32.mrf.mxu0  ;;  %v910_v56 = vpop.f32.mrf.mxu1 }
 0x2e5   :  { %v940_v6 = vadd.f32 %v897_v14, %v204_v10  ;;  %v941_v40 = vadd.f32 %v910_v56, %v233_v51  ;;  %v291_v10 = vadd.f32 %v5369_v4, %v5368_v41 }
 0x2e7   :  { %v3310_v34 = vmul.f32 -1.442695, %v940_v6  ;;  %v3311_v5 = vmul.f32 -1.442695, %v941_v40 }
 0x2e9   :  { %3765 = vpow2.f32 %v3310_v34 }
 0x2ea   :  { %3767 = vpow2.f32 %v3311_v5 }
 0x2eb   :  { %v923_v37 = vpop.f32.mrf.mxu2  ;;  %v936_v46 = vpop.f32.mrf.mxu3 }
 0x2ec   :  { %v942_v63 = vadd.f32 %v923_v37, %v262_v59  ;;  %v899_v12 = vpop.f32.mrf.mxu0  ;;  %v912_v31 = vpop.f32.mrf.mxu1  ;;  %v943_v14 = vadd.f32 %v936_v46, %v291_v10 }
 0x2ee   :  { %v3312_v48 = vmul.f32 -1.442695, %v942_v63 }
 0x2ef   :  { %v3766_v57 = vpop.eup %3765 }
 0x2f0   :  { %v3768_v25 = vpop.eup %3767  ;;  %v953_v62 = vadd.f32 1.0, %v3766_v57  ;;  %3769 = vpow2.f32 %v3312_v48 }
 0x2f1   :  { %v954_v13 = vadd.f32 1.0, %v3768_v25 }
 0x2f2   :  { %3771 = vrcp.f32 %v953_v62  ;;  %v967_v21 = vand.u32 2147483648, %v953_v62  ;;  %v965_v63 = vand.u32 2147483647, %v953_v62  ;;  %vm961_vm7 = vweird.f32 %v953_v62 }
 0x2f3   :  { %3773 = vrcp.f32 %v954_v13  ;;  %v925_v29 = vpop.f32.mrf.mxu2  ;;  %v938_v11 = vpop.f32.mrf.mxu3  ;;  %v982_v59 = vand.u32 2147483648, %v954_v13  ;;  %v980_v31 = vand.u32 2147483647, %v954_v13  ;;  %vm976_vm8 = vweird.f32 %v954_v13 }
 0x2f4   :  { %v968_v25 = vor.u32 1.1754944e-38, %v967_v21  ;;  %vm966_vm11 = vcmp.eq.f32.partialorder %v965_v63, 8.507059e+37 }
 0x2f5   :  { %v983_v11 = vor.u32 1.1754944e-38, %v982_v59  ;;  %vm981_vm12 = vcmp.eq.f32.partialorder %v980_v31, 8.507059e+37 }
 0x2f6   :  { %v3770_v23 = vpop.eup %3769 }
 0x2f7   :  { %v955_v8 = vadd.f32 1.0, %v3770_v23 }
 0x2f8   :  { %v3772_v51 = vpop.eup %3771 }
 0x2f9   :  { %v3774_v56 = vpop.eup %3773  ;;  %v957_v6 = vmul.f32 %v3772_v51, %v953_v62  ;;  %3775 = vrcp.f32 %v955_v8  ;;  %vm962_vm5 = vweird.f32 %v3772_v51  ;;  %v997_v21 = vand.u32 2147483648, %v955_v8 }
 0x2fa   :  { %v972_v40 = vmul.f32 %v3774_v56, %v954_v13  ;;  %3777 = vtanh.f32 %v943_v14  ;;  %vm977_vm6 = vweird.f32 %v3774_v56  ;;  %vm963_vm9 = vmor %vm961_vm7, %vm962_vm5  ;;  %vm991_vm14 = vweird.f32 %v955_v8 }
 0x2fb   :  { %v958_v34 = vsub.f32 1.0, %v957_v6  ;;  %vm978_vm10 = vmor %vm976_vm8, %vm977_vm6  ;;  %v998_v63 = vor.u32 1.1754944e-38, %v997_v21 }
 0x2fc   :  { %v973_v5 = vsub.f32 1.0, %v972_v40 }
 0x2fd   :  { %v959_v37 = vmul.f32 %v3772_v51, %v958_v34 }
 0x2fe   :  { %v974_v12 = vmul.f32 %v3774_v56, %v973_v5 }
 0x2ff   :  { %v3776_v48 = vpop.eup %3775  ;;  %v960_v57 = vadd.f32 %v3772_v51, %v959_v37 }
 0x300   :  { %v987_v46 = vmul.f32 %v3776_v48, %v955_v8  ;;  %v975_v29 = vadd.f32 %v3774_v56, %v974_v12  ;;  %v3778_v4 = vpop.eup %3777  ;;  %vm992_vm13 = vweird.f32 %v3776_v48 }
 0x301   :  { %v964_v23 = vsel %vm963_vm9, %v3772_v51, %v960_v57  ;;  %v995_v51 = vand.u32 2147483647, %v955_v8  ;;  %vm993_vm15 = vmor %vm991_vm14, %vm992_vm13  ;;  %v5371_v57 = vld [vmem:[#allocation18_spill] sm:$0xff] }
 0x302   :  { %v988_v10 = vsub.f32 1.0, %v987_v46  ;;  %v969_v14 = vsel %vm966_vm11, %v968_v25, %v964_v23  ;;  %v979_v6 = vsel %vm978_vm10, %v3774_v56, %v975_v29  ;;  %v5372_v25 = vld [vmem:[#allocation25_spill] sm:$0xff] }
 0x303   :  { %v984_v40 = vsel %vm981_vm12, %v983_v11, %v979_v6  ;;  %v1003_v34 = vmul.f32 %v3778_v4, %v969_v14  ;;  %vm996_vm0 = vcmp.eq.f32.partialorder %v995_v51, 8.507059e+37  ;;  %v5373_v14 = vld [vmem:[#allocation19_spill] sm:$0xff] }
 0x304   :  { %v989_v5 = vmul.f32 %v3776_v48, %v988_v10  ;;  %v1002_v37 = vmul.f32 %v984_v40, %v4526_v49 }
 0x306   :  { %v4574_v62 = vadd.f32 %v1003_v34, %v1002_v37  ;;  %v990_v13 = vadd.f32 %v3776_v48, %v989_v5 }
 0x308   :  { %3779 = vtanh.f32 %v4574_v62  ;;  %v994_v59 = vsel %vm993_vm15, %v3776_v48, %v990_v13 }
 0x309   :  { %v999_v12 = vsel %vm996_vm0, %v998_v63, %v994_v59 }
 0x30e   :  { %v3780_v56 = vpop.eup %3779 }
 0x30f   :  { %v4577_v31 = vmul.f32 %v3780_v56, %v999_v12 }
 0x311   :  { %5370 = vst [vmem:[#allocation15_spill] sm:$0xff] %v4577_v31  ;;  %v1016_v49 = vpack.c.bf16 %v4577_v31, %v4577_v31 }
 0x313   :  { %1025 = vmatmul.bf16.vlgmr.msrb.gmra.mxu0 %v1016_v49  ;;  %1038 = vmatmul.bf16.vlgmr.msra.gmra.mxu1 %v1016_v49 }
 0x314   :  { %1051 = vmatmul.bf16.vlgmr.msrb.gmra.mxu2 %v1016_v49  ;;  %1064 = vmatmul.bf16.vlgmr.msrb.gmra.mxu3 %v1016_v49 }
 0x315   :  { %1275 = vmatpush.bf16.msrb.mxu0 %v4150_v19  ;;  %1288 = vmatpush.bf16.msra.mxu1 %v4148_v18 }
 0x316   :  { %1301 = vmatpush.bf16.msrb.mxu2 %v4158_v26  ;;  %1314 = vmatpush.bf16.msrb.mxu3 %v4171_v36 }
 0x319   :  { %1276 = vmatpush.bf16.msrb.mxu0 %v4166_v30  ;;  %1289 = vmatpush.bf16.msra.mxu1 %v4163_v27 }
 0x31a   :  { %1302 = vmatpush.bf16.msrb.mxu2 %v4169_v32  ;;  %1315 = vmatpush.bf16.msrb.mxu3 %v4183_v50 }
 0x31d   :  { %1277 = vmatpush.bf16.msrb.mxu0 %v4178_v43  ;;  %1290 = vmatpush.bf16.msra.mxu1 %v4175_v39 }
 0x31e   :  { %1303 = vmatpush.bf16.msrb.mxu2 %v4181_v44  ;;  %1316 = vmatpush.bf16.msrb.mxu3 %v4189_v54 }
 0x321   :  { %1278 = vmatpush.bf16.msrb.mxu0 %v4197_v58  ;;  %1291 = vmatpush.bf16.msra.mxu1 %v4187_v53 }
 0x322   :  { %1304 = vmatpush.bf16.msrb.mxu2 %v4200_v60  ;;  %1317 = vmatpush.bf16.msrb.mxu3 %v4208_v3 }
 0x325   :  { %1279 = vmatpush.bf16.msrb.mxu0 %v4205_v0  ;;  %1292 = vmatpush.bf16.msra.mxu1 %v4224_v16 }
 0x326   :  { %1305 = vmatpush.bf16.msrb.mxu2 %v4216_v7  ;;  %1318 = vmatpush.bf16.msrb.mxu3 %v4226_v17 }
 0x329   :  { %1280 = vmatpush.bf16.msrb.mxu0 %v4221_v15  ;;  %1293 = vmatpush.bf16.msra.mxu1 %v4232_v28 }
 0x32a   :  { %1306 = vmatpush.bf16.msrb.mxu2 %v4229_v22  ;;  %1319 = vmatpush.bf16.msrb.mxu3 %v4238_v35 }
 0x32d   :  { %1281 = vmatpush.bf16.msrb.mxu0 %v4235_v33  ;;  %1294 = vmatpush.bf16.msra.mxu1 %v4264_v61 }
 0x32e   :  { %1307 = vmatpush.bf16.msrb.mxu2 %v4241_v38  ;;  %1320 = vmatpush.bf16.msrb.mxu3 %v4248_v45 }
 0x331   :  { %1282 = vmatpush.bf16.msrb.mxu0 %v4245_v42  ;;  %1295 = vmatpush.bf16.msra.mxu1 %v4271_v1 }
 0x332   :  { %1308 = vmatpush.bf16.msrb.mxu2 %v4254_v52  ;;  %1321 = vmatpush.bf16.msrb.mxu3 %v4258_v55 }
 0x390   :  { %v1026_v8 = vpop.f32.mrf.mxu0  ;;  %v1039_v48 = vpop.f32.mrf.mxu1 }
 0x391   :  { %v1069_v46 = vadd.f32 %v1026_v8, %v5371_v57  ;;  %v1070_v29 = vadd.f32 %v1039_v48, %v5372_v25  ;;  %v5374_v8 = vld [vmem:[#allocation21_spill] sm:$0xff] }
 0x393   :  { %v3313_v11 = vmul.f32 -1.442695, %v1069_v46  ;;  %v3314_v23 = vmul.f32 -1.442695, %v1070_v29 }
 0x395   :  { %3781 = vpow2.f32 %v3313_v11 }
 0x396   :  { %3783 = vpow2.f32 %v3314_v23 }
 0x397   :  { %v1052_v4 = vpop.f32.mrf.mxu2  ;;  %v1065_v10 = vpop.f32.mrf.mxu3 }
 0x398   :  { %v1071_v6 = vadd.f32 %v1052_v4, %v5373_v14  ;;  %v1028_v40 = vpop.f32.mrf.mxu0  ;;  %v1041_v34 = vpop.f32.mrf.mxu1  ;;  %v1072_v48 = vadd.f32 %v1065_v10, %v5374_v8 }
 0x39a   :  { %v3315_v5 = vmul.f32 -1.442695, %v1071_v6 }
 0x39b   :  { %v3782_v37 = vpop.eup %3781 }
 0x39c   :  { %v3784_v13 = vpop.eup %3783  ;;  %v1082_v21 = vadd.f32 1.0, %v3782_v37  ;;  %3785 = vpow2.f32 %v3315_v5 }
 0x39d   :  { %v1083_v51 = vadd.f32 1.0, %v3784_v13 }
 0x39e   :  { %3787 = vrcp.f32 %v1082_v21  ;;  %v1096_v23 = vand.u32 2147483648, %v1082_v21  ;;  %v1094_v6 = vand.u32 2147483647, %v1082_v21  ;;  %vm1090_vm3 = vweird.f32 %v1082_v21 }
 0x39f   :  { %3789 = vrcp.f32 %v1083_v51  ;;  %v1054_v59 = vpop.f32.mrf.mxu2  ;;  %v1067_v63 = vpop.f32.mrf.mxu3  ;;  %v1111_v4 = vand.u32 2147483648, %v1083_v51  ;;  %v1109_v34 = vand.u32 2147483647, %v1083_v51  ;;  %vm1105_vm4 = vweird.f32 %v1083_v51 }
 0x3a0   :  { %v1097_v13 = vor.u32 1.1754944e-38, %v1096_v23  ;;  %vm1095_vm7 = vcmp.eq.f32.partialorder %v1094_v6, 8.507059e+37 }
 0x3a1   :  { %v1112_v63 = vor.u32 1.1754944e-38, %v1111_v4  ;;  %vm1110_vm8 = vcmp.eq.f32.partialorder %v1109_v34, 8.507059e+37 }
 0x3a2   :  { %v3786_v56 = vpop.eup %3785 }
 0x3a3   :  { %v1084_v12 = vadd.f32 1.0, %v3786_v56 }
 0x3a4   :  { %v3788_v49 = vpop.eup %3787 }
 0x3a5   :  { %v3790_v57 = vpop.eup %3789  ;;  %v1086_v46 = vmul.f32 %v3788_v49, %v1082_v21  ;;  %3791 = vrcp.f32 %v1084_v12  ;;  %vm1091_vm1 = vweird.f32 %v3788_v49  ;;  %v1126_v23 = vand.u32 2147483648, %v1084_v12 }
 0x3a6   :  { %v1101_v25 = vmul.f32 %v3790_v57, %v1083_v51  ;;  %3793 = vtanh.f32 %v1072_v48  ;;  %vm1106_vm2 = vweird.f32 %v3790_v57  ;;  %vm1092_vm5 = vmor %vm1090_vm3, %vm1091_vm1  ;;  %vm1120_vm10 = vweird.f32 %v1084_v12 }
 0x3a7   :  { %v1087_v29 = vsub.f32 1.0, %v1086_v46  ;;  %vm1107_vm6 = vmor %vm1105_vm4, %vm1106_vm2  ;;  %v1127_v6 = vor.u32 1.1754944e-38, %v1126_v23 }
 0x3a8   :  { %v1102_v11 = vsub.f32 1.0, %v1101_v25 }
 0x3a9   :  { %v1088_v14 = vmul.f32 %v3788_v49, %v1087_v29 }
 0x3aa   :  { %v1103_v40 = vmul.f32 %v3790_v57, %v1102_v11 }
 0x3ab   :  { %v3792_v5 = vpop.eup %3791  ;;  %v1089_v37 = vadd.f32 %v3788_v49, %v1088_v14 }
 0x3ac   :  { %v1116_v10 = vmul.f32 %v3792_v5, %v1084_v12  ;;  %v1104_v59 = vadd.f32 %v3790_v57, %v1103_v40  ;;  %v3794_v8 = vpop.eup %3793  ;;  %vm1121_vm9 = vweird.f32 %v3792_v5 }
 0x3ad   :  { %v1093_v56 = vsel %vm1092_vm5, %v3788_v49, %v1089_v37  ;;  %v1124_v49 = vand.u32 2147483647, %v1084_v12  ;;  %vm1122_vm11 = vmor %vm1120_vm10, %vm1121_vm9 }
 0x3ae   :  { %v1117_v48 = vsub.f32 1.0, %v1116_v10  ;;  %v1098_v46 = vsel %vm1095_vm7, %v1097_v13, %v1093_v56  ;;  %v1108_v25 = vsel %vm1107_vm6, %v3790_v57, %v1104_v59 }
 0x3af   :  { %v1113_v29 = vsel %vm1110_vm8, %v1112_v63, %v1108_v25  ;;  %v1132_v11 = vmul.f32 %v3794_v8, %v1098_v46  ;;  %vm1125_vm12 = vcmp.eq.f32.partialorder %v1124_v49, 8.507059e+37 }
 0x3b0   :  { %v1118_v31 = vmul.f32 %v3792_v5, %v1117_v48  ;;  %v1131_v14 = vmul.f32 %v1113_v29, %v4574_v62 }
 0x3b2   :  { %v4618_v21 = vadd.f32 %v1132_v11, %v1131_v14  ;;  %v1119_v51 = vadd.f32 %v3792_v5, %v1118_v31 }
 0x3b4   :  { %3795 = vtanh.f32 %v4618_v21  ;;  %v1123_v4 = vsel %vm1122_vm11, %v3792_v5, %v1119_v51 }
 0x3b5   :  { %v1128_v40 = vsel %vm1125_vm12, %v1127_v6, %v1123_v4 }
 0x3ba   :  { %v3796_v57 = vpop.eup %3795 }
 0x3bb   :  { %v4621_v34 = vmul.f32 %v3796_v57, %v1128_v40 }
 0x3bd   :  { %v1145_v62 = vpack.c.bf16 %v4621_v34, %v4621_v34 }
 0x3bf   :  { %1154 = vmatmul.bf16.vlgmr.msra.gmra.mxu0 %v1145_v62  ;;  %1167 = vmatmul.bf16.vlgmr.msrb.gmra.mxu1 %v1145_v62 }
 0x3c0   :  { %1180 = vmatmul.bf16.vlgmr.msra.gmra.mxu2 %v1145_v62  ;;  %1193 = vmatmul.bf16.vlgmr.msra.gmra.mxu3 %v1145_v62 }
 0x3c1   :  { %1404 = vmatpush.bf16.msra.mxu0 %v4150_v19  ;;  %1417 = vmatpush.bf16.msrb.mxu1 %v4148_v18  ;;  %v5375_v18 = vld [vmem:[#allocation20_spill] sm:$0xff] }
 0x3c2   :  { %1430 = vmatpush.bf16.msra.mxu2 %v4158_v26  ;;  %1443 = vmatpush.bf16.msra.mxu3 %v4171_v36  ;;  %v209_v19 = vadd.f32 %v5375_v18, %v4351_v2  ;;  %v5376_v26 = vld [vmem:[#allocation28_spill] sm:$0xff] }
 0x3c5   :  { %1405 = vmatpush.bf16.msra.mxu0 %v4166_v30  ;;  %1418 = vmatpush.bf16.msrb.mxu1 %v4163_v27  ;;  %v238_v27 = vadd.f32 %v5376_v26, %v4385_v47 }
 0x3c6   :  { %1431 = vmatpush.bf16.msra.mxu2 %v4169_v32  ;;  %1444 = vmatpush.bf16.msra.mxu3 %v4183_v50  ;;  %v5377_v50 = vld [vmem:[#allocation23_spill] sm:$0xff] }
 0x3c9   :  { %1406 = vmatpush.bf16.msra.mxu0 %v4178_v43  ;;  %1419 = vmatpush.bf16.msrb.mxu1 %v4175_v39 }
 0x3ca   :  { %1432 = vmatpush.bf16.msra.mxu2 %v4181_v44  ;;  %1445 = vmatpush.bf16.msra.mxu3 %v4189_v54 }
 0x3cd   :  { %1407 = vmatpush.bf16.msra.mxu0 %v4197_v58  ;;  %1420 = vmatpush.bf16.msrb.mxu1 %v4187_v53  ;;  %v267_v53 = vadd.f32 %v5377_v50, %v4369_v24  ;;  %v3675_v50 = vld [vmem:[#allocation6 + $0xec] sm:$0xf0] }
 0x3ce   :  { %1433 = vmatpush.bf16.msra.mxu2 %v4200_v60  ;;  %1446 = vmatpush.bf16.msra.mxu3 %v4208_v3 }
 0x3d1   :  { %1408 = vmatpush.bf16.msra.mxu0 %v4205_v0  ;;  %1421 = vmatpush.bf16.msrb.mxu1 %v4224_v16 }
 0x3d2   :  { %1434 = vmatpush.bf16.msra.mxu2 %v4216_v7  ;;  %1447 = vmatpush.bf16.msra.mxu3 %v4226_v17 }
 0x3d5   :  { %1409 = vmatpush.bf16.msra.mxu0 %v4221_v15  ;;  %1422 = vmatpush.bf16.msrb.mxu1 %v4232_v28 }
 0x3d6   :  { %1435 = vmatpush.bf16.msra.mxu2 %v4229_v22  ;;  %1448 = vmatpush.bf16.msra.mxu3 %v4238_v35 }
 0x3d9   :  { %1410 = vmatpush.bf16.msra.mxu0 %v4235_v33  ;;  %1423 = vmatpush.bf16.msrb.mxu1 %v4264_v61 }
 0x3da   :  { %1436 = vmatpush.bf16.msra.mxu2 %v4241_v38  ;;  %1449 = vmatpush.bf16.msra.mxu3 %v4248_v45  ;;  %v5378_v38 = vld [vmem:[#allocation24_spill] sm:$0xff] }
 0x3dd   :  { %1411 = vmatpush.bf16.msra.mxu0 %v4245_v42  ;;  %1424 = vmatpush.bf16.msrb.mxu1 %v4271_v1  ;;  %v296_v42 = vadd.f32 %v5378_v38, %v5368_v41  ;;  %v5380_v38 = vld [vmem:[#allocation31_spill] sm:$0xff] }
 0x3de   :  { %1437 = vmatpush.bf16.msra.mxu2 %v4254_v52  ;;  %1450 = vmatpush.bf16.msra.mxu3 %v4258_v55 }
 0x43c   :  { %v1155_v30 = vpop.f32.mrf.mxu0  ;;  %v1168_v32 = vpop.f32.mrf.mxu1 }
 0x43d   :  { %v1198_v36 = vadd.f32 %v1155_v30, %v209_v19  ;;  %v1199_v39 = vadd.f32 %v1168_v32, %v238_v27 }
 0x43f   :  { %v3316_v43 = vmul.f32 -1.442695, %v1198_v36  ;;  %v3317_v44 = vmul.f32 -1.442695, %v1199_v39 }
 0x441   :  { %3797 = vpow2.f32 %v3316_v43 }
 0x442   :  { %3799 = vpow2.f32 %v3317_v44  ;;  %v3439_v44 = vld [vmem:[#allocation6 + $0xe0] sm:$0xf] }
 0x443   :  { %v1181_v54 = vpop.f32.mrf.mxu2  ;;  %v1194_v58 = vpop.f32.mrf.mxu3 }
 0x444   :  { %v1200_v60 = vadd.f32 %v1181_v54, %v267_v53  ;;  %v1157_v0 = vpop.f32.mrf.mxu0  ;;  %v1170_v3 = vpop.f32.mrf.mxu1  ;;  %v1201_v55 = vadd.f32 %v1194_v58, %v296_v42  ;;  %v3673_v53 = vld [vmem:[#allocation6 + $0xe4] sm:$0xf]  ;;  %v3440_v54 = vor.u32 %v3675_v50, %v3439_v44  ;;  %v3441_v58 = vld [vmem:[#allocation6 + $0xf0] sm:$0xf0]  ;;  %v3399_v44 = vld [vmem:[#allocation6 + $0x88] sm:$0xf] }
 0x445   :  { %v3676_v0 = vld [vmem:[#allocation6 + $0xf4] sm:$0xf0]  ;;  %v3444_v3 = vor.u32 %v3673_v53, %v3441_v58  ;;  %v3662_v58 = vld [vmem:[#allocation6 + $0x8c] sm:$0xf] }
 0x446   :  { %v3318_v7 = vmul.f32 -1.442695, %v1200_v60  ;;  %v3447_v60 = vld [vmem:[#allocation6 + $0xe8] sm:$0xf]  ;;  %v3664_v50 = vld [vmem:[#allocation6 + $0x94] sm:$0xf0] }
 0x447   :  { %v3798_v15 = vpop.eup %3797 }
 0x448   :  { %v3800_v16 = vpop.eup %3799  ;;  %v1211_v17 = vadd.f32 1.0, %v3798_v15  ;;  %3801 = vpow2.f32 %v3318_v7  ;;  %v3448_v7 = vor.u32 %v3676_v0, %v3447_v60  ;;  %v3674_v15 = vld [vmem:[#allocation6 + $0xec] sm:$0xf]  ;;  %v3401_v60 = vld [vmem:[#allocation6 + $0x98] sm:$0xf0] }
 0x449   :  { %v1212_v22 = vadd.f32 1.0, %v3800_v16  ;;  %v3449_v16 = vld [vmem:[#allocation6 + $0xf8] sm:$0xf0] }
 0x44a   :  { %3803 = vrcp.f32 %v1211_v17  ;;  %v1225_v37 = vand.u32 2147483648, %v1211_v17  ;;  %v1223_v59 = vand.u32 2147483647, %v1211_v17  ;;  %vm1219_vm15 = vweird.f32 %v1211_v17 }
 0x44b   :  { %3805 = vrcp.f32 %v1212_v22  ;;  %v1183_v28 = vpop.f32.mrf.mxu2  ;;  %v1196_v33 = vpop.f32.mrf.mxu3  ;;  %v1240_v10 = vand.u32 2147483648, %v1212_v22  ;;  %v1238_v56 = vand.u32 2147483647, %v1212_v22  ;;  %vm1234_vm0 = vweird.f32 %v1212_v22 }
 0x44c   :  { %v1226_v25 = vor.u32 1.1754944e-38, %v1225_v37  ;;  %vm1224_vm3 = vcmp.eq.f32.partialorder %v1223_v59, 8.507059e+37  ;;  %v3452_v28 = vor.u32 %v3674_v15, %v3449_v16  ;;  %v5379_v33 = vld [vmem:[#allocation11_spill] sm:$0xff]  ;;  %v3670_v59 = vld [vmem:[#allocation6 + $0xcc] sm:$0xf] }
 0x44d   :  { %v1241_v11 = vor.u32 1.1754944e-38, %v1240_v10  ;;  %vm1239_vm4 = vcmp.eq.f32.partialorder %v1238_v56, 8.507059e+37  ;;  %v3407_v56 = vld [vmem:[#allocation6 + $0xa0] sm:$0xf] }
 0x44e   :  { %v3802_v35 = vpop.eup %3801 }
 0x44f   :  { %v1213_v45 = vadd.f32 1.0, %v3802_v35 }
 0x450   :  { %v3804_v52 = vpop.eup %3803 }
 0x451   :  { %v3806_v61 = vpop.eup %3805  ;;  %v1215_v1 = vmul.f32 %v3804_v52, %v1211_v17  ;;  %3807 = vrcp.f32 %v1213_v45  ;;  %vm1220_vm13 = vweird.f32 %v3804_v52  ;;  %v1255_v26 = vand.u32 2147483648, %v1213_v45 }
 0x452   :  { %v1230_v31 = vmul.f32 %v3806_v61, %v1212_v22  ;;  %3809 = vtanh.f32 %v1201_v55  ;;  %vm1235_vm14 = vweird.f32 %v3806_v61  ;;  %vm1221_vm1 = vmor %vm1219_vm15, %vm1220_vm13  ;;  %vm1249_vm6 = vweird.f32 %v1213_v45  ;;  %v3669_v55 = vld [vmem:[#allocation6 + $0xc4] sm:$0xf] }
 0x453   :  { %v1216_v12 = vsub.f32 1.0, %v1215_v1  ;;  %vm1236_vm2 = vmor %vm1234_vm0, %vm1235_vm14  ;;  %v1253_v27 = vand.u32 2147483647, %v1213_v45  ;;  %v1256_v32 = vor.u32 1.1754944e-38, %v1255_v26  ;;  %v3425_v1 = vld [vmem:[#allocation6 + $0xd0] sm:$0xf0] }
 0x454   :  { %v1231_v5 = vsub.f32 1.0, %v1230_v31  ;;  %v3431_v31 = vld [vmem:[#allocation6 + $0xc8] sm:$0xf]  ;;  %v3428_v10 = vor.u32 %v3669_v55, %v3425_v1  ;;  %v3661_v26 = vld [vmem:[#allocation6 + $0x84] sm:$0xf] }
 0x455   :  { %v1217_v13 = vmul.f32 %v3804_v52, %v1216_v12  ;;  %vm1254_vm8 = vcmp.eq.f32.partialorder %v1253_v27, 8.507059e+37  ;;  %v3672_v12 = vld [vmem:[#allocation6 + $0xd4] sm:$0xf0] }
 0x456   :  { %v1232_v63 = vmul.f32 %v3806_v61, %v1231_v5  ;;  %v5381_v27 = vld [vmem:[#allocation26_spill] sm:$0xff] }
 0x457   :  { %v3808_v8 = vpop.eup %3807  ;;  %v1218_v48 = vadd.f32 %v3804_v52, %v1217_v13  ;;  %v3432_v13 = vor.u32 %v3672_v12, %v3431_v31  ;;  %v3660_v1 = vld [vmem:[#allocation6 + $0x74] sm:$0xf0]  ;;  %v5382_v12 = vld [vmem:[#allocation27_spill] sm:$0xff] }
 0x458   :  { %v1245_v46 = vmul.f32 %v3808_v8, %v1213_v45  ;;  %v1233_v29 = vadd.f32 %v3806_v61, %v1232_v63  ;;  %v3810_v51 = vpop.eup %3809  ;;  %vm1250_vm5 = vweird.f32 %v3808_v8  ;;  %v3423_v45 = vld [vmem:[#allocation6 + $0xc0] sm:$0xf]  ;;  %v3433_v63 = vld [vmem:[#allocation6 + $0xd8] sm:$0xf0] }
 0x459   :  { %v1222_v14 = vsel %vm1221_vm1, %v3804_v52, %v1218_v48  ;;  %vm1251_vm7 = vmor %vm1249_vm6, %vm1250_vm5  ;;  %v3671_v52 = vld [vmem:[#allocation6 + $0xcc] sm:$0xf0]  ;;  %v3436_v48 = vor.u32 %v3670_v59, %v3433_v63  ;;  %v3359_v59 = vld [vmem:[#allocation6 + $0x40] sm:$0xf] }
 0x45a   :  { %v1246_v23 = vsub.f32 1.0, %v1245_v46  ;;  %v1227_v49 = vsel %vm1224_vm3, %v1226_v25, %v1222_v14  ;;  %v1237_v4 = vsel %vm1236_vm2, %v3806_v61, %v1233_v29  ;;  %v3424_v61 = vor.u32 %v3671_v52, %v3423_v45  ;;  %v3665_v25 = vld [vmem:[#allocation6 + $0xa4] sm:$0xf]  ;;  %v3409_v29 = vld [vmem:[#allocation6 + $0xb0] sm:$0xf0] }
 0x45b   :  { %v1242_v6 = vsel %vm1239_vm4, %v1241_v11, %v1237_v4  ;;  %v1261_v57 = vmul.f32 %v3810_v51, %v1227_v49  ;;  %v3415_v11 = vld [vmem:[#allocation6 + $0xa8] sm:$0xf]  ;;  %v3412_v14 = vor.u32 %v3665_v25, %v3409_v29  ;;  %v3668_v51 = vld [vmem:[#allocation6 + $0xb4] sm:$0xf0]  ;;  %v3417_v49 = vld [vmem:[#allocation6 + $0xb8] sm:$0xf0] }
 0x45c   :  { %v1247_v40 = vmul.f32 %v3808_v8, %v1246_v23  ;;  %v1260_v62 = vmul.f32 %v1242_v6, %v4618_v21  ;;  %v3666_v23 = vld [vmem:[#allocation6 + $0xac] sm:$0xf]  ;;  %v3377_v45 = vld [vmem:[#allocation6 + $0x70] sm:$0xf0] }
 0x45d   :  { %v3361_v29 = vld [vmem:[#allocation6 + $0x50] sm:$0xf0] }
 0x45e   :  { %v4666_v18 = vadd.f32 %v1261_v57, %v1260_v62  ;;  %v1248_v19 = vadd.f32 %v3808_v8, %v1247_v40  ;;  %v3416_v57 = vor.u32 %v3668_v51, %v3415_v11  ;;  %v3420_v40 = vor.u32 %v3666_v23, %v3417_v49  ;;  %v3391_v62 = vld [vmem:[#allocation6 + $0x80] sm:$0xf]  ;;  %v3367_v11 = vld [vmem:[#allocation6 + $0x48] sm:$0xf]  ;;  %v3654_v49 = vld [vmem:[#allocation6 + $0x4c] sm:$0xf] }
 0x460   :  { %3811 = vtanh.f32 %v4666_v18  ;;  %v1252_v30 = vsel %vm1251_vm7, %v3808_v8, %v1248_v19  ;;  %v3667_v8 = vld [vmem:[#allocation6 + $0xac] sm:$0xf0] }
 0x461   :  { %v1257_v39 = vsel %vm1254_vm8, %v1256_v32, %v1252_v30  ;;  %v3408_v46 = vor.u32 %v3667_v8, %v3407_v56  ;;  %v3663_v19 = vld [vmem:[#allocation6 + $0x8c] sm:$0xf0] }
 0x462   :  { %v3655_v8 = vld [vmem:[#allocation6 + $0x4c] sm:$0xf0] }
 0x463   :  { %v3360_v25 = vor.u32 %v3655_v8, %v3359_v59  ;;  %v3337_v59 = vld [vmem:[#allocation6 + $0x18] sm:$0xf0] }
 0x466   :  { %v3812_v36 = vpop.eup %3811 }
 0x467   :  { %v4669_v43 = vmul.f32 %v3812_v36, %v1257_v39  ;;  %v3392_v39 = vor.u32 %v3663_v19, %v3391_v62  ;;  %v3651_v19 = vld [vmem:[#allocation6 + $0x2c] sm:$0xf0] }
 0x469   :  { %v1274_v21 = vpack.c.bf16 %v4669_v43, %v4669_v43 }
 0x46b   :  { %1283 = vmatmul.bf16.vlgmr.msrb.gmra.mxu0 %v1274_v21  ;;  %1296 = vmatmul.bf16.vlgmr.msra.gmra.mxu1 %v1274_v21 }
 0x46c   :  { %1309 = vmatmul.bf16.vlgmr.msrb.gmra.mxu2 %v1274_v21  ;;  %1322 = vmatmul.bf16.vlgmr.msrb.gmra.mxu3 %v1274_v21  ;;  %v3393_v21 = vld [vmem:[#allocation6 + $0x90] sm:$0xf0] }
 0x46d   :  { %1771 = vmatpush.bf16.msrb.mxu0 %v3440_v54  ;;  %1800 = vmatpush.bf16.msra.mxu1 %v3444_v3  ;;  %v3396_v53 = vor.u32 %v3661_v26, %v3393_v21  ;;  %v3400_v54 = vor.u32 %v3664_v50, %v3399_v44 }
 0x46e   :  { %1829 = vmatpush.bf16.msrb.mxu2 %v3448_v7  ;;  %1858 = vmatpush.bf16.msrb.mxu3 %v3452_v28  ;;  %v3404_v7 = vor.u32 %v3662_v58, %v3401_v60 }
 0x471   :  { %1772 = vmatpush.bf16.msrb.mxu0 %v3424_v61  ;;  %1801 = vmatpush.bf16.msra.mxu1 %v3428_v10  ;;  %v3383_v61 = vld [vmem:[#allocation6 + $0x68] sm:$0xf]  ;;  %v3658_v10 = vld [vmem:[#allocation6 + $0x6c] sm:$0xf] }
 0x472   :  { %1830 = vmatpush.bf16.msrb.mxu2 %v3432_v13  ;;  %1859 = vmatpush.bf16.msrb.mxu3 %v3436_v48  ;;  %v3385_v13 = vld [vmem:[#allocation6 + $0x78] sm:$0xf0]  ;;  %v3653_v48 = vld [vmem:[#allocation6 + $0x44] sm:$0xf] }
 0x473   :  { %v3388_v56 = vor.u32 %v3658_v10, %v3385_v13  ;;  %v3646_v13 = vld [vmem:[#allocation6 + $0xc] sm:$0xf] }
 0x475   :  { %1773 = vmatpush.bf16.msrb.mxu0 %v3408_v46  ;;  %1802 = vmatpush.bf16.msra.mxu1 %v3412_v14  ;;  %v3656_v14 = vld [vmem:[#allocation6 + $0x54] sm:$0xf0] }
 0x476   :  { %1831 = vmatpush.bf16.msrb.mxu2 %v3416_v57  ;;  %1860 = vmatpush.bf16.msrb.mxu3 %v3420_v40 }
 0x479   :  { %1774 = vmatpush.bf16.msrb.mxu0 %v3392_v39  ;;  %1803 = vmatpush.bf16.msra.mxu1 %v3396_v53  ;;  %v3345_v39 = vld [vmem:[#allocation6 + $0x30] sm:$0xf0] }
 0x47a   :  { %1832 = vmatpush.bf16.msrb.mxu2 %v3400_v54  ;;  %1861 = vmatpush.bf16.msrb.mxu3 %v3404_v7  ;;  %v3351_v54 = vld [vmem:[#allocation6 + $0x28] sm:$0xf]  ;;  %v3353_v7 = vld [vmem:[#allocation6 + $0x38] sm:$0xf0] }
 0x47e   :  { %1862 = vmatpush.bf16.msrb.mxu3 %v3388_v56 }
 0x4e8   :  { %v1284_v17 = vpop.f32.mrf.mxu0  ;;  %v1297_v22 = vpop.f32.mrf.mxu1 }
 0x4e9   :  { %v1327_v35 = vadd.f32 %v1284_v17, %v5379_v33  ;;  %v1328_v42 = vadd.f32 %v1297_v22, %v5380_v38  ;;  %v3375_v22 = vld [vmem:[#allocation6 + $0x60] sm:$0xf] }
 0x4eb   :  { %v3319_v5 = vmul.f32 -1.442695, %v1327_v35  ;;  %v3320_v37 = vmul.f32 -1.442695, %v1328_v42  ;;  %v3659_v35 = vld [vmem:[#allocation6 + $0x6c] sm:$0xf0] }
 0x4ec   :  { %v3376_v38 = vor.u32 %v3659_v35, %v3375_v22  ;;  %v3657_v42 = vld [vmem:[#allocation6 + $0x64] sm:$0xf]  ;;  %v3647_v35 = vld [vmem:[#allocation6 + $0xc] sm:$0xf0] }
 0x4ed   :  { %3813 = vpow2.f32 %v3319_v5  ;;  %v3380_v55 = vor.u32 %v3657_v42, %v3377_v45 }
 0x4ee   :  { %3815 = vpow2.f32 %v3320_v37  ;;  %1775 = vmatpush.bf16.msrb.mxu0 %v3376_v38  ;;  %v3384_v37 = vor.u32 %v3660_v1, %v3383_v61  ;;  %v3645_v38 = vld [vmem:[#allocation6 + $0x4] sm:$0xf]  ;;  %v3335_v61 = vld [vmem:[#allocation6 + $0x8] sm:$0xf]  ;;  %v3648_v1 = vld [vmem:[#allocation6 + $0x14] sm:$0xf0] }
 0x4ef   :  { %v1310_v4 = vpop.f32.mrf.mxu2  ;;  %v1323_v6 = vpop.f32.mrf.mxu3  ;;  %1804 = vmatpush.bf16.msra.mxu1 %v3380_v55  ;;  %v3329_v55 = vld [vmem:[#allocation6 + $0x10] sm:$0xf0]  ;;  %v3336_v8 = vor.u32 %v3648_v1, %v3335_v61  ;;  %v3559_v61 = vld [vmem:[#allocation8 + $0xc8] sm:$0xf]  ;;  %v3704_v1 = vld [vmem:[#allocation8 + $0xd4] sm:$0xf0] }
 0x4f0   :  { %v1329_v30 = vadd.f32 %v1310_v4, %v5381_v27  ;;  %v1286_v32 = vpop.f32.mrf.mxu0  ;;  %v1299_v36 = vpop.f32.mrf.mxu1  ;;  %v1330_v5 = vadd.f32 %v1323_v6, %v5382_v12  ;;  %1833 = vmatpush.bf16.msrb.mxu2 %v3384_v37  ;;  %v3369_v4 = vld [vmem:[#allocation6 + $0x58] sm:$0xf0]  ;;  %v3343_v6 = vld [vmem:[#allocation6 + $0x20] sm:$0xf]  ;;  %v3364_v27 = vor.u32 %v3653_v48, %v3361_v29  ;;  %v3332_v56 = vor.u32 %v3645_v38, %v3329_v55  ;;  %v3553_v55 = vld [vmem:[#allocation8 + $0xd0] sm:$0xf0] }
 0x4f1   :  { %v3372_v32 = vor.u32 %v3654_v49, %v3369_v4  ;;  %v3649_v36 = vld [vmem:[#allocation6 + $0x24] sm:$0xf]  ;;  %v3344_v53 = vor.u32 %v3651_v19, %v3343_v6  ;;  %v3551_v38 = vld [vmem:[#allocation8 + $0xc0] sm:$0xf] }
 0x4f2   :  { %v3321_v0 = vmul.f32 -1.442695, %v1329_v30  ;;  %1776 = vmatpush.bf16.msrb.mxu0 %v3360_v25  ;;  %v3368_v30 = vor.u32 %v3656_v14, %v3367_v11  ;;  %v3348_v60 = vor.u32 %v3649_v36, %v3345_v39  ;;  %v3340_v11 = vor.u32 %v3646_v13, %v3337_v59  ;;  %v3705_v36 = vld [vmem:[#allocation8 + $0xe4] sm:$0xf] }
 0x4f3   :  { %v3814_v3 = vpop.eup %3813  ;;  %1805 = vmatpush.bf16.msra.mxu1 %v3364_v27  ;;  %1863 = vmatpush.bf16.msrb.mxu3 %v3372_v32  ;;  %v5385_v27 = vld [vmem:[#allocation33_spill] sm:$0xff]  ;;  %v3697_v13 = vld [vmem:[#allocation8 + $0xa4] sm:$0xf] }
 0x4f4   :  { %v3816_v15 = vpop.eup %3815  ;;  %v4676_v16 = vadd.f32 1.0, %v3814_v3  ;;  %3817 = vpow2.f32 %v3321_v0  ;;  %1834 = vmatpush.bf16.msrb.mxu2 %v3368_v30  ;;  %v3652_v0 = vld [vmem:[#allocation6 + $0x34] sm:$0xf0]  ;;  %v3650_v3 = vld [vmem:[#allocation6 + $0x2c] sm:$0xf]  ;;  %v1598_v30 = vpack.c.bf16 %v4485_v20, %v5385_v27  ;;  %v1600_v20 = vpack.c.bf16 %v4669_v43, %v4621_v34 }
 0x4f5   :  { %v4678_v17 = vadd.f32 1.0, %v3816_v15  ;;  %v3352_v22 = vor.u32 %v3652_v0, %v3351_v54  ;;  %v3707_v32 = vld [vmem:[#allocation8 + $0xec] sm:$0xf0]  ;;  %v3575_v54 = vld [vmem:[#allocation8 + $0xe8] sm:$0xf] }
 0x4f6   :  { %3819 = vrcp.f32 %v4676_v16  ;;  %v1352_v52 = vand.u32 2147483647, %v4676_v16  ;;  %v1354_v62 = vand.u32 2147483648, %v4676_v16  ;;  %1777 = vmatpush.bf16.msrb.mxu0 %v3344_v53  ;;  %vm1348_vm13 = vweird.f32 %v4676_v16  ;;  %v3706_v0 = vld [vmem:[#allocation8 + $0xec] sm:$0xf] }
 0x4f7   :  { %3821 = vrcp.f32 %v4678_v17  ;;  %v1312_v28 = vpop.f32.mrf.mxu2  ;;  %v1325_v33 = vpop.f32.mrf.mxu3  ;;  %v1369_v40 = vand.u32 2147483648, %v4678_v17  ;;  %v1367_v50 = vand.u32 2147483647, %v4678_v17  ;;  %vm1363_vm12 = vweird.f32 %v4678_v17  ;;  %1806 = vmatpush.bf16.msra.mxu1 %v3348_v60  ;;  %v3696_v27 = vld [vmem:[#allocation8 + $0x94] sm:$0xf0] }
 0x4f8   :  { %vm4697_vm9 = vcmp.eq.f32.partialorder %v1352_v52, 8.507059e+37  ;;  %v3356_v28 = vor.u32 %v3650_v3, %v3353_v7  ;;  %v3327_v33 = vld [vmem:[#allocation6] sm:$0xf]  ;;  %v1355_v37 = vor.u32 1.1754944e-38, %v1354_v62  ;;  %1835 = vmatpush.bf16.msrb.mxu2 %v3352_v22  ;;  %v3577_v3 = vld [vmem:[#allocation8 + $0xf8] sm:$0xf0] }
 0x4f9   :  { %v3328_v52 = vor.u32 %v3647_v35, %v3327_v33  ;;  %v1370_v12 = vor.u32 1.1754944e-38, %v1369_v40  ;;  %vm1368_vm0 = vcmp.eq.f32.partialorder %v1367_v50, 8.507059e+37  ;;  %v5386_v50 = vld [vmem:[#allocation15_spill] sm:$0xff]  ;;  %v5387_v7 = vld [vmem:[#allocation12_spill] sm:$0xff] }
 0x4fa   :  { %v3818_v31 = vpop.eup %3817  ;;  %1864 = vmatpush.bf16.msrb.mxu3 %v3356_v28  ;;  %v1599_v53 = vpack.c.bf16 %v5386_v50, %v4529_v9  ;;  %v4747_v9 = vor.u32 %v3706_v0, %v3577_v3  ;;  %v5388_v22 = vld [vmem:[#allocation32_spill] sm:$0xff]  ;;  %v3691_v50 = vld [vmem:[#allocation8 + $0x6c] sm:$0xf0] }
 0x4fb   :  { %v4684_v63 = vadd.f32 1.0, %v3818_v31  ;;  %1778 = vmatpush.bf16.msrb.mxu0 %v3328_v52  ;;  %1807 = vmatpush.bf16.msra.mxu1 %v3332_v56  ;;  %v243_v34 = vadd.f32 %v5388_v22, %v4385_v47  ;;  %v3702_v47 = vld [vmem:[#allocation8 + $0xcc] sm:$0xf]  ;;  %v3543_v56 = vld [vmem:[#allocation8 + $0xa8] sm:$0xf] }
 0x4fc   :  { %v4686_v46 = vpop.eup %3819  ;;  %1836 = vmatpush.bf16.msrb.mxu2 %v3336_v8  ;;  %v3700_v8 = vld [vmem:[#allocation8 + $0xb4] sm:$0xf0]  ;;  %v3511_v0 = vld [vmem:[#allocation8 + $0x68] sm:$0xf]  ;;  %v3529_v22 = vld [vmem:[#allocation8 + $0x98] sm:$0xf0] }
 0x4fd   :  { %v4688_v51 = vpop.eup %3821  ;;  %v1344_v23 = vmul.f32 %v4686_v46, %v4676_v16  ;;  %3823 = vrcp.f32 %v4684_v63  ;;  %vm1349_vm10 = vweird.f32 %v4686_v46  ;;  %v1384_v6 = vand.u32 2147483648, %v4684_v63 }
 0x4fe   :  { %v1359_v57 = vmul.f32 %v4688_v51, %v4678_v17  ;;  %3825 = vtanh.f32 %v1330_v5  ;;  %vm1364_vm11 = vweird.f32 %v4688_v51  ;;  %vm1350_vm14 = vmor %vm1348_vm13, %vm1349_vm10  ;;  %1865 = vmatpush.bf16.msrb.mxu3 %v3340_v11  ;;  %vm1378_vm2 = vweird.f32 %v4684_v63 }
 0x4ff   :  { %v1345_v26 = vsub.f32 1.0, %v1344_v23  ;;  %vm1365_vm15 = vmor %vm1363_vm12, %vm1364_vm11  ;;  %v1385_v40 = vor.u32 1.1754944e-38, %v1384_v6  ;;  %v4769_v11 = vor.u32 %v3700_v8, %v3543_v56 }
 0x500   :  { %v1360_v21 = vsub.f32 1.0, %v1359_v57 }
 0x501   :  { %v1346_v58 = vmul.f32 %v4686_v46, %v1345_v26 }
 0x502   :  { %v1361_v15 = vmul.f32 %v4688_v51, %v1360_v21  ;;  %v3569_v21 = vld [vmem:[#allocation8 + $0xf0] sm:$0xf0] }
 0x503   :  { %v3824_v42 = vpop.eup %3823  ;;  %v1347_v45 = vadd.f32 %v4686_v46, %v1346_v58  ;;  %v4736_v44 = vor.u32 %v3705_v36, %v3569_v21  ;;  %v3708_v58 = vld [vmem:[#allocation8 + $0xf4] sm:$0xf0]  ;;  %v3503_v21 = vld [vmem:[#allocation8 + $0x60] sm:$0xf] }
 0x504   :  { %v3826_v31 = vpop.eup %3825  ;;  %v1374_v5 = vmul.f32 %v3824_v42, %v4684_v63  ;;  %v1362_v10 = vadd.f32 %v4688_v51, %v1361_v15  ;;  %vm1379_vm1 = vweird.f32 %v3824_v42  ;;  %v4744_v60 = vor.u32 %v3708_v58, %v3575_v54  ;;  %v3505_v58 = vld [vmem:[#allocation8 + $0x70] sm:$0xf0] }
 0x505   :  { %v1351_v16 = vsel %vm1350_vm14, %v4686_v46, %v1347_v45  ;;  %vm1380_vm3 = vmor %vm1378_vm2, %vm1379_vm1  ;;  %v214_v15 = vadd.f32 %v5387_v7, %v4351_v2  ;;  %v3701_v45 = vld [vmem:[#allocation8 + $0xc4] sm:$0xf]  ;;  %v3692_v7 = vld [vmem:[#allocation8 + $0x74] sm:$0xf0] }
 0x506   :  { %v1375_v48 = vsub.f32 1.0, %v1374_v5  ;;  %v1356_v25 = vsel %vm4697_vm9, %v1355_v37, %v1351_v16  ;;  %v1366_v29 = vsel %vm1365_vm15, %v4688_v51, %v1362_v10  ;;  %v1382_v51 = vand.u32 2147483647, %v4684_v63  ;;  %v3567_v63 = vld [vmem:[#allocation8 + $0xe0] sm:$0xf] }
 0x507   :  { %v1371_v14 = vsel %vm1368_vm0, %v1370_v12, %v1366_v29  ;;  %v1390_v23 = vmul.f32 %v3826_v31, %v1356_v25  ;;  %v4734_v39 = vor.u32 %v3707_v32, %v3567_v63  ;;  %v4756_v2 = vor.u32 %v3701_v45, %v3553_v55  ;;  %v3535_v37 = vld [vmem:[#allocation8 + $0xa0] sm:$0xf]  ;;  %v3699_v10 = vld [vmem:[#allocation8 + $0xac] sm:$0xf0]  ;;  %v3537_v16 = vld [vmem:[#allocation8 + $0xb0] sm:$0xf0] }
 0x508   :  { %v1376_v17 = vmul.f32 %v3824_v42, %v1375_v48  ;;  %v1389_v49 = vmul.f32 %v1371_v14, %v4666_v18  ;;  %vm1383_vm4 = vcmp.eq.f32.partialorder %v1382_v51, 8.507059e+37  ;;  %v4758_v5 = vor.u32 %v3704_v1, %v3559_v61  ;;  %v5389_v48 = vld [vmem:[#allocation29_spill] sm:$0xff]  ;;  %v3561_v14 = vld [vmem:[#allocation8 + $0xd8] sm:$0xf0]  ;;  %v3693_v51 = vld [vmem:[#allocation8 + $0x84] sm:$0xf] }
 0x509   :  { %v4763_v59 = vor.u32 %v3699_v10, %v3535_v37  ;;  %v272_v25 = vadd.f32 %v5389_v48, %v4369_v24  ;;  %v4767_v29 = vor.u32 %v3697_v13, %v3537_v16  ;;  %v4773_v6 = vor.u32 %v3702_v47, %v3561_v14  ;;  %v3545_v63 = vld [vmem:[#allocation8 + $0xb8] sm:$0xf0]  ;;  %v3687_v45 = vld [vmem:[#allocation8 + $0x4c] sm:$0xf0]  ;;  %v3685_v61 = vld [vmem:[#allocation8 + $0x44] sm:$0xf] }
 0x50a   :  { %v4722_v46 = vadd.f32 %v1390_v23, %v1389_v49  ;;  %v1377_v4 = vadd.f32 %v3824_v42, %v1376_v17  ;;  %v3519_v23 = vld [vmem:[#allocation8 + $0x80] sm:$0xf]  ;;  %v3695_v17 = vld [vmem:[#allocation8 + $0x8c] sm:$0xf0]  ;;  %v3489_v1 = vld [vmem:[#allocation8 + $0x50] sm:$0xf0] }
 0x50b   :  { %v4776_v24 = vor.u32 %v3695_v17, %v3519_v23  ;;  %v3688_v37 = vld [vmem:[#allocation8 + $0x54] sm:$0xf0]  ;;  %v3690_v13 = vld [vmem:[#allocation8 + $0x6c] sm:$0xf]  ;;  %v3513_v16 = vld [vmem:[#allocation8 + $0x78] sm:$0xf0]  ;;  %v4810_v56 = vor.u32 %v3685_v61, %v3489_v1 }
 0x50c   :  { %3827 = vtanh.f32 %v4722_v46  ;;  %v1381_v57 = vsel %vm1380_vm3, %v3824_v42, %v1377_v4  ;;  %v3703_v42 = vld [vmem:[#allocation8 + $0xcc] sm:$0xf0]  ;;  %v3471_v48 = vld [vmem:[#allocation8 + $0x20] sm:$0xf]  ;;  %v5390_v23 = vld [vmem:[#allocation30_spill] sm:$0xff] }
 0x50d   :  { %v1386_v62 = vsel %vm1383_vm4, %v1385_v40, %v1381_v57  ;;  %v4754_v52 = vor.u32 %v3703_v42, %v3551_v38  ;;  %v3521_v57 = vld [vmem:[#allocation8 + $0x90] sm:$0xf0]  ;;  %v3527_v40 = vld [vmem:[#allocation8 + $0x88] sm:$0xf]  ;;  %v4798_v38 = vor.u32 %v3692_v7, %v3511_v0  ;;  %v3487_v42 = vld [vmem:[#allocation8 + $0x40] sm:$0xf]  ;;  %v301_v17 = vadd.f32 %v5390_v23, %v5368_v41 }
 0x50e   :  { %v4780_v32 = vor.u32 %v3693_v51, %v3521_v57  ;;  %v4782_v36 = vor.u32 %v3696_v27, %v3527_v40  ;;  %v4806_v10 = vor.u32 %v3687_v45, %v3487_v42  ;;  %v3681_v51 = vld [vmem:[#allocation8 + $0x24] sm:$0xf]  ;;  %v3473_v57 = vld [vmem:[#allocation8 + $0x30] sm:$0xf0]  ;;  %v3479_v40 = vld [vmem:[#allocation8 + $0x28] sm:$0xf] }
 0x50f   :  { %v3497_v41 = vld [vmem:[#allocation8 + $0x58] sm:$0xf0]  ;;  %v3455_v45 = vld [vmem:[#allocation8] sm:$0xf]  ;;  %v3679_v61 = vld [vmem:[#allocation8 + $0xc] sm:$0xf0] }
 0x512   :  { %v3828_v18 = vpop.eup %3827 }
 0x513   :  { %v4728_v19 = vmul.f32 %v3828_v18, %v1386_v62 }
 0x515   :  { %v1403_v26 = vpack.c.bf16 %v4728_v19, %v4728_v19 }
 0x517   :  { %1412 = vmatmul.bf16.vlgmr.msra.gmra.mxu0 %v1403_v26  ;;  %1425 = vmatmul.bf16.vlgmr.msrb.gmra.mxu1 %v1403_v26 }
 0x518   :  { %1438 = vmatmul.bf16.vlgmr.msra.gmra.mxu2 %v1403_v26  ;;  %1451 = vmatmul.bf16.vlgmr.msra.gmra.mxu3 %v1403_v26 }
 0x519   :  { %2083 = vmatpush.bf16.msra.mxu0 %v4734_v39  ;;  %2096 = vmatpush.bf16.msrb.mxu1 %v4736_v44 }
 0x51a   :  { %2109 = vmatpush.bf16.msra.mxu2 %v4744_v60  ;;  %2122 = vmatpush.bf16.msra.mxu3 %v4747_v9 }
 0x51d   :  { %2084 = vmatpush.bf16.msra.mxu0 %v4754_v52  ;;  %2097 = vmatpush.bf16.msrb.mxu1 %v4756_v2 }
 0x51e   :  { %2110 = vmatpush.bf16.msra.mxu2 %v4758_v5  ;;  %2123 = vmatpush.bf16.msra.mxu3 %v4773_v6 }
 0x521   :  { %2085 = vmatpush.bf16.msra.mxu0 %v4763_v59  ;;  %2098 = vmatpush.bf16.msrb.mxu1 %v4767_v29 }
 0x522   :  { %2111 = vmatpush.bf16.msra.mxu2 %v4769_v11 }
 0x525   :  { %2086 = vmatpush.bf16.msra.mxu0 %v4776_v24  ;;  %2099 = vmatpush.bf16.msrb.mxu1 %v4780_v32 }
 0x526   :  { %2112 = vmatpush.bf16.msra.mxu2 %v4782_v36 }
 0x527   :  { %1779 = vmatmul.bf16.vlgmr.msrb.gmra.mxu0 %v1598_v30  ;;  %1808 = vmatmul.bf16.vlgmr.msra.gmra.mxu1 %v1598_v30 }
 0x528   :  { %1837 = vmatmul.bf16.vlgmr.msrb.gmra.mxu2 %v1598_v30  ;;  %1866 = vmatmul.bf16.vlgmr.msrb.gmra.mxu3 %v1598_v30  ;;  %v3698_v30 = vld [vmem:[#allocation8 + $0xac] sm:$0xf] }
 0x529   :  { %v4785_v54 = vor.u32 %v3698_v30, %v3545_v63  ;;  %v3686_v63 = vld [vmem:[#allocation8 + $0x4c] sm:$0xf] }
 0x52a   :  { %2113 = vmatpush.bf16.msra.mxu2 %v4798_v38  ;;  %v4843_v7 = vor.u32 %v3686_v63, %v3497_v41 }
 0x52b   :  { %2124 = vmatpush.bf16.msra.mxu3 %v4785_v54 }
 0x537   :  { %1784 = vmatmul.bf16.gmra.mxu0 %v1599_v53  ;;  %1813 = vmatmul.bf16.gmra.mxu1 %v1599_v53 }
 0x538   :  { %1842 = vmatmul.bf16.gmra.mxu2 %v1599_v53  ;;  %1871 = vmatmul.bf16.gmra.mxu3 %v1599_v53  ;;  %v3689_v53 = vld [vmem:[#allocation8 + $0x64] sm:$0xf] }
 0x547   :  { %1789 = vmatmul.bf16.gmra.mxu0 %v1600_v20  ;;  %1818 = vmatmul.bf16.gmra.mxu1 %v1600_v20 }
 0x548   :  { %1847 = vmatmul.bf16.gmra.mxu2 %v1600_v20  ;;  %1876 = vmatmul.bf16.gmra.mxu3 %v1600_v20 }
 0x594   :  { %v1413_v43 = vpop.f32.mrf.mxu0  ;;  %v1426_v28 = vpop.f32.mrf.mxu1 }
 0x595   :  { %v1456_v33 = vadd.f32 %v1413_v43, %v214_v15  ;;  %v1457_v35 = vadd.f32 %v1426_v28, %v243_v34  ;;  %v3694_v15 = vld [vmem:[#allocation8 + $0x8c] sm:$0xf]  ;;  %v4790_v28 = vor.u32 %v3691_v50, %v3503_v21 }
 0x596   :  { %v4802_v55 = vor.u32 %v3694_v15, %v3529_v22  ;;  %v3682_v15 = vld [vmem:[#allocation8 + $0x2c] sm:$0xf]  ;;  %v3481_v22 = vld [vmem:[#allocation8 + $0x38] sm:$0xf0] }
 0x597   :  { %v3322_v31 = vmul.f32 -1.442695, %v1456_v33  ;;  %v3323_v12 = vmul.f32 -1.442695, %v1457_v35  ;;  %v4796_v35 = vor.u32 %v3689_v53, %v3505_v58  ;;  %2087 = vmatpush.bf16.msra.mxu0 %v4790_v28  ;;  %v4834_v53 = vor.u32 %v3681_v51, %v3473_v57  ;;  %v3678_v57 = vld [vmem:[#allocation8 + $0xc] sm:$0xf] }
 0x598   :  { %2125 = vmatpush.bf16.msra.mxu3 %v4802_v55 }
 0x599   :  { %3829 = vpow2.f32 %v3322_v31  ;;  %v3495_v31 = vld [vmem:[#allocation8 + $0x48] sm:$0xf]  ;;  %2100 = vmatpush.bf16.msrb.mxu1 %v4796_v35 }
 0x59a   :  { %3831 = vpow2.f32 %v3323_v12  ;;  %v4812_v8 = vor.u32 %v3688_v37, %v3495_v31 }
 0x59b   :  { %v1439_v49 = vpop.f32.mrf.mxu2  ;;  %v4771_v4 = vpop.f32.mrf.mxu3  ;;  %2088 = vmatpush.bf16.msra.mxu0 %v4806_v10 }
 0x59c   :  { %v1458_v18 = vadd.f32 %v1439_v49, %v272_v25  ;;  %v1415_v62 = vpop.f32.mrf.mxu0  ;;  %v1428_v26 = vpop.f32.mrf.mxu1  ;;  %v3683_v25 = vld [vmem:[#allocation8 + $0x2c] sm:$0xf0]  ;;  %v4817_v49 = vor.u32 %v3690_v13, %v3513_v16  ;;  %v1459_v27 = vadd.f32 %v4771_v4, %v301_v17  ;;  %2114 = vmatpush.bf16.msra.mxu2 %v4812_v8  ;;  %v4855_v13 = vor.u32 %v3679_v61, %v3455_v45 }
 0x59d   :  { %v3684_v62 = vld [vmem:[#allocation8 + $0x34] sm:$0xf0]  ;;  %v4825_v30 = vor.u32 %v3683_v25, %v3471_v48  ;;  %2101 = vmatpush.bf16.msrb.mxu1 %v4810_v56  ;;  %v4859_v48 = vor.u32 %v3682_v15, %v3481_v22  ;;  %v3463_v25 = vld [vmem:[#allocation8 + $0x8] sm:$0xf] }
 0x59e   :  { %v3324_v20 = vmul.f32 -1.442695, %v1458_v18  ;;  %v4836_v4 = vor.u32 %v3684_v62, %v3479_v40  ;;  %2126 = vmatpush.bf16.msra.mxu3 %v4817_v49  ;;  %v3465_v40 = vld [vmem:[#allocation8 + $0x18] sm:$0xf0] }
 0x59f   :  { %v3830_v3 = vpop.eup %3829  ;;  %2089 = vmatpush.bf16.msra.mxu0 %v4825_v30 }
 0x5a0   :  { %v3832_v34 = vpop.eup %3831  ;;  %v4787_v43 = vadd.f32 1.0, %v3830_v3  ;;  %3833 = vpow2.f32 %v3324_v20  ;;  %2115 = vmatpush.bf16.msra.mxu2 %v4836_v4 }
 0x5a1   :  { %v4792_v33 = vadd.f32 1.0, %v3832_v34  ;;  %2102 = vmatpush.bf16.msrb.mxu1 %v4834_v53 }
 0x5a2   :  { %3835 = vrcp.f32 %v4787_v43  ;;  %v1481_v58 = vand.u32 2147483647, %v4787_v43  ;;  %v1483_v3 = vand.u32 2147483648, %v4787_v43  ;;  %2127 = vmatpush.bf16.msra.mxu3 %v4843_v7  ;;  %vm1477_vm7 = vweird.f32 %v4787_v43 }
 0x5a3   :  { %3837 = vrcp.f32 %v4792_v33  ;;  %v1441_v12 = vpop.f32.mrf.mxu2  ;;  %v1454_v47 = vpop.f32.mrf.mxu3  ;;  %v1498_v42 = vand.u32 2147483648, %v4792_v33  ;;  %v1496_v31 = vand.u32 2147483647, %v4792_v33  ;;  %vm1492_vm8 = vweird.f32 %v4792_v33  ;;  %2090 = vmatpush.bf16.msra.mxu0 %v4855_v13 }
 0x5a4   :  { %v3677_v12 = vld [vmem:[#allocation8 + $0x4] sm:$0xf]  ;;  %v3457_v47 = vld [vmem:[#allocation8 + $0x10] sm:$0xf0]  ;;  %vm1482_vm11 = vcmp.eq.f32.partialorder %v1481_v58, 8.507059e+37 }
 0x5a5   :  { %v4857_v16 = vor.u32 %v3677_v12, %v3457_v47  ;;  %vm1497_vm12 = vcmp.eq.f32.partialorder %v1496_v31, 8.507059e+37  ;;  %v1780_v47 = vpop.f32.mrf.mxu0 }
 0x5a6   :  { %v3834_v14 = vpop.eup %3833  ;;  %2128 = vmatpush.bf16.msra.mxu3 %v4859_v48 }
 0x5a7   :  { %v4819_v18 = vadd.f32 1.0, %v3834_v14  ;;  %v3680_v14 = vld [vmem:[#allocation8 + $0x14] sm:$0xf0]  ;;  %2103 = vmatpush.bf16.msrb.mxu1 %v4857_v16  ;;  %2207 = vmatpush.bf16.msrb.mxu0 %v4734_v39 }
 0x5a8   :  { %v4821_v26 = vpop.eup %3835  ;;  %v4863_v51 = vor.u32 %v3680_v14, %v3463_v25 }
 0x5a9   :  { %v4827_v21 = vpop.eup %3837  ;;  %v1473_v50 = vmul.f32 %v4821_v26, %v4787_v43  ;;  %3839 = vrcp.f32 %v4819_v18  ;;  %vm1478_vm6 = vweird.f32 %v4821_v26  ;;  %v1499_v43 = vor.u32 1.1754944e-38, %v1498_v42 }
 0x5aa   :  { %v1488_v20 = vmul.f32 %v4827_v21, %v4792_v33  ;;  %3841 = vtanh.f32 %v1459_v27  ;;  %vm1493_vm5 = vweird.f32 %v4827_v21  ;;  %vm1479_vm9 = vmor %vm1477_vm7, %vm1478_vm6  ;;  %v1484_v27 = vor.u32 1.1754944e-38, %v1483_v3  ;;  %2116 = vmatpush.bf16.msra.mxu2 %v4863_v51 }
 0x5ab   :  { %v1474_v0 = vsub.f32 1.0, %v1473_v50  ;;  %vm1494_vm10 = vmor %vm1492_vm8, %vm1493_vm5  ;;  %v4878_v3 = vor.u32 %v3678_v57, %v3465_v40  ;;  %2220 = vmatpush.bf16.msra.mxu1 %v4736_v44  ;;  %2208 = vmatpush.bf16.msrb.mxu0 %v4754_v52  ;;  %v1513_v42 = vand.u32 2147483648, %v4819_v18  ;;  %vm1507_vm14 = vweird.f32 %v4819_v18  ;;  %v1838_v25 = vpop.f32.mrf.mxu2  ;;  %v1867_v14 = vpop.f32.mrf.mxu3 }
 0x5ac   :  { %v1489_v34 = vsub.f32 1.0, %v1488_v20 }
 0x5ad   :  { %v1475_v1 = vmul.f32 %v4821_v26, %v1474_v0  ;;  %2129 = vmatpush.bf16.msra.mxu3 %v4878_v3  ;;  %v1514_v61 = vor.u32 1.1754944e-38, %v1513_v42 }
 0x5ae   :  { %v1490_v37 = vmul.f32 %v4827_v21, %v1489_v34  ;;  %2233 = vmatpush.bf16.msrb.mxu2 %v4744_v60 }
 0x5af   :  { %v3840_v23 = vpop.eup %3839  ;;  %v1476_v17 = vadd.f32 %v4821_v26, %v1475_v1  ;;  %2221 = vmatpush.bf16.msra.mxu1 %v4756_v2  ;;  %2209 = vmatpush.bf16.msrb.mxu0 %v4763_v59 }
 0x5b0   :  { %v1503_v62 = vmul.f32 %v3840_v23, %v4819_v18  ;;  %v1491_v63 = vadd.f32 %v4827_v21, %v1490_v37  ;;  %v3842_v33 = vpop.eup %3841  ;;  %vm1508_vm13 = vweird.f32 %v3840_v23  ;;  %v1809_v37 = vpop.f32.mrf.mxu1 }
 0x5b1   :  { %v1480_v41 = vsel %vm1479_vm9, %v4821_v26, %v1476_v17  ;;  %2246 = vmatpush.bf16.msrb.mxu3 %v4747_v9  ;;  %vm1509_vm15 = vmor %vm1507_vm14, %vm1508_vm13 }
 0x5b2   :  { %v1504_v50 = vsub.f32 1.0, %v1503_v62  ;;  %v1485_v20 = vsel %vm1482_vm11, %v1484_v27, %v1480_v41  ;;  %v1495_v0 = vsel %vm1494_vm10, %v4827_v21, %v1491_v63  ;;  %2234 = vmatpush.bf16.msrb.mxu2 %v4758_v5 }
 0x5b3   :  { %v1500_v15 = vsel %vm1497_vm12, %v1499_v43, %v1495_v0  ;;  %v1519_v22 = vmul.f32 %v3842_v33, %v1485_v20  ;;  %2222 = vmatpush.bf16.msra.mxu1 %v4767_v29  ;;  %2210 = vmatpush.bf16.msrb.mxu0 %v4776_v24  ;;  %v4958_v57 = vpop.f32.mrf.mxu2  ;;  %v4960_v40 = vpop.f32.mrf.mxu3 }
 0x5b4   :  { %v1505_v26 = vmul.f32 %v3840_v23, %v1504_v50  ;;  %v1518_v58 = vmul.f32 %v1500_v15, %v4722_v46  ;;  %v1511_v46 = vand.u32 2147483647, %v4819_v18  ;;  %5392 = vst [vmem:[#allocation14_spill] sm:$0xff] %v4960_v40 }
 0x5b5   :  { %2247 = vmatpush.bf16.msrb.mxu3 %v4773_v6 }
 0x5b6   :  { %v1520_v34 = vadd.f32 %v1519_v22, %v1518_v58  ;;  %v1506_v21 = vadd.f32 %v3840_v23, %v1505_v26  ;;  %2235 = vmatpush.bf16.msrb.mxu2 %v4769_v11  ;;  %vm1512_vm0 = vcmp.eq.f32.partialorder %v1511_v46, 8.507059e+37 }
 0x5b7   :  { %2223 = vmatpush.bf16.msra.mxu1 %v4780_v32  ;;  %2211 = vmatpush.bf16.msrb.mxu0 %v4790_v28 }
 0x5b8   :  { %3843 = vtanh.f32 %v1520_v34  ;;  %v1510_v45 = vsel %vm1509_vm15, %v3840_v23, %v1506_v21  ;;  %v4954_v23 = vpop.f32.mrf.mxu0  ;;  %v4956_v17 = vpop.f32.mrf.mxu1 }
 0x5b9   :  { %v1515_v31 = vsel %vm1512_vm0, %v1514_v61, %v1510_v45  ;;  %2248 = vmatpush.bf16.msrb.mxu3 %v4785_v54 }
 0x5ba   :  { %2236 = vmatpush.bf16.msrb.mxu2 %v4782_v36 }
 0x5bb   :  { %2224 = vmatpush.bf16.msra.mxu1 %v4796_v35  ;;  %2212 = vmatpush.bf16.msrb.mxu0 %v4806_v10  ;;  %v4966_v63 = vpop.f32.mrf.mxu2  ;;  %v4968_v43 = vpop.f32.mrf.mxu3 }
 0x5bc   :  { %5395 = vst [vmem:[#allocation13_spill] sm:$0xff] %v4966_v63 }
 0x5bd   :  { %2249 = vmatpush.bf16.msrb.mxu3 %v4802_v55  ;;  %5396 = vst [vmem:[#allocation17_spill] sm:$0xff] %v4968_v43 }
 0x5be   :  { %v3844_v1 = vpop.eup %3843  ;;  %2237 = vmatpush.bf16.msrb.mxu2 %v4798_v38 }
 0x5bf   :  { %v1522_v12 = vmul.f32 %v3844_v1, %v1515_v31  ;;  %2225 = vmatpush.bf16.msra.mxu1 %v4810_v56  ;;  %2213 = vmatpush.bf16.msrb.mxu0 %v4825_v30  ;;  %v1589_v31 = vld [vmem:[%s5329_s6] sm:$0xf] }
 0x5c0   :  { %v4962_v62 = vpop.f32.mrf.mxu0  ;;  %v4964_v27 = vpop.f32.mrf.mxu1 }
 0x5c1   :  { %v1601_v18 = vpack.c.bf16 %v1522_v12, %v4728_v19  ;;  %2250 = vmatpush.bf16.msrb.mxu3 %v4817_v49  ;;  %v5391_v19 = vmov 0   ;;  %5393 = vst [vmem:[#allocation22_spill] sm:$0xff] %v4962_v62 }
 0x5c2   :  { %2238 = vmatpush.bf16.msrb.mxu2 %v4812_v8  ;;  %5394 = vst [vmem:[#allocation16_spill] sm:$0xff] %v4964_v27 }
 0x5c3   :  { %1794 = vmatmul.bf16.gmra.mxu0 %v1601_v18  ;;  %1823 = vmatmul.bf16.gmra.mxu1 %v1601_v18  ;;  %v4974_v50 = vpop.f32.mrf.mxu2  ;;  %v4976_v20 = vpop.f32.mrf.mxu3 }
 0x5c4   :  { %1852 = vmatmul.bf16.gmra.mxu2 %v1601_v18  ;;  %1881 = vmatmul.bf16.gmra.mxu3 %v1601_v18  ;;  %5399 = vst [vmem:[#allocation19_spill] sm:$0xff] %v4974_v50 }
 0x5c5   :  { %2251 = vmatpush.bf16.msrb.mxu3 %v4843_v7  ;;  %2226 = vmatpush.bf16.msra.mxu1 %v4834_v53  ;;  %5400 = vst [vmem:[#allocation21_spill] sm:$0xff] %v4976_v20 }
 0x5c6   :  { %2239 = vmatpush.bf16.msrb.mxu2 %v4836_v4  ;;  %2214 = vmatpush.bf16.msrb.mxu0 %v4855_v13 }
 0x5c8   :  { %v4970_v41 = vpop.f32.mrf.mxu0  ;;  %v4972_v33 = vpop.f32.mrf.mxu1 }
 0x5c9   :  { %2252 = vmatpush.bf16.msrb.mxu3 %v4859_v48  ;;  %2227 = vmatpush.bf16.msra.mxu1 %v4857_v16  ;;  %5397 = vst [vmem:[#allocation18_spill] sm:$0xff] %v4970_v41 }
 0x5ca   :  { %2240 = vmatpush.bf16.msrb.mxu2 %v4863_v51  ;;  %5398 = vst [vmem:[#allocation25_spill] sm:$0xff] %v4972_v33 }
 0x5cb   :  { %v4982_v22 = vpop.f32.mrf.mxu2  ;;  %v4984_v26 = vpop.f32.mrf.mxu3 }
 0x5cc   :  { %5403 = vst [vmem:[#allocation23_spill] sm:$0xff] %v4982_v22  ;;  %v5019_v22 = vperm.slane %v1589_v31, 2 }
 0x5cd   :  { %2253 = vmatpush.bf16.msrb.mxu3 %v4878_v3  ;;  %5404 = vst [vmem:[#allocation24_spill] sm:$0xff] %v4984_v26 }
 0x5d0   :  { %v4978_v0 = vpop.f32.mrf.mxu0  ;;  %v4980_v15 = vpop.f32.mrf.mxu1 }
 0x5d1   :  { %5401 = vst [vmem:[#allocation20_spill] sm:$0xff] %v4978_v0 }
 0x5d2   :  { %5402 = vst [vmem:[#allocation28_spill] sm:$0xff] %v4980_v15  ;;  %v1839_v15 = vadd.f32 %v1838_v25, %v5019_v22 }
 0x5d3   :  { %2091 = vmatmul.bf16.vlgmr.msra.gmra.mxu0 %v5391_v19  ;;  %2104 = vmatmul.bf16.vlgmr.msrb.gmra.mxu1 %v5391_v19  ;;  %v4990_v21 = vpop.f32.mrf.mxu2  ;;  %v4992_v42 = vpop.f32.mrf.mxu3 }
 0x5d4   :  { %2117 = vmatmul.bf16.vlgmr.msra.gmra.mxu2 %v5391_v19  ;;  %2130 = vmatmul.bf16.vlgmr.msra.gmra.mxu3 %v5391_v19  ;;  %5407 = vst [vmem:[#allocation26_spill] sm:$0xff] %v4990_v21  ;;  %v5009_v19 = vperm.slane %v1589_v31, 0  ;;  %v5011_v21 = vperm.slane %v1589_v31, 1 }
 0x5d5   :  { %2331 = vmatpush.bf16.msra.mxu0 %v4734_v39  ;;  %2344 = vmatpush.bf16.msrb.mxu1 %v4736_v44  ;;  %5408 = vst [vmem:[#allocation27_spill] sm:$0xff] %v4992_v42 }
 0x5d6   :  { %2357 = vmatpush.bf16.msra.mxu2 %v4744_v60  ;;  %2370 = vmatpush.bf16.msra.mxu3 %v4747_v9 }
 0x5d8   :  { %v4986_v58 = vpop.f32.mrf.mxu0  ;;  %v4988_v34 = vpop.f32.mrf.mxu1 }
 0x5d9   :  { %2332 = vmatpush.bf16.msra.mxu0 %v4754_v52  ;;  %2345 = vmatpush.bf16.msrb.mxu1 %v4756_v2  ;;  %5405 = vst [vmem:[#allocation11_spill] sm:$0xff] %v4986_v58 }
 0x5da   :  { %2358 = vmatpush.bf16.msra.mxu2 %v4758_v5  ;;  %2371 = vmatpush.bf16.msra.mxu3 %v4773_v6  ;;  %5406 = vst [vmem:[#allocation31_spill] sm:$0xff] %v4988_v34 }
 0x5dd   :  { %2333 = vmatpush.bf16.msra.mxu0 %v4763_v59  ;;  %2346 = vmatpush.bf16.msrb.mxu1 %v4767_v29 }
 0x5de   :  { %2359 = vmatpush.bf16.msra.mxu2 %v4769_v11  ;;  %2372 = vmatpush.bf16.msra.mxu3 %v4785_v54 }
 0x5e1   :  { %2334 = vmatpush.bf16.msra.mxu0 %v4776_v24  ;;  %2347 = vmatpush.bf16.msrb.mxu1 %v4780_v32 }
 0x5e2   :  { %2360 = vmatpush.bf16.msra.mxu2 %v4782_v36  ;;  %2373 = vmatpush.bf16.msra.mxu3 %v4802_v55 }
 0x5e5   :  { %2335 = vmatpush.bf16.msra.mxu0 %v4790_v28  ;;  %2348 = vmatpush.bf16.msrb.mxu1 %v4796_v35 }
 0x5e6   :  { %2361 = vmatpush.bf16.msra.mxu2 %v4798_v38  ;;  %2374 = vmatpush.bf16.msra.mxu3 %v4817_v49 }
 0x5e9   :  { %2336 = vmatpush.bf16.msra.mxu0 %v4806_v10  ;;  %2349 = vmatpush.bf16.msrb.mxu1 %v4810_v56 }
 0x5ea   :  { %2362 = vmatpush.bf16.msra.mxu2 %v4812_v8  ;;  %2375 = vmatpush.bf16.msra.mxu3 %v4843_v7 }
 0x5ed   :  { %2337 = vmatpush.bf16.msra.mxu0 %v4825_v30  ;;  %2350 = vmatpush.bf16.msrb.mxu1 %v4834_v53 }
 0x5ee   :  { %2363 = vmatpush.bf16.msra.mxu2 %v4836_v4  ;;  %2376 = vmatpush.bf16.msra.mxu3 %v4859_v48 }
 0x5f1   :  { %2338 = vmatpush.bf16.msra.mxu0 %v4855_v13  ;;  %2351 = vmatpush.bf16.msrb.mxu1 %v4857_v16 }
 0x5f2   :  { %2364 = vmatpush.bf16.msra.mxu2 %v4863_v51  ;;  %2377 = vmatpush.bf16.msra.mxu3 %v4878_v3 }
 0x640   :  { %v4994_v46 = vpop.f32.mrf.mxu0  ;;  %v4996_v45 = vpop.f32.mrf.mxu1 }
 0x641   :  { %5409 = vst [vmem:[#allocation33_spill] sm:$0xff] %v4994_v46  ;;  %v1781_v46 = vadd.f32 %v1780_v47, %v5009_v19 }
 0x642   :  { %5410 = vst [vmem:[#allocation15_spill] sm:$0xff] %v4996_v45  ;;  %v1810_v45 = vadd.f32 %v1809_v37, %v5011_v21 }
 0x647   :  { %v4998_v61 = vpop.f32.mrf.mxu2  ;;  %v5000_v1 = vpop.f32.mrf.mxu3 }
 0x648   :  { %5411 = vst [vmem:[#allocation12_spill] sm:$0xff] %v4998_v61  ;;  %v5005_v12 = vpop.f32.mrf.mxu0  ;;  %v5007_v18 = vpop.f32.mrf.mxu1 }
 0x649   :  { %5412 = vst [vmem:[#allocation32_spill] sm:$0xff] %v5000_v1 }
 0x64a   :  { %5413 = vst [vmem:[#allocation29_spill] sm:$0xff] %v5005_v12 }
 0x64b   :  { %5414 = vst [vmem:[#allocation30_spill] sm:$0xff] %v5007_v18 }
 0x64f   :  { %v5015_v42 = vpop.f32.mrf.mxu2  ;;  %v5017_v61 = vpop.f32.mrf.mxu3 }
 0x650   :  { %5415 = vst [vmem:[#allocation34_spill] sm:$0xff] %v5015_v42  ;;  %v2092_v1 = vpop.f32.mrf.mxu0  ;;  %v2105_v34 = vpop.f32.mrf.mxu1 }
 0x651   :  { %5416 = vst [vmem:[#allocation35_spill] sm:$0xff] %v5017_v61  ;;  %v2135_v58 = vadd.f32 %v2092_v1, %v1781_v46  ;;  %v2136_v26 = vadd.f32 %v2105_v34, %v1810_v45  ;;  %v5022_v34 = vperm.slane %v1589_v31, 3 }
 0x653   :  { %v3581_v12 = vmul.f32 -1.442695, %v2135_v58  ;;  %v3582_v18 = vmul.f32 -1.442695, %v2136_v26  ;;  %5417 = vst [vmem:[#allocation36_spill] sm:$0xff] %v5022_v34  ;;  %v1868_v25 = vadd.f32 %v1867_v14, %v5022_v34 }
 0x655   :  { %3845 = vpow2.f32 %v3581_v12 }
 0x656   :  { %3847 = vpow2.f32 %v3582_v18 }
 0x657   :  { %v2118_v0 = vpop.f32.mrf.mxu2  ;;  %v2131_v47 = vpop.f32.mrf.mxu3 }
 0x658   :  { %v2137_v20 = vadd.f32 %v2118_v0, %v1839_v15  ;;  %v2094_v37 = vpop.f32.mrf.mxu0  ;;  %v2107_v50 = vpop.f32.mrf.mxu1  ;;  %v2138_v0 = vadd.f32 %v2131_v47, %v1868_v25 }
 0x65a   :  { %v3583_v42 = vmul.f32 -1.442695, %v2137_v20 }
 0x65b   :  { %v3846_v33 = vpop.eup %3845 }
 0x65c   :  { %v3848_v61 = vpop.eup %3847  ;;  %v2148_v41 = vadd.f32 1.0, %v3846_v33  ;;  %3849 = vpow2.f32 %v3583_v42 }
 0x65d   :  { %v2149_v46 = vadd.f32 1.0, %v3848_v61 }
 0x65e   :  { %3851 = vrcp.f32 %v2148_v41  ;;  %v2162_v42 = vand.u32 2147483648, %v2148_v41  ;;  %v2160_v37 = vand.u32 2147483647, %v2148_v41  ;;  %vm2156_vm3 = vweird.f32 %v2148_v41 }
 0x65f   :  { %3853 = vrcp.f32 %v2149_v46  ;;  %v2120_v26 = vpop.f32.mrf.mxu2  ;;  %v2133_v58 = vpop.f32.mrf.mxu3  ;;  %v2177_v61 = vand.u32 2147483648, %v2149_v46  ;;  %vm2171_vm4 = vweird.f32 %v2149_v46 }
 0x660   :  { %v2175_v58 = vand.u32 2147483647, %v2149_v46  ;;  %vm2161_vm6 = vcmp.eq.f32.partialorder %v2160_v37, 8.507059e+37 }
 0x661   :  { %v2178_v63 = vor.u32 1.1754944e-38, %v2177_v61 }
 0x662   :  { %v3850_v45 = vpop.eup %3849  ;;  %vm2176_vm8 = vcmp.eq.f32.partialorder %v2175_v58, 8.507059e+37 }
 0x663   :  { %v2150_v1 = vadd.f32 1.0, %v3850_v45  ;;  %v2163_v45 = vor.u32 1.1754944e-38, %v2162_v42 }
 0x664   :  { %v3852_v12 = vpop.eup %3851 }
 0x665   :  { %v3854_v15 = vpop.eup %3853  ;;  %v2152_v50 = vmul.f32 %v3852_v12, %v2148_v41  ;;  %3855 = vrcp.f32 %v2150_v1  ;;  %vm2157_vm1 = vweird.f32 %v3852_v12  ;;  %vm2186_vm10 = vweird.f32 %v2150_v1 }
 0x666   :  { %v2167_v20 = vmul.f32 %v3854_v15, %v2149_v46  ;;  %3857 = vtanh.f32 %v2138_v0  ;;  %vm2172_vm2 = vweird.f32 %v3854_v15  ;;  %vm2158_vm5 = vmor %vm2156_vm3, %vm2157_vm1  ;;  %v2192_v46 = vand.u32 2147483648, %v2150_v1 }
 0x667   :  { %v2153_v18 = vsub.f32 1.0, %v2152_v50  ;;  %vm2173_vm7 = vmor %vm2171_vm4, %vm2172_vm2 }
 0x668   :  { %v2168_v33 = vsub.f32 1.0, %v2167_v20  ;;  %v2193_v61 = vor.u32 1.1754944e-38, %v2192_v46 }
 0x669   :  { %v2154_v31 = vmul.f32 %v3852_v12, %v2153_v18 }
 0x66a   :  { %v2169_v26 = vmul.f32 %v3854_v15, %v2168_v33 }
 0x66b   :  { %v3856_v43 = vpop.eup %3855  ;;  %v2155_v14 = vadd.f32 %v3852_v12, %v2154_v31 }
 0x66c   :  { %v2182_v47 = vmul.f32 %v3856_v43, %v2150_v1  ;;  %v2170_v25 = vadd.f32 %v3854_v15, %v2169_v26  ;;  %v3858_v0 = vpop.eup %3857  ;;  %vm2187_vm9 = vweird.f32 %v3856_v43 }
 0x66d   :  { %v2159_v50 = vsel %vm2158_vm5, %v3852_v12, %v2155_v14  ;;  %v2190_v12 = vand.u32 2147483647, %v2150_v1  ;;  %vm2188_vm11 = vmor %vm2186_vm10, %vm2187_vm9 }
 0x66e   :  { %v2183_v20 = vsub.f32 1.0, %v2182_v47  ;;  %v2164_v18 = vsel %vm2161_vm6, %v2163_v45, %v2159_v50  ;;  %v2174_v27 = vsel %vm2173_vm7, %v3854_v15, %v2170_v25  ;;  %v1841_v47 = vadd.f32 %v4958_v57, %v5019_v22 }
 0x66f   :  { %v2179_v33 = vsel %vm2176_vm8, %v2178_v63, %v2174_v27  ;;  %v2198_v62 = vmul.f32 %v3858_v0, %v2164_v18  ;;  %vm2191_vm12 = vcmp.eq.f32.partialorder %v2190_v12, 8.507059e+37 }
 0x670   :  { %v2184_v40 = vmul.f32 %v3856_v43, %v2183_v20  ;;  %v2197_v34 = vmul.f32 0.0, %v2179_v33 }
 0x672   :  { %v5025_v31 = vadd.f32 %v2198_v62, %v2197_v34  ;;  %v2185_v41 = vadd.f32 %v3856_v43, %v2184_v40  ;;  %v1783_v40 = vadd.f32 %v4954_v23, %v5009_v19  ;;  %v1812_v62 = vadd.f32 %v4956_v17, %v5011_v21 }
 0x674   :  { %3859 = vtanh.f32 %v5025_v31  ;;  %v2189_v42 = vsel %vm2188_vm11, %v3856_v43, %v2185_v41 }
 0x675   :  { %v2194_v15 = vsel %vm2191_vm12, %v2193_v61, %v2189_v42  ;;  %v5418_v61 = vld [vmem:[#allocation36_spill] sm:$0xff] }
 0x67a   :  { %v3860_v37 = vpop.eup %3859 }
 0x67b   :  { %v2201_v26 = vmul.f32 %v3860_v37, %v2194_v15  ;;  %v5419_v37 = vld [vmem:[#allocation14_spill] sm:$0xff] }
 0x67c   :  { %v1870_v57 = vadd.f32 %v5419_v37, %v5418_v61 }
 0x67d   :  { %v2206_v27 = vpack.c.bf16 %v2201_v26, %v2201_v26 }
 0x67f   :  { %2215 = vmatmul.bf16.vlgmr.msrb.gmra.mxu0 %v2206_v27  ;;  %2228 = vmatmul.bf16.vlgmr.msra.gmra.mxu1 %v2206_v27 }
 0x680   :  { %2241 = vmatmul.bf16.vlgmr.msrb.gmra.mxu2 %v2206_v27  ;;  %2254 = vmatmul.bf16.vlgmr.msrb.gmra.mxu3 %v2206_v27 }
 0x681   :  { %2455 = vmatpush.bf16.msrb.mxu0 %v4734_v39  ;;  %2468 = vmatpush.bf16.msra.mxu1 %v4736_v44 }
 0x682   :  { %2481 = vmatpush.bf16.msrb.mxu2 %v4744_v60  ;;  %2494 = vmatpush.bf16.msrb.mxu3 %v4747_v9 }
 0x685   :  { %2456 = vmatpush.bf16.msrb.mxu0 %v4754_v52  ;;  %2469 = vmatpush.bf16.msra.mxu1 %v4756_v2 }
 0x686   :  { %2482 = vmatpush.bf16.msrb.mxu2 %v4758_v5  ;;  %2495 = vmatpush.bf16.msrb.mxu3 %v4773_v6 }
 0x689   :  { %2457 = vmatpush.bf16.msrb.mxu0 %v4763_v59  ;;  %2470 = vmatpush.bf16.msra.mxu1 %v4767_v29 }
 0x68a   :  { %2483 = vmatpush.bf16.msrb.mxu2 %v4769_v11  ;;  %2496 = vmatpush.bf16.msrb.mxu3 %v4785_v54 }
 0x68d   :  { %2458 = vmatpush.bf16.msrb.mxu0 %v4776_v24  ;;  %2471 = vmatpush.bf16.msra.mxu1 %v4780_v32 }
 0x68e   :  { %2484 = vmatpush.bf16.msrb.mxu2 %v4782_v36  ;;  %2497 = vmatpush.bf16.msrb.mxu3 %v4802_v55 }
 0x691   :  { %2459 = vmatpush.bf16.msrb.mxu0 %v4790_v28  ;;  %2472 = vmatpush.bf16.msra.mxu1 %v4796_v35 }
 0x692   :  { %2485 = vmatpush.bf16.msrb.mxu2 %v4798_v38  ;;  %2498 = vmatpush.bf16.msrb.mxu3 %v4817_v49 }
 0x695   :  { %2460 = vmatpush.bf16.msrb.mxu0 %v4806_v10  ;;  %2473 = vmatpush.bf16.msra.mxu1 %v4810_v56 }
 0x696   :  { %2486 = vmatpush.bf16.msrb.mxu2 %v4812_v8  ;;  %2499 = vmatpush.bf16.msrb.mxu3 %v4843_v7 }
 0x699   :  { %2461 = vmatpush.bf16.msrb.mxu0 %v4825_v30  ;;  %2474 = vmatpush.bf16.msra.mxu1 %v4834_v53 }
 0x69a   :  { %2487 = vmatpush.bf16.msrb.mxu2 %v4836_v4  ;;  %2500 = vmatpush.bf16.msrb.mxu3 %v4859_v48 }
 0x69d   :  { %2462 = vmatpush.bf16.msrb.mxu0 %v4855_v13  ;;  %2475 = vmatpush.bf16.msra.mxu1 %v4857_v16 }
 0x69e   :  { %2488 = vmatpush.bf16.msrb.mxu2 %v4863_v51  ;;  %2501 = vmatpush.bf16.msrb.mxu3 %v4878_v3 }
 0x6fc   :  { %v2216_v63 = vpop.f32.mrf.mxu0  ;;  %v2229_v43 = vpop.f32.mrf.mxu1 }
 0x6fd   :  { %v2259_v34 = vadd.f32 %v2216_v63, %v1783_v40  ;;  %v2260_v1 = vadd.f32 %v2229_v43, %v1812_v62 }
 0x6ff   :  { %v3584_v58 = vmul.f32 -1.442695, %v2259_v34  ;;  %v3585_v14 = vmul.f32 -1.442695, %v2260_v1 }
 0x701   :  { %3861 = vpow2.f32 %v3584_v58 }
 0x702   :  { %3863 = vpow2.f32 %v3585_v14 }
 0x703   :  { %v2242_v45 = vpop.f32.mrf.mxu2  ;;  %v2255_v25 = vpop.f32.mrf.mxu3 }
 0x704   :  { %v2261_v50 = vadd.f32 %v2242_v45, %v1841_v47  ;;  %v2218_v0 = vpop.f32.mrf.mxu0  ;;  %v2231_v20 = vpop.f32.mrf.mxu1  ;;  %v2262_v27 = vadd.f32 %v2255_v25, %v1870_v57 }
 0x706   :  { %v3586_v23 = vmul.f32 -1.442695, %v2261_v50 }
 0x707   :  { %v3862_v18 = vpop.eup %3861 }
 0x708   :  { %v3864_v33 = vpop.eup %3863  ;;  %v2272_v17 = vadd.f32 1.0, %v3862_v18  ;;  %3865 = vpow2.f32 %v3586_v23 }
 0x709   :  { %v2273_v41 = vadd.f32 1.0, %v3864_v33 }
 0x70a   :  { %3867 = vrcp.f32 %v2272_v17  ;;  %v2286_v1 = vand.u32 2147483648, %v2272_v17  ;;  %v2284_v47 = vand.u32 2147483647, %v2272_v17  ;;  %vm2280_vm15 = vweird.f32 %v2272_v17 }
 0x70b   :  { %3869 = vrcp.f32 %v2273_v41  ;;  %v2244_v46 = vpop.f32.mrf.mxu2  ;;  %v2257_v12 = vpop.f32.mrf.mxu3  ;;  %v2301_v58 = vand.u32 2147483648, %v2273_v41  ;;  %v2299_v50 = vand.u32 2147483647, %v2273_v41  ;;  %vm2295_vm0 = vweird.f32 %v2273_v41 }
 0x70c   :  { %v2287_v23 = vor.u32 1.1754944e-38, %v2286_v1  ;;  %vm2285_vm3 = vcmp.eq.f32.partialorder %v2284_v47, 8.507059e+37 }
 0x70d   :  { %v2302_v33 = vor.u32 1.1754944e-38, %v2301_v58  ;;  %vm2300_vm4 = vcmp.eq.f32.partialorder %v2299_v50, 8.507059e+37  ;;  %v5421_v50 = vld [vmem:[#allocation16_spill] sm:$0xff] }
 0x70e   :  { %v3866_v42 = vpop.eup %3865 }
 0x70f   :  { %v2274_v15 = vadd.f32 1.0, %v3866_v42 }
 0x710   :  { %v3868_v26 = vpop.eup %3867 }
 0x711   :  { %v3870_v40 = vpop.eup %3869  ;;  %v2276_v62 = vmul.f32 %v3868_v26, %v2272_v17  ;;  %3871 = vrcp.f32 %v2274_v15  ;;  %vm2281_vm13 = vweird.f32 %v3868_v26  ;;  %vm2310_vm6 = vweird.f32 %v2274_v15 }
 0x712   :  { %v2291_v63 = vmul.f32 %v3870_v40, %v2273_v41  ;;  %3873 = vtanh.f32 %v2262_v27  ;;  %vm2296_vm14 = vweird.f32 %v3870_v40  ;;  %vm2282_vm1 = vmor %vm2280_vm15, %vm2281_vm13 }
 0x713   :  { %v2277_v43 = vsub.f32 1.0, %v2276_v62  ;;  %vm2297_vm2 = vmor %vm2295_vm0, %vm2296_vm14 }
 0x714   :  { %v2292_v34 = vsub.f32 1.0, %v2291_v63 }
 0x715   :  { %v2278_v14 = vmul.f32 %v3868_v26, %v2277_v43 }
 0x716   :  { %v2293_v45 = vmul.f32 %v3870_v40, %v2292_v34  ;;  %v2316_v34 = vand.u32 2147483648, %v2274_v15 }
 0x717   :  { %v3872_v0 = vpop.eup %3871  ;;  %v2279_v20 = vadd.f32 %v3868_v26, %v2278_v14 }
 0x718   :  { %v2306_v25 = vmul.f32 %v3872_v0, %v2274_v15  ;;  %v2294_v18 = vadd.f32 %v3870_v40, %v2293_v45  ;;  %v3874_v12 = vpop.eup %3873  ;;  %vm2311_vm5 = vweird.f32 %v3872_v0  ;;  %v2317_v58 = vor.u32 1.1754944e-38, %v2316_v34 }
 0x719   :  { %v2283_v46 = vsel %vm2282_vm1, %v3868_v26, %v2279_v20  ;;  %v2314_v26 = vand.u32 2147483647, %v2274_v15  ;;  %vm2312_vm7 = vmor %vm2310_vm6, %vm2311_vm5 }
 0x71a   :  { %v2307_v42 = vsub.f32 1.0, %v2306_v25  ;;  %v2288_v37 = vsel %vm2285_vm3, %v2287_v23, %v2283_v46  ;;  %v2298_v57 = vsel %vm2297_vm2, %v3870_v40, %v2294_v18 }
 0x71b   :  { %v2303_v27 = vsel %vm2300_vm4, %v2302_v33, %v2298_v57  ;;  %v2322_v62 = vmul.f32 %v3874_v12, %v2288_v37  ;;  %vm2315_vm8 = vcmp.eq.f32.partialorder %v2314_v26, 8.507059e+37  ;;  %v5422_v12 = vld [vmem:[#allocation13_spill] sm:$0xff] }
 0x71c   :  { %v2308_v63 = vmul.f32 %v3872_v0, %v2307_v42  ;;  %v2321_v43 = vmul.f32 %v2303_v27, %v5025_v31  ;;  %v5420_v31 = vld [vmem:[#allocation22_spill] sm:$0xff]  ;;  %v1844_v42 = vadd.f32 %v5422_v12, %v5019_v22 }
 0x71d   :  { %v1786_v15 = vadd.f32 %v5420_v31, %v5009_v19 }
 0x71e   :  { %v5069_v17 = vadd.f32 %v2322_v62, %v2321_v43  ;;  %v2309_v41 = vadd.f32 %v3872_v0, %v2308_v63 }
 0x720   :  { %3875 = vtanh.f32 %v5069_v17  ;;  %v2313_v1 = vsel %vm2312_vm7, %v3872_v0, %v2309_v41  ;;  %v1815_v0 = vadd.f32 %v5421_v50, %v5011_v21 }
 0x721   :  { %v2318_v14 = vsel %vm2315_vm8, %v2317_v58, %v2313_v1 }
 0x726   :  { %v3876_v40 = vpop.eup %3875 }
 0x727   :  { %v2325_v47 = vmul.f32 %v3876_v40, %v2318_v14 }
 0x729   :  { %v2330_v45 = vpack.c.bf16 %v2325_v47, %v2325_v47  ;;  %v5423_v47 = vld [vmem:[#allocation17_spill] sm:$0xff] }
 0x72b   :  { %2339 = vmatmul.bf16.vlgmr.msra.gmra.mxu0 %v2330_v45  ;;  %2352 = vmatmul.bf16.vlgmr.msrb.gmra.mxu1 %v2330_v45 }
 0x72c   :  { %2365 = vmatmul.bf16.vlgmr.msra.gmra.mxu2 %v2330_v45  ;;  %2378 = vmatmul.bf16.vlgmr.msra.gmra.mxu3 %v2330_v45  ;;  %v1873_v45 = vadd.f32 %v5423_v47, %v5418_v61 }
 0x72d   :  { %2579 = vmatpush.bf16.msra.mxu0 %v4734_v39  ;;  %2592 = vmatpush.bf16.msrb.mxu1 %v4736_v44 }
 0x72e   :  { %2605 = vmatpush.bf16.msra.mxu2 %v4744_v60  ;;  %2618 = vmatpush.bf16.msra.mxu3 %v4747_v9 }
 0x731   :  { %2580 = vmatpush.bf16.msra.mxu0 %v4754_v52  ;;  %2593 = vmatpush.bf16.msrb.mxu1 %v4756_v2 }
 0x732   :  { %2606 = vmatpush.bf16.msra.mxu2 %v4758_v5  ;;  %2619 = vmatpush.bf16.msra.mxu3 %v4773_v6 }
 0x735   :  { %2581 = vmatpush.bf16.msra.mxu0 %v4763_v59  ;;  %2594 = vmatpush.bf16.msrb.mxu1 %v4767_v29 }
 0x736   :  { %2607 = vmatpush.bf16.msra.mxu2 %v4769_v11  ;;  %2620 = vmatpush.bf16.msra.mxu3 %v4785_v54 }
 0x739   :  { %2582 = vmatpush.bf16.msra.mxu0 %v4776_v24  ;;  %2595 = vmatpush.bf16.msrb.mxu1 %v4780_v32 }
 0x73a   :  { %2608 = vmatpush.bf16.msra.mxu2 %v4782_v36  ;;  %2621 = vmatpush.bf16.msra.mxu3 %v4802_v55 }
 0x73d   :  { %2583 = vmatpush.bf16.msra.mxu0 %v4790_v28  ;;  %2596 = vmatpush.bf16.msrb.mxu1 %v4796_v35 }
 0x73e   :  { %2609 = vmatpush.bf16.msra.mxu2 %v4798_v38  ;;  %2622 = vmatpush.bf16.msra.mxu3 %v4817_v49 }
 0x741   :  { %2584 = vmatpush.bf16.msra.mxu0 %v4806_v10  ;;  %2597 = vmatpush.bf16.msrb.mxu1 %v4810_v56 }
 0x742   :  { %2610 = vmatpush.bf16.msra.mxu2 %v4812_v8  ;;  %2623 = vmatpush.bf16.msra.mxu3 %v4843_v7 }
 0x745   :  { %2585 = vmatpush.bf16.msra.mxu0 %v4825_v30  ;;  %2598 = vmatpush.bf16.msrb.mxu1 %v4834_v53 }
 0x746   :  { %2611 = vmatpush.bf16.msra.mxu2 %v4836_v4  ;;  %2624 = vmatpush.bf16.msra.mxu3 %v4859_v48 }
 0x749   :  { %2586 = vmatpush.bf16.msra.mxu0 %v4855_v13  ;;  %2599 = vmatpush.bf16.msrb.mxu1 %v4857_v16 }
 0x74a   :  { %2612 = vmatpush.bf16.msra.mxu2 %v4863_v51  ;;  %2625 = vmatpush.bf16.msra.mxu3 %v4878_v3 }
 0x7a8   :  { %v2340_v20 = vpop.f32.mrf.mxu0  ;;  %v2353_v25 = vpop.f32.mrf.mxu1 }
 0x7a9   :  { %v2383_v23 = vadd.f32 %v2340_v20, %v1786_v15  ;;  %v2384_v18 = vadd.f32 %v2353_v25, %v1815_v0 }
 0x7ab   :  { %v3587_v33 = vmul.f32 -1.442695, %v2383_v23  ;;  %v3588_v46 = vmul.f32 -1.442695, %v2384_v18 }
 0x7ad   :  { %3877 = vpow2.f32 %v3587_v33 }
 0x7ae   :  { %3879 = vpow2.f32 %v3588_v46 }
 0x7af   :  { %v2366_v37 = vpop.f32.mrf.mxu2  ;;  %v2379_v57 = vpop.f32.mrf.mxu3 }
 0x7b0   :  { %v2385_v27 = vadd.f32 %v2366_v37, %v1844_v42  ;;  %v2342_v62 = vpop.f32.mrf.mxu0  ;;  %v2355_v63 = vpop.f32.mrf.mxu1  ;;  %v2386_v50 = vadd.f32 %v2379_v57, %v1873_v45 }
 0x7b2   :  { %v3589_v43 = vmul.f32 -1.442695, %v2385_v27 }
 0x7b3   :  { %v3878_v41 = vpop.eup %3877 }
 0x7b4   :  { %v3880_v34 = vpop.eup %3879  ;;  %v2396_v26 = vadd.f32 1.0, %v3878_v41  ;;  %3881 = vpow2.f32 %v3589_v43 }
 0x7b5   :  { %v2397_v1 = vadd.f32 1.0, %v3880_v34 }
 0x7b6   :  { %3883 = vrcp.f32 %v2396_v26  ;;  %v2410_v33 = vand.u32 2147483648, %v2396_v26  ;;  %v2408_v42 = vand.u32 2147483647, %v2396_v26  ;;  %vm2404_vm11 = vweird.f32 %v2396_v26 }
 0x7b7   :  { %3885 = vrcp.f32 %v2397_v1  ;;  %v2368_v58 = vpop.f32.mrf.mxu2  ;;  %v2381_v40 = vpop.f32.mrf.mxu3  ;;  %v2425_v46 = vand.u32 2147483648, %v2397_v1  ;;  %v2423_v27 = vand.u32 2147483647, %v2397_v1  ;;  %vm2419_vm12 = vweird.f32 %v2397_v1 }
 0x7b8   :  { %v2411_v43 = vor.u32 1.1754944e-38, %v2410_v33  ;;  %vm2409_vm15 = vcmp.eq.f32.partialorder %v2408_v42, 8.507059e+37 }
 0x7b9   :  { %v2426_v34 = vor.u32 1.1754944e-38, %v2425_v46  ;;  %vm2424_vm0 = vcmp.eq.f32.partialorder %v2423_v27, 8.507059e+37  ;;  %v5425_v27 = vld [vmem:[#allocation25_spill] sm:$0xff] }
 0x7ba   :  { %v3882_v14 = vpop.eup %3881 }
 0x7bb   :  { %v2398_v31 = vadd.f32 1.0, %v3882_v14 }
 0x7bc   :  { %v3884_v15 = vpop.eup %3883 }
 0x7bd   :  { %v3886_v0 = vpop.eup %3885  ;;  %v2400_v20 = vmul.f32 %v3884_v15, %v2396_v26  ;;  %3887 = vrcp.f32 %v2398_v31  ;;  %vm2405_vm9 = vweird.f32 %v3884_v15  ;;  %vm2434_vm2 = vweird.f32 %v2398_v31 }
 0x7be   :  { %v2415_v25 = vmul.f32 %v3886_v0, %v2397_v1  ;;  %3889 = vtanh.f32 %v2386_v50  ;;  %vm2420_vm10 = vweird.f32 %v3886_v0  ;;  %vm2406_vm13 = vmor %vm2404_vm11, %vm2405_vm9 }
 0x7bf   :  { %v2401_v23 = vsub.f32 1.0, %v2400_v20  ;;  %vm2421_vm14 = vmor %vm2419_vm12, %vm2420_vm10 }
 0x7c0   :  { %v2416_v18 = vsub.f32 1.0, %v2415_v25 }
 0x7c1   :  { %v2402_v12 = vmul.f32 %v3884_v15, %v2401_v23 }
 0x7c2   :  { %v2417_v37 = vmul.f32 %v3886_v0, %v2416_v18  ;;  %v2440_v18 = vand.u32 2147483648, %v2398_v31 }
 0x7c3   :  { %v3888_v62 = vpop.eup %3887  ;;  %v2403_v63 = vadd.f32 %v3884_v15, %v2402_v12 }
 0x7c4   :  { %v2430_v57 = vmul.f32 %v3888_v62, %v2398_v31  ;;  %v2418_v41 = vadd.f32 %v3886_v0, %v2417_v37  ;;  %v3890_v40 = vpop.eup %3889  ;;  %vm2435_vm1 = vweird.f32 %v3888_v62  ;;  %v2441_v46 = vor.u32 1.1754944e-38, %v2440_v18 }
 0x7c5   :  { %v2407_v58 = vsel %vm2406_vm13, %v3884_v15, %v2403_v63  ;;  %v2438_v15 = vand.u32 2147483647, %v2398_v31  ;;  %vm2436_vm3 = vmor %vm2434_vm2, %vm2435_vm1 }
 0x7c6   :  { %v2431_v14 = vsub.f32 1.0, %v2430_v57  ;;  %v2412_v47 = vsel %vm2409_vm15, %v2411_v43, %v2407_v58  ;;  %v2422_v45 = vsel %vm2421_vm14, %v3886_v0, %v2418_v41 }
 0x7c7   :  { %v2427_v50 = vsel %vm2424_vm0, %v2426_v34, %v2422_v45  ;;  %v2446_v20 = vmul.f32 %v3890_v40, %v2412_v47  ;;  %vm2439_vm4 = vcmp.eq.f32.partialorder %v2438_v15, 8.507059e+37  ;;  %v5426_v40 = vld [vmem:[#allocation19_spill] sm:$0xff] }
 0x7c8   :  { %v2432_v25 = vmul.f32 %v3888_v62, %v2431_v14  ;;  %v2445_v23 = vmul.f32 %v2427_v50, %v5069_v17  ;;  %v5424_v17 = vld [vmem:[#allocation18_spill] sm:$0xff]  ;;  %v1846_v14 = vadd.f32 %v5426_v40, %v5019_v22 }
 0x7c9   :  { %v1788_v31 = vadd.f32 %v5424_v17, %v5009_v19 }
 0x7ca   :  { %v5113_v26 = vadd.f32 %v2446_v20, %v2445_v23  ;;  %v2433_v1 = vadd.f32 %v3888_v62, %v2432_v25 }
 0x7cc   :  { %3891 = vtanh.f32 %v5113_v26  ;;  %v2437_v33 = vsel %vm2436_vm3, %v3888_v62, %v2433_v1  ;;  %v1817_v62 = vadd.f32 %v5425_v27, %v5011_v21 }
 0x7cd   :  { %v2442_v12 = vsel %vm2439_vm4, %v2441_v46, %v2437_v33 }
 0x7d2   :  { %v3892_v0 = vpop.eup %3891 }
 0x7d3   :  { %v2449_v42 = vmul.f32 %v3892_v0, %v2442_v12 }
 0x7d5   :  { %v2454_v37 = vpack.c.bf16 %v2449_v42, %v2449_v42  ;;  %v5427_v42 = vld [vmem:[#allocation21_spill] sm:$0xff] }
 0x7d7   :  { %2463 = vmatmul.bf16.vlgmr.msrb.gmra.mxu0 %v2454_v37  ;;  %2476 = vmatmul.bf16.vlgmr.msra.gmra.mxu1 %v2454_v37 }
 0x7d8   :  { %2489 = vmatmul.bf16.vlgmr.msrb.gmra.mxu2 %v2454_v37  ;;  %2502 = vmatmul.bf16.vlgmr.msrb.gmra.mxu3 %v2454_v37  ;;  %v1875_v37 = vadd.f32 %v5427_v42, %v5418_v61 }
 0x7d9   :  { %2703 = vmatpush.bf16.msrb.mxu0 %v4734_v39  ;;  %2716 = vmatpush.bf16.msra.mxu1 %v4736_v44 }
 0x7da   :  { %2729 = vmatpush.bf16.msrb.mxu2 %v4744_v60  ;;  %2742 = vmatpush.bf16.msrb.mxu3 %v4747_v9 }
 0x7dd   :  { %2704 = vmatpush.bf16.msrb.mxu0 %v4754_v52  ;;  %2717 = vmatpush.bf16.msra.mxu1 %v4756_v2 }
 0x7de   :  { %2730 = vmatpush.bf16.msrb.mxu2 %v4758_v5  ;;  %2743 = vmatpush.bf16.msrb.mxu3 %v4773_v6 }
 0x7e1   :  { %2705 = vmatpush.bf16.msrb.mxu0 %v4763_v59  ;;  %2718 = vmatpush.bf16.msra.mxu1 %v4767_v29 }
 0x7e2   :  { %2731 = vmatpush.bf16.msrb.mxu2 %v4769_v11  ;;  %2744 = vmatpush.bf16.msrb.mxu3 %v4785_v54 }
 0x7e5   :  { %2706 = vmatpush.bf16.msrb.mxu0 %v4776_v24  ;;  %2719 = vmatpush.bf16.msra.mxu1 %v4780_v32 }
 0x7e6   :  { %2732 = vmatpush.bf16.msrb.mxu2 %v4782_v36  ;;  %2745 = vmatpush.bf16.msrb.mxu3 %v4802_v55 }
 0x7e9   :  { %2707 = vmatpush.bf16.msrb.mxu0 %v4790_v28  ;;  %2720 = vmatpush.bf16.msra.mxu1 %v4796_v35 }
 0x7ea   :  { %2733 = vmatpush.bf16.msrb.mxu2 %v4798_v38  ;;  %2746 = vmatpush.bf16.msrb.mxu3 %v4817_v49 }
 0x7ed   :  { %2708 = vmatpush.bf16.msrb.mxu0 %v4806_v10  ;;  %2721 = vmatpush.bf16.msra.mxu1 %v4810_v56 }
 0x7ee   :  { %2734 = vmatpush.bf16.msrb.mxu2 %v4812_v8  ;;  %2747 = vmatpush.bf16.msrb.mxu3 %v4843_v7 }
 0x7f1   :  { %2709 = vmatpush.bf16.msrb.mxu0 %v4825_v30  ;;  %2722 = vmatpush.bf16.msra.mxu1 %v4834_v53 }
 0x7f2   :  { %2735 = vmatpush.bf16.msrb.mxu2 %v4836_v4  ;;  %2748 = vmatpush.bf16.msrb.mxu3 %v4859_v48 }
 0x7f5   :  { %2710 = vmatpush.bf16.msrb.mxu0 %v4855_v13  ;;  %2723 = vmatpush.bf16.msra.mxu1 %v4857_v16 }
 0x7f6   :  { %2736 = vmatpush.bf16.msrb.mxu2 %v4863_v51  ;;  %2749 = vmatpush.bf16.msrb.mxu3 %v4878_v3 }
 0x854   :  { %v2464_v63 = vpop.f32.mrf.mxu0  ;;  %v2477_v57 = vpop.f32.mrf.mxu1 }
 0x855   :  { %v2507_v43 = vadd.f32 %v2464_v63, %v1788_v31  ;;  %v2508_v41 = vadd.f32 %v2477_v57, %v1817_v62 }
 0x857   :  { %v3590_v34 = vmul.f32 -1.442695, %v2507_v43  ;;  %v3591_v58 = vmul.f32 -1.442695, %v2508_v41 }
 0x859   :  { %3893 = vpow2.f32 %v3590_v34 }
 0x85a   :  { %3895 = vpow2.f32 %v3591_v58 }
 0x85b   :  { %v2490_v47 = vpop.f32.mrf.mxu2  ;;  %v2503_v45 = vpop.f32.mrf.mxu3 }
 0x85c   :  { %v2509_v50 = vadd.f32 %v2490_v47, %v1846_v14  ;;  %v2466_v20 = vpop.f32.mrf.mxu0  ;;  %v2479_v25 = vpop.f32.mrf.mxu1  ;;  %v2510_v27 = vadd.f32 %v2503_v45, %v1875_v37 }
 0x85e   :  { %v3592_v23 = vmul.f32 -1.442695, %v2509_v50 }
 0x85f   :  { %v3894_v1 = vpop.eup %3893 }
 0x860   :  { %v3896_v18 = vpop.eup %3895  ;;  %v2520_v15 = vadd.f32 1.0, %v3894_v1  ;;  %3897 = vpow2.f32 %v3592_v23 }
 0x861   :  { %v2521_v33 = vadd.f32 1.0, %v3896_v18 }
 0x862   :  { %3899 = vrcp.f32 %v2520_v15  ;;  %v2534_v34 = vand.u32 2147483648, %v2520_v15  ;;  %v2532_v14 = vand.u32 2147483647, %v2520_v15  ;;  %vm2528_vm7 = vweird.f32 %v2520_v15 }
 0x863   :  { %3901 = vrcp.f32 %v2521_v33  ;;  %v2492_v46 = vpop.f32.mrf.mxu2  ;;  %v2505_v0 = vpop.f32.mrf.mxu3  ;;  %v2549_v58 = vand.u32 2147483648, %v2521_v33  ;;  %v2547_v50 = vand.u32 2147483647, %v2521_v33  ;;  %vm2543_vm8 = vweird.f32 %v2521_v33 }
 0x864   :  { %v2535_v23 = vor.u32 1.1754944e-38, %v2534_v34  ;;  %vm2533_vm11 = vcmp.eq.f32.partialorder %v2532_v14, 8.507059e+37 }
 0x865   :  { %v2550_v18 = vor.u32 1.1754944e-38, %v2549_v58  ;;  %vm2548_vm12 = vcmp.eq.f32.partialorder %v2547_v50, 8.507059e+37  ;;  %v5429_v50 = vld [vmem:[#allocation28_spill] sm:$0xff] }
 0x866   :  { %v3898_v12 = vpop.eup %3897 }
 0x867   :  { %v2522_v17 = vadd.f32 1.0, %v3898_v12 }
 0x868   :  { %v3900_v31 = vpop.eup %3899 }
 0x869   :  { %v3902_v62 = vpop.eup %3901  ;;  %v2524_v63 = vmul.f32 %v3900_v31, %v2520_v15  ;;  %3903 = vrcp.f32 %v2522_v17  ;;  %vm2529_vm5 = vweird.f32 %v3900_v31  ;;  %vm2558_vm14 = vweird.f32 %v2522_v17 }
 0x86a   :  { %v2539_v57 = vmul.f32 %v3902_v62, %v2521_v33  ;;  %3905 = vtanh.f32 %v2510_v27  ;;  %vm2544_vm6 = vweird.f32 %v3902_v62  ;;  %vm2530_vm9 = vmor %vm2528_vm7, %vm2529_vm5 }
 0x86b   :  { %v2525_v43 = vsub.f32 1.0, %v2524_v63  ;;  %vm2545_vm10 = vmor %vm2543_vm8, %vm2544_vm6 }
 0x86c   :  { %v2540_v41 = vsub.f32 1.0, %v2539_v57 }
 0x86d   :  { %v2526_v40 = vmul.f32 %v3900_v31, %v2525_v43 }
 0x86e   :  { %v2541_v47 = vmul.f32 %v3902_v62, %v2540_v41  ;;  %v2564_v41 = vand.u32 2147483648, %v2522_v17 }
 0x86f   :  { %v3904_v20 = vpop.eup %3903  ;;  %v2527_v25 = vadd.f32 %v3900_v31, %v2526_v40 }
 0x870   :  { %v2554_v45 = vmul.f32 %v3904_v20, %v2522_v17  ;;  %v2542_v1 = vadd.f32 %v3902_v62, %v2541_v47  ;;  %v3906_v0 = vpop.eup %3905  ;;  %vm2559_vm13 = vweird.f32 %v3904_v20  ;;  %v2565_v58 = vor.u32 1.1754944e-38, %v2564_v41 }
 0x871   :  { %v2531_v46 = vsel %vm2530_vm9, %v3900_v31, %v2527_v25  ;;  %v2562_v31 = vand.u32 2147483647, %v2522_v17  ;;  %vm2560_vm15 = vmor %vm2558_vm14, %vm2559_vm13 }
 0x872   :  { %v2555_v12 = vsub.f32 1.0, %v2554_v45  ;;  %v2536_v42 = vsel %vm2533_vm11, %v2535_v23, %v2531_v46  ;;  %v2546_v37 = vsel %vm2545_vm10, %v3902_v62, %v2542_v1 }
 0x873   :  { %v2551_v27 = vsel %vm2548_vm12, %v2550_v18, %v2546_v37  ;;  %v2570_v63 = vmul.f32 %v3906_v0, %v2536_v42  ;;  %vm2563_vm0 = vcmp.eq.f32.partialorder %v2562_v31, 8.507059e+37  ;;  %v5430_v0 = vld [vmem:[#allocation23_spill] sm:$0xff] }
 0x874   :  { %v2556_v57 = vmul.f32 %v3904_v20, %v2555_v12  ;;  %v2569_v43 = vmul.f32 %v2551_v27, %v5113_v26  ;;  %v5428_v26 = vld [vmem:[#allocation20_spill] sm:$0xff]  ;;  %v1849_v12 = vadd.f32 %v5430_v0, %v5019_v22 }
 0x875   :  { %v1791_v17 = vadd.f32 %v5428_v26, %v5009_v19 }
 0x876   :  { %v5157_v15 = vadd.f32 %v2570_v63, %v2569_v43  ;;  %v2557_v33 = vadd.f32 %v3904_v20, %v2556_v57 }
 0x878   :  { %3907 = vtanh.f32 %v5157_v15  ;;  %v2561_v34 = vsel %vm2560_vm15, %v3904_v20, %v2557_v33  ;;  %v1820_v20 = vadd.f32 %v5429_v50, %v5011_v21 }
 0x879   :  { %v2566_v40 = vsel %vm2563_vm0, %v2565_v58, %v2561_v34 }
 0x87e   :  { %v3908_v62 = vpop.eup %3907 }
 0x87f   :  { %v2573_v14 = vmul.f32 %v3908_v62, %v2566_v40 }
 0x881   :  { %v2578_v47 = vpack.c.bf16 %v2573_v14, %v2573_v14  ;;  %v5431_v14 = vld [vmem:[#allocation24_spill] sm:$0xff] }
 0x883   :  { %2587 = vmatmul.bf16.vlgmr.msra.gmra.mxu0 %v2578_v47  ;;  %2600 = vmatmul.bf16.vlgmr.msrb.gmra.mxu1 %v2578_v47 }
 0x884   :  { %2613 = vmatmul.bf16.vlgmr.msra.gmra.mxu2 %v2578_v47  ;;  %2626 = vmatmul.bf16.vlgmr.msra.gmra.mxu3 %v2578_v47  ;;  %v1878_v47 = vadd.f32 %v5431_v14, %v5418_v61 }
 0x885   :  { %2827 = vmatpush.bf16.msra.mxu0 %v4734_v39  ;;  %2840 = vmatpush.bf16.msrb.mxu1 %v4736_v44 }
 0x886   :  { %2853 = vmatpush.bf16.msra.mxu2 %v4744_v60  ;;  %2866 = vmatpush.bf16.msra.mxu3 %v4747_v9 }
 0x889   :  { %2828 = vmatpush.bf16.msra.mxu0 %v4754_v52  ;;  %2841 = vmatpush.bf16.msrb.mxu1 %v4756_v2 }
 0x88a   :  { %2854 = vmatpush.bf16.msra.mxu2 %v4758_v5  ;;  %2867 = vmatpush.bf16.msra.mxu3 %v4773_v6 }
 0x88d   :  { %2829 = vmatpush.bf16.msra.mxu0 %v4763_v59  ;;  %2842 = vmatpush.bf16.msrb.mxu1 %v4767_v29 }
 0x88e   :  { %2855 = vmatpush.bf16.msra.mxu2 %v4769_v11  ;;  %2868 = vmatpush.bf16.msra.mxu3 %v4785_v54 }
 0x891   :  { %2830 = vmatpush.bf16.msra.mxu0 %v4776_v24  ;;  %2843 = vmatpush.bf16.msrb.mxu1 %v4780_v32 }
 0x892   :  { %2856 = vmatpush.bf16.msra.mxu2 %v4782_v36  ;;  %2869 = vmatpush.bf16.msra.mxu3 %v4802_v55 }
 0x895   :  { %2831 = vmatpush.bf16.msra.mxu0 %v4790_v28  ;;  %2844 = vmatpush.bf16.msrb.mxu1 %v4796_v35 }
 0x896   :  { %2857 = vmatpush.bf16.msra.mxu2 %v4798_v38  ;;  %2870 = vmatpush.bf16.msra.mxu3 %v4817_v49 }
 0x899   :  { %2832 = vmatpush.bf16.msra.mxu0 %v4806_v10  ;;  %2845 = vmatpush.bf16.msrb.mxu1 %v4810_v56 }
 0x89a   :  { %2858 = vmatpush.bf16.msra.mxu2 %v4812_v8  ;;  %2871 = vmatpush.bf16.msra.mxu3 %v4843_v7 }
 0x89d   :  { %2833 = vmatpush.bf16.msra.mxu0 %v4825_v30  ;;  %2846 = vmatpush.bf16.msrb.mxu1 %v4834_v53 }
 0x89e   :  { %2859 = vmatpush.bf16.msra.mxu2 %v4836_v4  ;;  %2872 = vmatpush.bf16.msra.mxu3 %v4859_v48 }
 0x8a1   :  { %2834 = vmatpush.bf16.msra.mxu0 %v4855_v13  ;;  %2847 = vmatpush.bf16.msrb.mxu1 %v4857_v16 }
 0x8a2   :  { %2860 = vmatpush.bf16.msra.mxu2 %v4863_v51  ;;  %2873 = vmatpush.bf16.msra.mxu3 %v4878_v3 }
 0x900   :  { %v2588_v25 = vpop.f32.mrf.mxu0  ;;  %v2601_v45 = vpop.f32.mrf.mxu1 }
 0x901   :  { %v2631_v23 = vadd.f32 %v2588_v25, %v1791_v17  ;;  %v2632_v1 = vadd.f32 %v2601_v45, %v1820_v20 }
 0x903   :  { %v3593_v18 = vmul.f32 -1.442695, %v2631_v23  ;;  %v3594_v46 = vmul.f32 -1.442695, %v2632_v1 }
 0x905   :  { %3909 = vpow2.f32 %v3593_v18 }
 0x906   :  { %3911 = vpow2.f32 %v3594_v46 }
 0x907   :  { %v2614_v42 = vpop.f32.mrf.mxu2  ;;  %v2627_v37 = vpop.f32.mrf.mxu3 }
 0x908   :  { %v2633_v27 = vadd.f32 %v2614_v42, %v1849_v12  ;;  %v2590_v63 = vpop.f32.mrf.mxu0  ;;  %v2603_v57 = vpop.f32.mrf.mxu1  ;;  %v2634_v50 = vadd.f32 %v2627_v37, %v1878_v47 }
 0x90a   :  { %v3595_v43 = vmul.f32 -1.442695, %v2633_v27 }
 0x90b   :  { %v3910_v33 = vpop.eup %3909 }
 0x90c   :  { %v3912_v41 = vpop.eup %3911  ;;  %v2644_v31 = vadd.f32 1.0, %v3910_v33  ;;  %3913 = vpow2.f32 %v3595_v43 }
 0x90d   :  { %v2645_v34 = vadd.f32 1.0, %v3912_v41 }
 0x90e   :  { %3915 = vrcp.f32 %v2644_v31  ;;  %v2658_v18 = vand.u32 2147483648, %v2644_v31  ;;  %v2656_v12 = vand.u32 2147483647, %v2644_v31  ;;  %vm2652_vm3 = vweird.f32 %v2644_v31 }
 0x90f   :  { %3917 = vrcp.f32 %v2645_v34  ;;  %v2616_v58 = vpop.f32.mrf.mxu2  ;;  %v2629_v62 = vpop.f32.mrf.mxu3  ;;  %v2673_v46 = vand.u32 2147483648, %v2645_v34  ;;  %v2671_v27 = vand.u32 2147483647, %v2645_v34  ;;  %vm2667_vm4 = vweird.f32 %v2645_v34 }
 0x910   :  { %v2659_v43 = vor.u32 1.1754944e-38, %v2658_v18  ;;  %vm2657_vm7 = vcmp.eq.f32.partialorder %v2656_v12, 8.507059e+37 }
 0x911   :  { %v2674_v41 = vor.u32 1.1754944e-38, %v2673_v46  ;;  %vm2672_vm8 = vcmp.eq.f32.partialorder %v2671_v27, 8.507059e+37 }
 0x912   :  { %v3914_v40 = vpop.eup %3913 }
 0x913   :  { %v2646_v26 = vadd.f32 1.0, %v3914_v40 }
 0x914   :  { %v3916_v17 = vpop.eup %3915 }
 0x915   :  { %v3918_v20 = vpop.eup %3917  ;;  %v2648_v25 = vmul.f32 %v3916_v17, %v2644_v31  ;;  %3919 = vrcp.f32 %v2646_v26  ;;  %vm2653_vm1 = vweird.f32 %v3916_v17  ;;  %vm2682_vm10 = vweird.f32 %v2646_v26 }
 0x916   :  { %v2663_v45 = vmul.f32 %v3918_v20, %v2645_v34  ;;  %3921 = vtanh.f32 %v2634_v50  ;;  %vm2668_vm2 = vweird.f32 %v3918_v20  ;;  %vm2654_vm5 = vmor %vm2652_vm3, %vm2653_vm1 }
 0x917   :  { %v2649_v23 = vsub.f32 1.0, %v2648_v25  ;;  %vm2669_vm6 = vmor %vm2667_vm4, %vm2668_vm2 }
 0x918   :  { %v2664_v1 = vsub.f32 1.0, %v2663_v45 }
 0x919   :  { %v2650_v0 = vmul.f32 %v3916_v17, %v2649_v23 }
 0x91a   :  { %v2665_v42 = vmul.f32 %v3918_v20, %v2664_v1  ;;  %v2688_v1 = vand.u32 2147483648, %v2646_v26 }
 0x91b   :  { %v3920_v63 = vpop.eup %3919  ;;  %v2651_v57 = vadd.f32 %v3916_v17, %v2650_v0 }
 0x91c   :  { %v2678_v37 = vmul.f32 %v3920_v63, %v2646_v26  ;;  %v2666_v33 = vadd.f32 %v3918_v20, %v2665_v42  ;;  %v3922_v62 = vpop.eup %3921  ;;  %vm2683_vm9 = vweird.f32 %v3920_v63  ;;  %v2689_v46 = vor.u32 1.1754944e-38, %v2688_v1 }
 0x91d   :  { %v2655_v58 = vsel %vm2654_vm5, %v3916_v17, %v2651_v57  ;;  %v2686_v17 = vand.u32 2147483647, %v2646_v26  ;;  %vm2684_vm11 = vmor %vm2682_vm10, %vm2683_vm9 }
 0x91e   :  { %v2679_v40 = vsub.f32 1.0, %v2678_v37  ;;  %v2660_v14 = vsel %vm2657_vm7, %v2659_v43, %v2655_v58  ;;  %v2670_v47 = vsel %vm2669_vm6, %v3918_v20, %v2666_v33 }
 0x91f   :  { %v2675_v50 = vsel %vm2672_vm8, %v2674_v41, %v2670_v47  ;;  %v2694_v25 = vmul.f32 %v3922_v62, %v2660_v14  ;;  %vm2687_vm12 = vcmp.eq.f32.partialorder %v2686_v17, 8.507059e+37 }
 0x920   :  { %v2680_v45 = vmul.f32 %v3920_v63, %v2679_v40  ;;  %v2693_v23 = vmul.f32 %v2675_v50, %v5157_v15 }
 0x922   :  { %v5201_v31 = vadd.f32 %v2694_v25, %v2693_v23  ;;  %v2681_v34 = vadd.f32 %v3920_v63, %v2680_v45 }
 0x924   :  { %3923 = vtanh.f32 %v5201_v31  ;;  %v2685_v18 = vsel %vm2684_vm11, %v3920_v63, %v2681_v34 }
 0x925   :  { %v2690_v0 = vsel %vm2687_vm12, %v2689_v46, %v2685_v18 }
 0x92a   :  { %v3924_v20 = vpop.eup %3923 }
 0x92b   :  { %v2697_v12 = vmul.f32 %v3924_v20, %v2690_v0 }
 0x92d   :  { %v2702_v42 = vpack.c.bf16 %v2697_v12, %v2697_v12 }
 0x92f   :  { %2711 = vmatmul.bf16.vlgmr.msrb.gmra.mxu0 %v2702_v42  ;;  %2724 = vmatmul.bf16.vlgmr.msra.gmra.mxu1 %v2702_v42 }
 0x930   :  { %2737 = vmatmul.bf16.vlgmr.msrb.gmra.mxu2 %v2702_v42  ;;  %2750 = vmatmul.bf16.vlgmr.msrb.gmra.mxu3 %v2702_v42 }
 0x931   :  { %2951 = vmatpush.bf16.msrb.mxu0 %v4734_v39  ;;  %2964 = vmatpush.bf16.msra.mxu1 %v4736_v44  ;;  %v5432_v39 = vld [vmem:[#allocation11_spill] sm:$0xff] }
 0x932   :  { %2977 = vmatpush.bf16.msrb.mxu2 %v4744_v60  ;;  %2990 = vmatpush.bf16.msrb.mxu3 %v4747_v9  ;;  %v1793_v44 = vadd.f32 %v5432_v39, %v5009_v19  ;;  %v5433_v60 = vld [vmem:[#allocation31_spill] sm:$0xff] }
 0x933   :  { %v1822_v9 = vadd.f32 %v5433_v60, %v5011_v21 }
 0x935   :  { %2952 = vmatpush.bf16.msrb.mxu0 %v4754_v52  ;;  %2965 = vmatpush.bf16.msra.mxu1 %v4756_v2 }
 0x936   :  { %2978 = vmatpush.bf16.msrb.mxu2 %v4758_v5  ;;  %2991 = vmatpush.bf16.msrb.mxu3 %v4773_v6  ;;  %v5434_v6 = vld [vmem:[#allocation26_spill] sm:$0xff] }
 0x939   :  { %2953 = vmatpush.bf16.msrb.mxu0 %v4763_v59  ;;  %2966 = vmatpush.bf16.msra.mxu1 %v4767_v29 }
 0x93a   :  { %2979 = vmatpush.bf16.msrb.mxu2 %v4769_v11  ;;  %2992 = vmatpush.bf16.msrb.mxu3 %v4785_v54 }
 0x93d   :  { %2954 = vmatpush.bf16.msrb.mxu0 %v4776_v24  ;;  %2967 = vmatpush.bf16.msra.mxu1 %v4780_v32  ;;  %v1851_v24 = vadd.f32 %v5434_v6, %v5019_v22 }
 0x93e   :  { %2980 = vmatpush.bf16.msrb.mxu2 %v4782_v36  ;;  %2993 = vmatpush.bf16.msrb.mxu3 %v4802_v55 }
 0x941   :  { %2955 = vmatpush.bf16.msrb.mxu0 %v4790_v28  ;;  %2968 = vmatpush.bf16.msra.mxu1 %v4796_v35 }
 0x942   :  { %2981 = vmatpush.bf16.msrb.mxu2 %v4798_v38  ;;  %2994 = vmatpush.bf16.msrb.mxu3 %v4817_v49 }
 0x945   :  { %2956 = vmatpush.bf16.msrb.mxu0 %v4806_v10  ;;  %2969 = vmatpush.bf16.msra.mxu1 %v4810_v56 }
 0x946   :  { %2982 = vmatpush.bf16.msrb.mxu2 %v4812_v8  ;;  %2995 = vmatpush.bf16.msrb.mxu3 %v4843_v7 }
 0x949   :  { %2957 = vmatpush.bf16.msrb.mxu0 %v4825_v30  ;;  %2970 = vmatpush.bf16.msra.mxu1 %v4834_v53 }
 0x94a   :  { %2983 = vmatpush.bf16.msrb.mxu2 %v4836_v4  ;;  %2996 = vmatpush.bf16.msrb.mxu3 %v4859_v48  ;;  %v5435_v4 = vld [vmem:[#allocation27_spill] sm:$0xff] }
 0x94b   :  { %v1880_v7 = vadd.f32 %v5435_v4, %v5418_v61 }
 0x94d   :  { %2958 = vmatpush.bf16.msrb.mxu0 %v4855_v13  ;;  %2971 = vmatpush.bf16.msra.mxu1 %v4857_v16 }
 0x94e   :  { %2984 = vmatpush.bf16.msrb.mxu2 %v4863_v51  ;;  %2997 = vmatpush.bf16.msrb.mxu3 %v4878_v3 }
 0x9ac   :  { %v2712_v52 = vpop.f32.mrf.mxu0  ;;  %v2725_v2 = vpop.f32.mrf.mxu1 }
 0x9ad   :  { %v2755_v5 = vadd.f32 %v2712_v52, %v1793_v44  ;;  %v2756_v59 = vadd.f32 %v2725_v2, %v1822_v9 }
 0x9af   :  { %v3596_v29 = vmul.f32 -1.442695, %v2755_v5  ;;  %v3597_v11 = vmul.f32 -1.442695, %v2756_v59 }
 0x9b1   :  { %3925 = vpow2.f32 %v3596_v29  ;;  %v5437_v29 = vld [vmem:[#allocation15_spill] sm:$0xff] }
 0x9b2   :  { %3927 = vpow2.f32 %v3597_v11  ;;  %v1825_v11 = vadd.f32 %v5437_v29, %v5011_v21 }
 0x9b3   :  { %v2738_v32 = vpop.f32.mrf.mxu2  ;;  %v2751_v36 = vpop.f32.mrf.mxu3 }
 0x9b4   :  { %v2757_v54 = vadd.f32 %v2738_v32, %v1851_v24  ;;  %v2714_v28 = vpop.f32.mrf.mxu0  ;;  %v2727_v35 = vpop.f32.mrf.mxu1  ;;  %v2758_v48 = vadd.f32 %v2751_v36, %v1880_v7 }
 0x9b5   :  { %v5438_v35 = vld [vmem:[#allocation12_spill] sm:$0xff] }
 0x9b6   :  { %v3598_v38 = vmul.f32 -1.442695, %v2757_v54 }
 0x9b7   :  { %v3926_v55 = vpop.eup %3925 }
 0x9b8   :  { %v3928_v10 = vpop.eup %3927  ;;  %v2768_v56 = vadd.f32 1.0, %v3926_v55  ;;  %3929 = vpow2.f32 %v3598_v38  ;;  %v1854_v38 = vadd.f32 %v5438_v35, %v5019_v22  ;;  %v3081_v35 = vld [vmem:[%s5330_s7 + $0x58] sm:$0xff] }
 0x9b9   :  { %v2769_v8 = vadd.f32 1.0, %v3928_v10 }
 0x9ba   :  { %3931 = vrcp.f32 %v2768_v56  ;;  %v2782_v63 = vand.u32 2147483648, %v2768_v56  ;;  %v2780_v43 = vand.u32 2147483647, %v2768_v56  ;;  %vm2776_vm15 = vweird.f32 %v2768_v56 }
 0x9bb   :  { %3933 = vrcp.f32 %v2769_v8  ;;  %v2740_v49 = vpop.f32.mrf.mxu2  ;;  %v2753_v30 = vpop.f32.mrf.mxu3  ;;  %v2797_v57 = vand.u32 2147483648, %v2769_v8  ;;  %v2795_v41 = vand.u32 2147483647, %v2769_v8  ;;  %vm2791_vm0 = vweird.f32 %v2769_v8 }
 0x9bc   :  { %v2783_v14 = vor.u32 1.1754944e-38, %v2782_v63  ;;  %vm2781_vm3 = vcmp.eq.f32.partialorder %v2780_v43, 8.507059e+37 }
 0x9bd   :  { %v2798_v50 = vor.u32 1.1754944e-38, %v2797_v57  ;;  %vm2796_vm4 = vcmp.eq.f32.partialorder %v2795_v41, 8.507059e+37 }
 0x9be   :  { %v3930_v53 = vpop.eup %3929 }
 0x9bf   :  { %v2770_v13 = vadd.f32 1.0, %v3930_v53 }
 0x9c0   :  { %v3932_v16 = vpop.eup %3931 }
 0x9c1   :  { %v3934_v51 = vpop.eup %3933  ;;  %v2772_v3 = vmul.f32 %v3932_v16, %v2768_v56  ;;  %3935 = vrcp.f32 %v2770_v13  ;;  %vm2777_vm13 = vweird.f32 %v3932_v16  ;;  %v2812_v42 = vand.u32 2147483648, %v2770_v13 }
 0x9c2   :  { %v2787_v15 = vmul.f32 %v3934_v51, %v2769_v8  ;;  %3937 = vtanh.f32 %v2758_v48  ;;  %vm2792_vm14 = vweird.f32 %v3934_v51  ;;  %vm2778_vm1 = vmor %vm2776_vm15, %vm2777_vm13  ;;  %vm2806_vm6 = vweird.f32 %v2770_v13 }
 0x9c3   :  { %v2773_v26 = vsub.f32 1.0, %v2772_v3  ;;  %vm2793_vm2 = vmor %vm2791_vm0, %vm2792_vm14  ;;  %v2810_v39 = vand.u32 2147483647, %v2770_v13  ;;  %v2813_v60 = vor.u32 1.1754944e-38, %v2812_v42  ;;  %v5439_v3 = vld [vmem:[#allocation32_spill] sm:$0xff] }
 0x9c4   :  { %v2788_v27 = vsub.f32 1.0, %v2787_v15  ;;  %v1883_v15 = vadd.f32 %v5439_v3, %v5418_v61 }
 0x9c5   :  { %v2774_v37 = vmul.f32 %v3932_v16, %v2773_v26  ;;  %vm2811_vm8 = vcmp.eq.f32.partialorder %v2810_v39, 8.507059e+37 }
 0x9c6   :  { %v2789_v33 = vmul.f32 %v3934_v51, %v2788_v27 }
 0x9c7   :  { %v3936_v58 = vpop.eup %3935  ;;  %v2775_v62 = vadd.f32 %v3932_v16, %v2774_v37 }
 0x9c8   :  { %v2802_v40 = vmul.f32 %v3936_v58, %v2770_v13  ;;  %v2790_v47 = vadd.f32 %v3934_v51, %v2789_v33  ;;  %v3938_v45 = vpop.eup %3937  ;;  %vm2807_vm5 = vweird.f32 %v3936_v58 }
 0x9c9   :  { %v2779_v25 = vsel %vm2778_vm1, %v3932_v16, %v2775_v62  ;;  %vm2808_vm7 = vmor %vm2806_vm6, %vm2807_vm5 }
 0x9ca   :  { %v2803_v23 = vsub.f32 1.0, %v2802_v40  ;;  %v2784_v34 = vsel %vm2781_vm3, %v2783_v14, %v2779_v25  ;;  %v2794_v1 = vsel %vm2793_vm2, %v3934_v51, %v2790_v47 }
 0x9cb   :  { %v2799_v17 = vsel %vm2796_vm4, %v2798_v50, %v2794_v1  ;;  %v2818_v18 = vmul.f32 %v3938_v45, %v2784_v34 }
 0x9cc   :  { %v2804_v46 = vmul.f32 %v3936_v58, %v2803_v23  ;;  %v2817_v20 = vmul.f32 %v2799_v17, %v5201_v31  ;;  %v5436_v31 = vld [vmem:[#allocation33_spill] sm:$0xff] }
 0x9cd   :  { %v1796_v59 = vadd.f32 %v5436_v31, %v5009_v19 }
 0x9ce   :  { %v5245_v0 = vadd.f32 %v2818_v18, %v2817_v20  ;;  %v2805_v12 = vadd.f32 %v3936_v58, %v2804_v46 }
 0x9d0   :  { %3939 = vtanh.f32 %v5245_v0  ;;  %v2809_v44 = vsel %vm2808_vm7, %v3936_v58, %v2805_v12 }
 0x9d1   :  { %v2814_v52 = vsel %vm2811_vm8, %v2813_v60, %v2809_v44 }
 0x9d6   :  { %v3940_v9 = vpop.eup %3939 }
 0x9d7   :  { %v2821_v2 = vmul.f32 %v3940_v9, %v2814_v52 }
 0x9d9   :  { %v2826_v5 = vpack.c.bf16 %v2821_v2, %v2821_v2 }
 0x9db   :  { %2835 = vmatmul.bf16.vlgmr.msra.gmra.mxu0 %v2826_v5  ;;  %2848 = vmatmul.bf16.vlgmr.msrb.gmra.mxu1 %v2826_v5 }
 0x9dc   :  { %2861 = vmatmul.bf16.vlgmr.msra.gmra.mxu2 %v2826_v5  ;;  %2874 = vmatmul.bf16.vlgmr.msra.gmra.mxu3 %v2826_v5 }
 0xa58   :  { %v2836_v6 = vpop.f32.mrf.mxu0  ;;  %v2849_v24 = vpop.f32.mrf.mxu1 }
 0xa59   :  { %v2879_v32 = vadd.f32 %v2836_v6, %v1796_v59  ;;  %v2880_v36 = vadd.f32 %v2849_v24, %v1825_v11 }
 0xa5b   :  { %v3599_v54 = vmul.f32 -1.442695, %v2879_v32  ;;  %v3600_v28 = vmul.f32 -1.442695, %v2880_v36  ;;  %v3084_v36 = vld [vmem:[%s5330_s7 + $0x70] sm:$0xff] }
 0xa5d   :  { %3941 = vpow2.f32 %v3599_v54  ;;  %v3083_v54 = vld [vmem:[%s5330_s7 + $0x68] sm:$0xff] }
 0xa5e   :  { %3943 = vpow2.f32 %v3600_v28  ;;  %v3082_v28 = vld [vmem:[%s5330_s7 + $0x60] sm:$0xff] }
 0xa5f   :  { %v2862_v55 = vpop.f32.mrf.mxu2  ;;  %v2875_v10 = vpop.f32.mrf.mxu3 }
 0xa60   :  { %v2881_v56 = vadd.f32 %v2862_v55, %v1854_v38  ;;  %v2838_v8 = vpop.f32.mrf.mxu0  ;;  %v2851_v49 = vpop.f32.mrf.mxu1  ;;  %v2882_v63 = vadd.f32 %v2875_v10, %v1883_v15  ;;  %v3080_v38 = vld [vmem:[%s5330_s7 + $0x50] sm:$0xff]  ;;  %v3079_v55 = vld [vmem:[%s5330_s7 + $0x48] sm:$0xff]  ;;  %v3078_v10 = vld [vmem:[%s5330_s7 + $0x40] sm:$0xff] }
 0xa61   :  { %v5440_v8 = vld [vmem:[#allocation29_spill] sm:$0xff] }
 0xa62   :  { %v3601_v30 = vmul.f32 -1.442695, %v2881_v56  ;;  %v3077_v56 = vld [vmem:[%s5330_s7 + $0x38] sm:$0xff]  ;;  %v1798_v49 = vadd.f32 %v5440_v8, %v5009_v19 }
 0xa63   :  { %v3942_v53 = vpop.eup %3941  ;;  %v3073_v19 = vld [vmem:[%s5330_s7 + $0x18] sm:$0xff] }
 0xa64   :  { %v3944_v4 = vpop.eup %3943  ;;  %v2892_v7 = vadd.f32 1.0, %v3942_v53  ;;  %3945 = vpow2.f32 %v3601_v30  ;;  %v5441_v30 = vld [vmem:[#allocation30_spill] sm:$0xff] }
 0xa65   :  { %v2893_v13 = vadd.f32 1.0, %v3944_v4  ;;  %v1827_v53 = vadd.f32 %v5441_v30, %v5011_v21  ;;  %v3074_v21 = vld [vmem:[%s5330_s7 + $0x20] sm:$0xff] }
 0xa66   :  { %3947 = vrcp.f32 %v2892_v7  ;;  %v2906_v58 = vand.u32 2147483648, %v2892_v7  ;;  %v2904_v14 = vand.u32 2147483647, %v2892_v7  ;;  %vm2900_vm11 = vweird.f32 %v2892_v7 }
 0xa67   :  { %3949 = vrcp.f32 %v2893_v13  ;;  %v2864_v16 = vpop.f32.mrf.mxu2  ;;  %v2877_v48 = vpop.f32.mrf.mxu3  ;;  %v2921_v62 = vand.u32 2147483648, %v2893_v13  ;;  %v2919_v50 = vand.u32 2147483647, %v2893_v13  ;;  %vm2915_vm12 = vweird.f32 %v2893_v13 }
 0xa68   :  { %v2907_v34 = vor.u32 1.1754944e-38, %v2906_v58  ;;  %vm2905_vm15 = vcmp.eq.f32.partialorder %v2904_v14, 8.507059e+37  ;;  %v3071_v58 = vld [vmem:[%s5330_s7 + $0x8] sm:$0xff] }
 0xa69   :  { %v2922_v17 = vor.u32 1.1754944e-38, %v2921_v62  ;;  %vm2920_vm0 = vcmp.eq.f32.partialorder %v2919_v50, 8.507059e+37 }
 0xa6a   :  { %v3946_v51 = vpop.eup %3945 }
 0xa6b   :  { %v2894_v26 = vadd.f32 1.0, %v3946_v51  ;;  %v3075_v51 = vld [vmem:[%s5330_s7 + $0x28] sm:$0xff] }
 0xa6c   :  { %v3948_v27 = vpop.eup %3947 }
 0xa6d   :  { %v3950_v57 = vpop.eup %3949  ;;  %v2896_v37 = vmul.f32 %v3948_v27, %v2892_v7  ;;  %3951 = vrcp.f32 %v2894_v26  ;;  %vm2901_vm9 = vweird.f32 %v3948_v27  ;;  %v2936_v5 = vand.u32 2147483648, %v2894_v26 }
 0xa6e   :  { %v2911_v43 = vmul.f32 %v3950_v57, %v2893_v13  ;;  %3953 = vtanh.f32 %v2882_v63  ;;  %vm2916_vm10 = vweird.f32 %v3950_v57  ;;  %vm2902_vm13 = vmor %vm2900_vm11, %vm2901_vm9  ;;  %vm2930_vm2 = vweird.f32 %v2894_v26  ;;  %v3076_v13 = vld [vmem:[%s5330_s7 + $0x30] sm:$0xff] }
 0xa6f   :  { %v2897_v33 = vsub.f32 1.0, %v2896_v37  ;;  %vm2917_vm14 = vmor %vm2915_vm12, %vm2916_vm10  ;;  %v2934_v31 = vand.u32 2147483647, %v2894_v26  ;;  %v2937_v29 = vor.u32 1.1754944e-38, %v2936_v5  ;;  %v3072_v63 = vld [vmem:[%s5330_s7 + $0x10] sm:$0xff] }
 0xa70   :  { %v2912_v41 = vsub.f32 1.0, %v2911_v43 }
 0xa71   :  { %v2898_v40 = vmul.f32 %v3948_v27, %v2897_v33  ;;  %vm2935_vm4 = vcmp.eq.f32.partialorder %v2934_v31, 8.507059e+37 }
 0xa72   :  { %v2913_v47 = vmul.f32 %v3950_v57, %v2912_v41 }
 0xa73   :  { %v3952_v25 = vpop.eup %3951  ;;  %v2899_v45 = vadd.f32 %v3948_v27, %v2898_v40 }
 0xa74   :  { %v2926_v23 = vmul.f32 %v3952_v25, %v2894_v26  ;;  %v2914_v1 = vadd.f32 %v3950_v57, %v2913_v47  ;;  %v3954_v46 = vpop.eup %3953  ;;  %vm2931_vm1 = vweird.f32 %v3952_v25  ;;  %v5442_v26 = vld [vmem:[#allocation34_spill] sm:$0xff] }
 0xa75   :  { %v2903_v18 = vsel %vm2902_vm13, %v3948_v27, %v2899_v45  ;;  %vm2932_vm3 = vmor %vm2930_vm2, %vm2931_vm1  ;;  %v1856_v27 = vadd.f32 %v5442_v26, %v5019_v22  ;;  %v3070_v22 = vld [vmem:[%s5330_s7] sm:$0xff]  ;;  %vm3110_vm1 = vcmask 31744  }
 0xa76   :  { %v2927_v20 = vsub.f32 1.0, %v2926_v23  ;;  %v2908_v12 = vsel %vm2905_vm15, %v2907_v34, %v2903_v18  ;;  %v2918_v42 = vsel %vm2917_vm14, %v3950_v57, %v2914_v1  ;;  %v5443_v34 = vld [vmem:[#allocation35_spill] sm:$0xff] }
 0xa77   :  { %v2923_v39 = vsel %vm2920_vm0, %v2922_v17, %v2918_v42  ;;  %v2942_v44 = vmul.f32 %v3954_v46, %v2908_v12  ;;  %v1885_v1 = vadd.f32 %v5443_v34, %v5418_v61 }
 0xa78   :  { %v2928_v60 = vmul.f32 %v3952_v25, %v2927_v20  ;;  %v2941_v9 = vmul.f32 %v2923_v39, %v5245_v0  ;;  %v3085_v0 = vld [vmem:[%s5330_s7 + $0x78] sm:$0xff] }
 0xa79   :  { %3090 = vmatpush.msra.mxu0 %v3085_v0 }
 0xa7a   :  { %v5257_v52 = vadd.f32 %v2942_v44, %v2941_v9  ;;  %v2929_v2 = vadd.f32 %v3952_v25, %v2928_v60 }
 0xa7b   :  { %3091 = vmatpush.msra.mxu0 %v3084_v36 }
 0xa7c   :  { %3955 = vtanh.f32 %v5257_v52  ;;  %v2933_v59 = vsel %vm2932_vm3, %v3952_v25, %v2929_v2 }
 0xa7d   :  { %v2938_v6 = vsel %vm2935_vm4, %v2937_v29, %v2933_v59  ;;  %3092 = vmatpush.msra.mxu0 %v3083_v54 }
 0xa7f   :  { %3093 = vmatpush.msra.mxu0 %v3082_v28 }
 0xa81   :  { %3094 = vmatpush.msra.mxu0 %v3081_v35 }
 0xa82   :  { %v3956_v11 = vpop.eup %3955 }
 0xa83   :  { %v2945_v24 = vmul.f32 %v3956_v11, %v2938_v6  ;;  %3095 = vmatpush.msra.mxu0 %v3080_v38 }
 0xa85   :  { %v2950_v32 = vpack.c.bf16 %v2945_v24, %v2945_v24  ;;  %3096 = vmatpush.msra.mxu0 %v3079_v55 }
 0xa87   :  { %2959 = vmatmul.bf16.vlgmr.msrb.gmra.mxu0 %v2950_v32  ;;  %2972 = vmatmul.bf16.vlgmr.msra.gmra.mxu1 %v2950_v32 }
 0xa88   :  { %2985 = vmatmul.bf16.vlgmr.msrb.gmra.mxu2 %v2950_v32  ;;  %2998 = vmatmul.bf16.vlgmr.msrb.gmra.mxu3 %v2950_v32 }
 0xa89   :  { %3097 = vmatpush.msra.mxu0 %v3078_v10 }
 0xa8b   :  { %3098 = vmatpush.msra.mxu0 %v3077_v56 }
 0xa8d   :  { %3099 = vmatpush.msra.mxu0 %v3076_v13 }
 0xa8f   :  { %3100 = vmatpush.msra.mxu0 %v3075_v51  ;;  %v3716_v51 = vld [vmem:[%s5331_s8] ss:$0 sm:$0xff] }
 0xa91   :  { %3101 = vmatpush.msra.mxu0 %v3074_v21 }
 0xa93   :  { %3102 = vmatpush.msra.mxu0 %v3073_v19 }
 0xa95   :  { %3103 = vmatpush.msra.mxu0 %v3072_v63 }
 0xa97   :  { %3104 = vmatpush.msra.mxu0 %v3071_v58 }
 0xa99   :  { %3105 = vmatpush.msra.mxu0 %v3070_v22 }
 0xb04   :  { %v2960_v4 = vpop.f32.mrf.mxu0  ;;  %v2973_v7 = vpop.f32.mrf.mxu1 }
 0xb05   :  { %v3003_v16 = vadd.f32 %v2960_v4, %v1798_v49  ;;  %v3004_v48 = vadd.f32 %v2973_v7, %v1827_v53 }
 0xb07   :  { %v3602_v3 = vmul.f32 -1.442695, %v3003_v16  ;;  %v3603_v15 = vmul.f32 -1.442695, %v3004_v48 }
 0xb09   :  { %3957 = vpow2.f32 %v3602_v3 }
 0xb0a   :  { %3959 = vpow2.f32 %v3603_v15 }
 0xb0b   :  { %v2986_v57 = vpop.f32.mrf.mxu2  ;;  %v2999_v37 = vpop.f32.mrf.mxu3 }
 0xb0c   :  { %v3005_v43 = vadd.f32 %v2986_v57, %v1856_v27  ;;  %v2962_v33 = vpop.f32.mrf.mxu0  ;;  %v2975_v41 = vpop.f32.mrf.mxu1  ;;  %v3006_v46 = vadd.f32 %v2999_v37, %v1885_v1 }
 0xb0e   :  { %v3604_v62 = vmul.f32 -1.442695, %v3005_v43 }
 0xb0f   :  { %v3958_v40 = vpop.eup %3957 }
 0xb10   :  { %v3960_v14 = vpop.eup %3959  ;;  %v3016_v47 = vadd.f32 1.0, %v3958_v40  ;;  %3961 = vpow2.f32 %v3604_v62 }
 0xb11   :  { %v3017_v50 = vadd.f32 1.0, %v3960_v14 }
 0xb12   :  { %3963 = vrcp.f32 %v3016_v47  ;;  %v3030_v60 = vand.u32 2147483648, %v3016_v47  ;;  %v3028_v5 = vand.u32 2147483647, %v3016_v47  ;;  %vm3024_vm7 = vweird.f32 %v3016_v47 }
 0xb13   :  { %3965 = vrcp.f32 %v3017_v50  ;;  %v2988_v25 = vpop.f32.mrf.mxu2  ;;  %v3001_v45 = vpop.f32.mrf.mxu3  ;;  %v3045_v9 = vand.u32 2147483648, %v3017_v50  ;;  %v3043_v59 = vand.u32 2147483647, %v3017_v50  ;;  %vm3039_vm8 = vweird.f32 %v3017_v50 }
 0xb14   :  { %v3031_v6 = vor.u32 1.1754944e-38, %v3030_v60  ;;  %vm3029_vm11 = vcmp.eq.f32.partialorder %v3028_v5, 8.507059e+37 }
 0xb15   :  { %v3046_v32 = vor.u32 1.1754944e-38, %v3045_v9  ;;  %vm3044_vm12 = vcmp.eq.f32.partialorder %v3043_v59, 8.507059e+37 }
 0xb16   :  { %v3962_v23 = vpop.eup %3961 }
 0xb17   :  { %v3018_v17 = vadd.f32 1.0, %v3962_v23 }
 0xb18   :  { %v3964_v18 = vpop.eup %3963 }
 0xb19   :  { %v3966_v20 = vpop.eup %3965  ;;  %v3020_v12 = vmul.f32 %v3964_v18, %v3016_v47  ;;  %3967 = vrcp.f32 %v3018_v17  ;;  %vm3025_vm5 = vweird.f32 %v3964_v18  ;;  %v3060_v30 = vand.u32 2147483648, %v3018_v17 }
 0xb1a   :  { %v3035_v42 = vmul.f32 %v3966_v20, %v3017_v50  ;;  %3969 = vtanh.f32 %v3006_v46  ;;  %vm3040_vm6 = vweird.f32 %v3966_v20  ;;  %vm3026_vm9 = vmor %vm3024_vm7, %vm3025_vm5  ;;  %vm3054_vm14 = vweird.f32 %v3018_v17 }
 0xb1b   :  { %v3021_v39 = vsub.f32 1.0, %v3020_v12  ;;  %vm3041_vm10 = vmor %vm3039_vm8, %vm3040_vm6  ;;  %v3058_v53 = vand.u32 2147483647, %v3018_v17  ;;  %v3061_v7 = vor.u32 1.1754944e-38, %v3060_v30 }
 0xb1c   :  { %v3036_v44 = vsub.f32 1.0, %v3035_v42 }
 0xb1d   :  { %v3022_v2 = vmul.f32 %v3964_v18, %v3021_v39  ;;  %vm3059_vm0 = vcmp.eq.f32.partialorder %v3058_v53, 8.507059e+37 }
 0xb1e   :  { %v3037_v31 = vmul.f32 %v3966_v20, %v3036_v44 }
 0xb1f   :  { %v3968_v29 = vpop.eup %3967  ;;  %v3023_v61 = vadd.f32 %v3964_v18, %v3022_v2 }
 0xb20   :  { %v3050_v11 = vmul.f32 %v3968_v29, %v3018_v17  ;;  %v3038_v24 = vadd.f32 %v3966_v20, %v3037_v31  ;;  %v3970_v36 = vpop.eup %3969  ;;  %vm3055_vm13 = vweird.f32 %v3968_v29 }
 0xb21   :  { %v3027_v0 = vsel %vm3026_vm9, %v3964_v18, %v3023_v61  ;;  %vm3056_vm15 = vmor %vm3054_vm14, %vm3055_vm13 }
 0xb22   :  { %v3051_v54 = vsub.f32 1.0, %v3050_v11  ;;  %v3032_v28 = vsel %vm3029_vm11, %v3031_v6, %v3027_v0  ;;  %v3042_v35 = vsel %vm3041_vm10, %v3966_v20, %v3038_v24 }
 0xb23   :  { %v3047_v38 = vsel %vm3044_vm12, %v3046_v32, %v3042_v35  ;;  %v3066_v55 = vmul.f32 %v3970_v36, %v3032_v28 }
 0xb24   :  { %v3052_v10 = vmul.f32 %v3968_v29, %v3051_v54  ;;  %v3065_v56 = vmul.f32 %v3047_v38, %v5257_v52 }
 0xb26   :  { %v3067_v8 = vadd.f32 %v3066_v55, %v3065_v56  ;;  %v3053_v49 = vadd.f32 %v3968_v29, %v3052_v10 }
 0xb28   :  { %3971 = vtanh.f32 %v3067_v8  ;;  %v3057_v4 = vsel %vm3056_vm15, %v3968_v29, %v3053_v49 }
 0xb29   :  { %v3062_v16 = vsel %vm3059_vm0, %v3061_v7, %v3057_v4 }
 0xb2e   :  { %v3972_v13 = vpop.eup %3971 }
 0xb2f   :  { %v3069_v48 = vmul.f32 %v3972_v13, %v3062_v16 }
 0xb31   :  { %3106 = vmatmul.f32.vlgmr.msra.gmra.mxu0 %v3069_v48 }
 0xbae   :  { %v3107_v52 = vpop.f32.mrf.mxu0 }
 0xbaf   :  { %v3108_v3 = vadd.f32 %v3716_v51, %v3107_v52 }
 0xbb1   :  { %3111 = vst.msk [vmem:[%s5332_s9] sm:$0xff] %vm3110_vm1, %v3108_v3 }
 0xbb2   :  { %3116 = vsyncpa [#allocation5], 1 }
 0xbb3   :  { %3117 = vsyncpa [#allocation7], 1 }

</bundles_post_ra>
